<compile_context>
chip_gen: v5e
topology: v5e:2x2
jax: 0.10.0
libtpu: 0.0.40
codegen_flags: <defaults>
</compile_context>

<pallas_src>
import jax
import jax.numpy as jnp
from jax.experimental import pallas as pl
from jax.experimental.pallas import tpu as pltpu

_LANE = 128  # TPU lane width.

# SELU constants (match torch.nn.SELU)
_SELU_SCALE = 1.0507009873554804934193349852946
_SELU_ALPHA = 1.6732632423543772848170429916717
_INV_SQRT2 = 0.7071067811865476


def _round_up(n, m):
    return ((n + m - 1) // m) * m


def _erf(x):
    # Abramowitz & Stegun 7.1.26, |abs error| < 1.5e-7 -> matches torch's exact
    # erf-based nn.GELU well below the 1e-4 tolerance.
    a1, a2, a3, a4, a5 = (0.254829592, -0.284496736, 1.421413741,
                          -1.453152027, 1.061405429)
    p = 0.3275911
    s = jnp.where(x < 0.0, -1.0, 1.0)
    ax = jnp.abs(x)
    t = 1.0 / (1.0 + p * ax)
    poly = ((((a5 * t + a4) * t + a3) * t + a2) * t + a1) * t
    return s * (1.0 - poly * jnp.exp(-ax * ax))


def _gelu(x):
    return 0.5 * x * (1.0 + _erf(x * _INV_SQRT2))


# -----------------------------------------------------------------------------
# Kernel: 18 refs = x_cat, 16 prepared weight arrays, out.
# -----------------------------------------------------------------------------
def _model_kernel(x_ref, w0_ref, b0_ref, w1_ref, b1_ref, w2_ref, b2_ref,
                  w3_ref, b3_ref, w4_ref, b4_ref, wh0_ref, bh0_ref,
                  wh1_ref, bh1_ref, wh2_ref, bh2_ref, out_ref):
    x = x_ref[...]

    # Fused layer 0 of all three branches: one (tile,128)@(128,1536) matmul.
    # w0 is block-structured (branch k's input rows only feed columns
    # [512k, 512(k+1))), so this is exactly Linear0 of each branch.
    h0 = jnp.dot(x, w0_ref[...], preferred_element_type=jnp.float32) + b0_ref[...]
    h0 = 1.0 / (1.0 + jnp.exp(-h0))                                   # Sigmoid

    # Per-branch layers 1..4; the head's first Linear(48,32) is folded into a
    # per-branch (16,32) chunk and summed (replaces torch.cat).
    head_in = bh0_ref[...]                                            # (1, 32)
    for k in range(3):                                                # static unroll
        h = h0[:, 512 * k:512 * (k + 1)]
        h = jnp.dot(h, w1_ref[k], preferred_element_type=jnp.float32) + b1_ref[k]
        h = jnp.maximum(h, 0.0)                                       # ReLU
        h = jnp.dot(h, w2_ref[k], preferred_element_type=jnp.float32) + b2_ref[k]
        # exp(h)-1 vs expm1 differs by <= ~1e-7 in the selected branch.
        h = jnp.where(h > 0.0, h, jnp.exp(h) - 1.0)                   # ELU(alpha=1)
        h = jnp.dot(h, w3_ref[k], preferred_element_type=jnp.float32) + b3_ref[k]
        h = _SELU_SCALE * jnp.where(h > 0.0, h,
                                    _SELU_ALPHA * (jnp.exp(h) - 1.0))  # SELU
        h = jnp.dot(h, w4_ref[k], preferred_element_type=jnp.float32) + b4_ref[k]
        h = _gelu(h)                                                  # GELU (exact)
        head_in = head_in + jnp.dot(h, wh0_ref[k],
                                    preferred_element_type=jnp.float32)

    # Head: ReLU, Linear(32,16)+ReLU, Linear(16,out_pad).
    h = jnp.maximum(head_in, 0.0)
    h = jnp.dot(h, wh1_ref[...], preferred_element_type=jnp.float32) + bh1_ref[...]
    h = jnp.maximum(h, 0.0)
    out = jnp.dot(h, wh2_ref[...], preferred_element_type=jnp.float32) + bh2_ref[...]
    out_ref[...] = out.astype(out_ref.dtype)


# -----------------------------------------------------------------------------
# One-time weight preparation (hoisted out of the per-call path).
# -----------------------------------------------------------------------------
def prepare_weights(params):
    """Stack / minimally pad the weights once.

    Zero padding is semantics-preserving: padded input columns meet zero weight
    rows, and padded output lanes have zero weights and zero bias, so they
    never leak into real outputs."""
    branch_names = ("nn0", "nn1", "nn2")
    in_dims = [params[n][0][0].shape[0] for n in branch_names]
    d0 = sum(in_dims)
    d0_pad = _round_up(d0, _LANE)                       # fused layer-0 K dim

    w0 = jnp.zeros((d0_pad, 3 * 512), jnp.float32)      # block-structured
    b0 = jnp.zeros((1, 3 * 512), jnp.float32)
    stacks = {i: ([], []) for i in range(1, 5)}
    row = 0
    for k, name in enumerate(branch_names):
        layers = params[name]
        W0, B0 = layers[0]
        w0 = w0.at[row:row + W0.shape[0], 512 * k:512 * (k + 1)].set(W0)
        b0 = b0.at[:, 512 * k:512 * (k + 1)].set(B0)
        row += W0.shape[0]
        for li in range(1, 5):
            Wl, Bl = layers[li]
            stacks[li][0].append(Wl)
            stacks[li][1].append(Bl)

    w1, b1 = jnp.stack(stacks[1][0]), jnp.stack(stacks[1][1])  # (3,512,256),(3,1,256)
    w2, b2 = jnp.stack(stacks[2][0]), jnp.stack(stacks[2][1])  # (3,256,64), (3,1,64)
    w3, b3 = jnp.stack(stacks[3][0]), jnp.stack(stacks[3][1])  # (3,64,16),  (3,1,16)
    w4, b4 = jnp.stack(stacks[4][0]), jnp.stack(stacks[4][1])  # (3,16,16),  (3,1,16)

    (WH0, BH0), (WH1, BH1), (WH2, BH2) = params["head"]
    wh0 = jnp.stack([WH0[16 * k:16 * (k + 1)] for k in range(3)])  # (3,16,32)
    out_dim = WH2.shape[1]
    out_pad = _round_up(out_dim, _LANE)                 # lane-dense final store
    wh2 = jnp.pad(WH2, ((0, 0), (0, out_pad - out_dim)))
    bh2 = jnp.pad(BH2, ((0, 0), (0, out_pad - out_dim)))

    weights = (w0, b0, w1, b1, w2, b2, w3, b3, w4, b4,
               wh0, BH0, WH1, BH1, wh2, bh2)
    return {"weights": weights, "in_dims": tuple(in_dims),
            "d0_pad": d0_pad, "out_dim": out_dim, "out_pad": out_pad}


def _pick_batch_tile(B):
    """Adaptive batch tiling (review feedback for v5e/v6e/v7x)."""
    Bp = _round_up(max(B, 1), 8)          # f32 sublane granularity only
    if Bp <= 128:
        return Bp, Bp                     # tiny batch: one step, no wasted rows
    if Bp <= 1024:
        tile = _round_up((Bp + 1) // 2, 8)  # two steps -> both v7x TensorCores
        return 2 * tile, tile
    tile = 512                            # fills the 256-row MXU, amortizes step cost
    return _round_up(Bp, tile), tile


# -----------------------------------------------------------------------------
# Forward wrapper.
# -----------------------------------------------------------------------------
def custom_model_sc_forward(x_psd, x_anat, x_sc, prepared, *, batch_tile=None):
    """Fused forward pass of CustomModel_Sc.

    x_*: (B, in_dim) float32.  `prepared` comes from prepare_weights(params)
    (run once at init — no per-call weight padding)."""
    weights = prepared["weights"]
    d0_pad = prepared["d0_pad"]
    out_dim, out_pad = prepared["out_dim"], prepared["out_pad"]

    B = x_psd.shape[0]
    if batch_tile is None:
        Bp, tile = _pick_batch_tile(B)
    else:
        tile = _round_up(batch_tile, 8)
        Bp = _round_up(B, tile)

    x_cat = jnp.concatenate([x_psd, x_anat, x_sc], axis=1).astype(jnp.float32)
    x_cat = jnp.pad(x_cat, ((0, Bp - B), (0, d0_pad - x_cat.shape[1])))

    grid = (Bp // tile,)
    in_specs = [pl.BlockSpec((tile, d0_pad), lambda i: (i, 0))]
    # Weights/biases: full-array blocks with constant index maps -> DMA'd once,
    # resident in VMEM across the whole (parallel) batch grid.
    in_specs += [pl.BlockSpec(w.shape, lambda i, n=w.ndim: (0,) * n)
                 for w in weights]
    out_spec = pl.BlockSpec((tile, out_pad), lambda i: (i, 0))

    weight_bytes = sum(int(w.size) * 4 for w in weights)
    per_row_mac = (d0_pad * 1536
                   + 3 * (512 * 256 + 256 * 64 + 64 * 16 + 16 * 16 + 16 * 32)
                   + 32 * 16 + 16 * out_pad)
    cost = pl.CostEstimate(
        flops=2 * Bp * per_row_mac,
        transcendentals=Bp * (1536 + 3 * (64 + 16 + 16)),
        bytes_accessed=weight_bytes + 4 * Bp * (d0_pad + out_pad),
    )

    out = pl.pallas_call(
        _model_kernel,
        out_shape=jax.ShapeDtypeStruct((Bp, out_pad), jnp.float32),
        grid_spec=pltpu.PrefetchScalarGridSpec(
            num_scalar_prefetch=0,
            grid=grid,
            in_specs=in_specs,
            out_specs=out_spec,
        ),
        compiler_params=pltpu.CompilerParams(
            dimension_semantics=("parallel",)),
        cost_estimate=cost,
    )(x_cat, *weights)

    return out[:B, :out_dim]


# -----------------------------------------------------------------------------
# Parameter init (PyTorch Linear default: U(-1/sqrt(fan_in), 1/sqrt(fan_in)))
# and a pure-JAX reference for correctness checking.
# -----------------------------------------------------------------------------
def _linear_init(key, fan_in, fan_out):
    kw, kb = jax.random.split(key)
    bound = 1.0 / (fan_in ** 0.5)
    W = jax.random.uniform(kw, (fan_in, fan_out), jnp.float32, -bound, bound)
    b = jax.random.uniform(kb, (1, fan_out), jnp.float32, -bound, bound)
    return W, b


def init_params(key, input_size_psd, input_size_anat, input_size_sc, output_size):
    params = {}
    for name, in_dim in (("nn0", input_size_psd),
                         ("nn1", input_size_anat),
                         ("nn2", input_size_sc)):
        dims = [in_dim, 512, 256, 64, 16, 16]
        layers = []
        for i in range(5):
            key, sub = jax.random.split(key)
            layers.append(_linear_init(sub, dims[i], dims[i + 1]))
        params[name] = layers
    head_dims = [48, 32, 16, output_size]
    head = []
    for i in range(3):
        key, sub = jax.random.split(key)
        head.append(_linear_init(sub, head_dims[i], head_dims[i + 1]))
    params["head"] = head
    return params


def model_reference(x_psd, x_anat, x_sc, params):
    def branch(x, layers):
        (w0, b0), (w1, b1), (w2, b2), (w3, b3), (w4, b4) = layers
        h = jax.nn.sigmoid(x @ w0 + b0)
        h = jax.nn.relu(h @ w1 + b1)
        h = jax.nn.elu(h @ w2 + b2)
        h = jax.nn.selu(h @ w3 + b3)
        return jax.nn.gelu(h @ w4 + b4, approximate=False)

    c = jnp.concatenate([branch(x_psd, params["nn0"]),
                         branch(x_anat, params["nn1"]),
                         branch(x_sc, params["nn2"])], axis=1)
    (wh0, bh0), (wh1, bh1), (wh2, bh2) = params["head"]
    h = jax.nn.relu(c @ wh0 + bh0)
    h = jax.nn.relu(h @ wh1 + bh1)
    return h @ wh2 + bh2


if __name__ == "__main__":
    input_size_psd, input_size_anat, input_size_sc = 40, 24, 12
    output_size = 6
    batch = 16

    key = jax.random.PRNGKey(0)
    key, k0, k1, k2 = jax.random.split(key, 4)
    x_psd = jax.random.normal(k0, (batch, input_size_psd), dtype=jnp.float32)
    x_anat = jax.random.normal(k1, (batch, input_size_anat), dtype=jnp.float32)
    x_sc = jax.random.normal(k2, (batch, input_size_sc), dtype=jnp.float32)

    params = init_params(key, input_size_psd, input_size_anat, input_size_sc,
                         output_size)

    # One-time weight preparation (stacking / minimal padding) — NOT per call.
    prepared = prepare_weights(params)

    out = custom_model_sc_forward(x_psd, x_anat, x_sc, prepared)
    out = jax.block_until_ready(out)

    ref = model_reference(x_psd, x_anat, x_sc, params)
    assert out.shape == (batch, output_size)
    err = float(jnp.max(jnp.abs(out - ref)))
    assert jnp.allclose(out, ref, atol=1e-4, rtol=1e-4), f"max abs err = {err}"

    print("KERNEL_OK")
</pallas_src>

<mosaic_0001>
module attributes {stable_mosaic.version = 11 : i64} {
  func.func @_model_kernel(%arg0: i32, %arg1: memref<16x128xf32, #tpu.memory_space<vmem>>, %arg2: memref<128x1536xf32, #tpu.memory_space<vmem>>, %arg3: memref<1x1536xf32, #tpu.memory_space<vmem>>, %arg4: memref<3x512x256xf32, #tpu.memory_space<vmem>>, %arg5: memref<3x1x256xf32, #tpu.memory_space<vmem>>, %arg6: memref<3x256x64xf32, #tpu.memory_space<vmem>>, %arg7: memref<3x1x64xf32, #tpu.memory_space<vmem>>, %arg8: memref<3x64x16xf32, #tpu.memory_space<vmem>>, %arg9: memref<3x1x16xf32, #tpu.memory_space<vmem>>, %arg10: memref<3x16x16xf32, #tpu.memory_space<vmem>>, %arg11: memref<3x1x16xf32, #tpu.memory_space<vmem>>, %arg12: memref<3x16x32xf32, #tpu.memory_space<vmem>>, %arg13: memref<1x32xf32, #tpu.memory_space<vmem>>, %arg14: memref<32x16xf32, #tpu.memory_space<vmem>>, %arg15: memref<1x16xf32, #tpu.memory_space<vmem>>, %arg16: memref<16x128xf32, #tpu.memory_space<vmem>>, %arg17: memref<1x128xf32, #tpu.memory_space<vmem>>, %arg18: memref<16x128xf32, #tpu.memory_space<vmem>>) attributes {dimension_semantics = [#tpu.dimension_semantics<parallel>], iteration_bounds = array<i64: 1>, scalar_prefetch = 0 : i64, scratch_operands = 0 : i64, tpu.core_type = #tpu.core_type<tc>, window_params = [{transform_indices = @transform_0, window_bounds = array<i64: 16, 128>}, {pipeline_mode = #tpu.pipeline_mode<synchronous>, transform_indices = @transform_1, window_bounds = array<i64: 128, 1536>}, {pipeline_mode = #tpu.pipeline_mode<synchronous>, transform_indices = @transform_2, window_bounds = array<i64: 1, 1536>}, {pipeline_mode = #tpu.pipeline_mode<synchronous>, transform_indices = @transform_3, window_bounds = array<i64: 3, 512, 256>}, {pipeline_mode = #tpu.pipeline_mode<synchronous>, transform_indices = @transform_4, window_bounds = array<i64: 3, 1, 256>}, {pipeline_mode = #tpu.pipeline_mode<synchronous>, transform_indices = @transform_5, window_bounds = array<i64: 3, 256, 64>}, {pipeline_mode = #tpu.pipeline_mode<synchronous>, transform_indices = @transform_6, window_bounds = array<i64: 3, 1, 64>}, {pipeline_mode = #tpu.pipeline_mode<synchronous>, transform_indices = @transform_7, window_bounds = array<i64: 3, 64, 16>}, {pipeline_mode = #tpu.pipeline_mode<synchronous>, transform_indices = @transform_8, window_bounds = array<i64: 3, 1, 16>}, {pipeline_mode = #tpu.pipeline_mode<synchronous>, transform_indices = @transform_9, window_bounds = array<i64: 3, 16, 16>}, {pipeline_mode = #tpu.pipeline_mode<synchronous>, transform_indices = @transform_10, window_bounds = array<i64: 3, 1, 16>}, {pipeline_mode = #tpu.pipeline_mode<synchronous>, transform_indices = @transform_11, window_bounds = array<i64: 3, 16, 32>}, {pipeline_mode = #tpu.pipeline_mode<synchronous>, transform_indices = @transform_12, window_bounds = array<i64: 1, 32>}, {pipeline_mode = #tpu.pipeline_mode<synchronous>, transform_indices = @transform_13, window_bounds = array<i64: 32, 16>}, {pipeline_mode = #tpu.pipeline_mode<synchronous>, transform_indices = @transform_14, window_bounds = array<i64: 1, 16>}, {pipeline_mode = #tpu.pipeline_mode<synchronous>, transform_indices = @transform_15, window_bounds = array<i64: 16, 128>}, {pipeline_mode = #tpu.pipeline_mode<synchronous>, transform_indices = @transform_16, window_bounds = array<i64: 1, 128>}, {transform_indices = @transform_17, window_bounds = array<i64: 16, 128>}]} {
    %c0 = arith.constant 0 : index
    %c0_0 = arith.constant 0 : index
    %0 = vector.load %arg1[%c0, %c0_0] : memref<16x128xf32, #tpu.memory_space<vmem>>, vector<16x128xf32>
    %c0_1 = arith.constant 0 : index
    %c0_2 = arith.constant 0 : index
    %1 = vector.load %arg2[%c0_1, %c0_2] : memref<128x1536xf32, #tpu.memory_space<vmem>>, vector<128x1536xf32>
    %cst = arith.constant dense<0.000000e+00> : vector<16x1536xf32>
    %2 = tpu.matmul %0, %1, %cst {dimension_numbers = #tpu.dot_dimension_numbers<[1], [0], [0], [1], [0, 0, 1, 1], [], []>} : vector<16x128xf32>, vector<128x1536xf32>, vector<16x1536xf32> -> vector<16x1536xf32>
    %c0_3 = arith.constant 0 : index
    %c0_4 = arith.constant 0 : index
    %3 = vector.load %arg3[%c0_3, %c0_4] : memref<1x1536xf32, #tpu.memory_space<vmem>>, vector<1x1536xf32>
    %4 = vector.broadcast %3 : vector<1x1536xf32> to vector<16x1536xf32>
    %5 = arith.addf %2, %4 : vector<16x1536xf32>
    %cst_5 = arith.constant 0.000000e+00 : f32
    %6 = vector.broadcast %cst_5 : f32 to vector<16x1536xf32>
    %7 = arith.subf %6, %5 : vector<16x1536xf32>
    %8 = math.exp %7 : vector<16x1536xf32>
    %cst_6 = arith.constant 1.000000e+00 : f32
    %9 = vector.broadcast %cst_6 : f32 to vector<16x1536xf32>
    %10 = arith.addf %9, %8 : vector<16x1536xf32>
    %cst_7 = arith.constant 1.000000e+00 : f32
    %11 = vector.broadcast %cst_7 : f32 to vector<16x1536xf32>
    %12 = arith.divf %11, %10 : vector<16x1536xf32>
    %c0_8 = arith.constant 0 : index
    %c0_9 = arith.constant 0 : index
    %13 = vector.load %arg13[%c0_8, %c0_9] : memref<1x32xf32, #tpu.memory_space<vmem>>, vector<1x32xf32>
    %14 = vector.extract_strided_slice %12 {offsets = [0, 0], sizes = [16, 512], strides = [1, 1]} : vector<16x1536xf32> to vector<16x512xf32>
    %c0_10 = arith.constant 0 : index
    %c0_11 = arith.constant 0 : index
    %c0_12 = arith.constant 0 : index
    %15 = vector.load %arg4[%c0_10, %c0_11, %c0_12] : memref<3x512x256xf32, #tpu.memory_space<vmem>>, vector<1x512x256xf32>
    %16 = vector.shape_cast %15 : vector<1x512x256xf32> to vector<512x256xf32>
    %cst_13 = arith.constant dense<0.000000e+00> : vector<16x256xf32>
    %17 = tpu.matmul %14, %16, %cst_13 {dimension_numbers = #tpu.dot_dimension_numbers<[1], [0], [0], [1], [0, 0, 1, 1], [], []>} : vector<16x512xf32>, vector<512x256xf32>, vector<16x256xf32> -> vector<16x256xf32>
    %c0_14 = arith.constant 0 : index
    %c0_15 = arith.constant 0 : index
    %c0_16 = arith.constant 0 : index
    %18 = vector.load %arg5[%c0_14, %c0_15, %c0_16] : memref<3x1x256xf32, #tpu.memory_space<vmem>>, vector<1x1x256xf32>
    %19 = vector.shape_cast %18 : vector<1x1x256xf32> to vector<1x256xf32>
    %20 = vector.broadcast %19 : vector<1x256xf32> to vector<16x256xf32>
    %21 = arith.addf %17, %20 : vector<16x256xf32>
    %cst_17 = arith.constant 0.000000e+00 : f32
    %22 = vector.broadcast %cst_17 : f32 to vector<16x256xf32>
    %23 = arith.maximumf %21, %22 : vector<16x256xf32>
    %c0_18 = arith.constant 0 : index
    %c0_19 = arith.constant 0 : index
    %c0_20 = arith.constant 0 : index
    %24 = vector.load %arg6[%c0_18, %c0_19, %c0_20] : memref<3x256x64xf32, #tpu.memory_space<vmem>>, vector<1x256x64xf32>
    %25 = vector.shape_cast %24 : vector<1x256x64xf32> to vector<256x64xf32>
    %cst_21 = arith.constant dense<0.000000e+00> : vector<16x64xf32>
    %26 = tpu.matmul %23, %25, %cst_21 {dimension_numbers = #tpu.dot_dimension_numbers<[1], [0], [0], [1], [0, 0, 1, 1], [], []>} : vector<16x256xf32>, vector<256x64xf32>, vector<16x64xf32> -> vector<16x64xf32>
    %c0_22 = arith.constant 0 : index
    %c0_23 = arith.constant 0 : index
    %c0_24 = arith.constant 0 : index
    %27 = vector.load %arg7[%c0_22, %c0_23, %c0_24] : memref<3x1x64xf32, #tpu.memory_space<vmem>>, vector<1x1x64xf32>
    %28 = vector.shape_cast %27 : vector<1x1x64xf32> to vector<1x64xf32>
    %29 = vector.broadcast %28 : vector<1x64xf32> to vector<16x64xf32>
    %30 = arith.addf %26, %29 : vector<16x64xf32>
    %cst_25 = arith.constant 0.000000e+00 : f32
    %31 = vector.broadcast %cst_25 : f32 to vector<16x64xf32>
    %32 = arith.cmpf ogt, %30, %31 : vector<16x64xf32>
    %33 = math.exp %30 : vector<16x64xf32>
    %cst_26 = arith.constant 1.000000e+00 : f32
    %34 = vector.broadcast %cst_26 : f32 to vector<16x64xf32>
    %35 = arith.subf %33, %34 : vector<16x64xf32>
    %36 = arith.select %32, %30, %35 : vector<16x64xi1>, vector<16x64xf32>
    %c0_27 = arith.constant 0 : index
    %c0_28 = arith.constant 0 : index
    %c0_29 = arith.constant 0 : index
    %37 = vector.load %arg8[%c0_27, %c0_28, %c0_29] : memref<3x64x16xf32, #tpu.memory_space<vmem>>, vector<1x64x16xf32>
    %38 = vector.shape_cast %37 : vector<1x64x16xf32> to vector<64x16xf32>
    %cst_30 = arith.constant dense<0.000000e+00> : vector<16x16xf32>
    %39 = tpu.matmul %36, %38, %cst_30 {dimension_numbers = #tpu.dot_dimension_numbers<[1], [0], [0], [1], [0, 0, 1, 1], [], []>} : vector<16x64xf32>, vector<64x16xf32>, vector<16x16xf32> -> vector<16x16xf32>
    %c0_31 = arith.constant 0 : index
    %c0_32 = arith.constant 0 : index
    %c0_33 = arith.constant 0 : index
    %40 = vector.load %arg9[%c0_31, %c0_32, %c0_33] : memref<3x1x16xf32, #tpu.memory_space<vmem>>, vector<1x1x16xf32>
    %41 = vector.shape_cast %40 : vector<1x1x16xf32> to vector<1x16xf32>
    %42 = vector.broadcast %41 : vector<1x16xf32> to vector<16x16xf32>
    %43 = arith.addf %39, %42 : vector<16x16xf32>
    %cst_34 = arith.constant 0.000000e+00 : f32
    %44 = vector.broadcast %cst_34 : f32 to vector<16x16xf32>
    %45 = arith.cmpf ogt, %43, %44 : vector<16x16xf32>
    %46 = math.exp %43 : vector<16x16xf32>
    %cst_35 = arith.constant 1.000000e+00 : f32
    %47 = vector.broadcast %cst_35 : f32 to vector<16x16xf32>
    %48 = arith.subf %46, %47 : vector<16x16xf32>
    %cst_36 = arith.constant 1.67326319 : f32
    %49 = vector.broadcast %cst_36 : f32 to vector<16x16xf32>
    %50 = arith.mulf %49, %48 : vector<16x16xf32>
    %51 = arith.select %45, %43, %50 : vector<16x16xi1>, vector<16x16xf32>
    %cst_37 = arith.constant 1.05070102 : f32
    %52 = vector.broadcast %cst_37 : f32 to vector<16x16xf32>
    %53 = arith.mulf %52, %51 : vector<16x16xf32>
    %c0_38 = arith.constant 0 : index
    %c0_39 = arith.constant 0 : index
    %c0_40 = arith.constant 0 : index
    %54 = vector.load %arg10[%c0_38, %c0_39, %c0_40] : memref<3x16x16xf32, #tpu.memory_space<vmem>>, vector<1x16x16xf32>
    %55 = vector.shape_cast %54 : vector<1x16x16xf32> to vector<16x16xf32>
    %cst_41 = arith.constant dense<0.000000e+00> : vector<16x16xf32>
    %56 = tpu.matmul %53, %55, %cst_41 {dimension_numbers = #tpu.dot_dimension_numbers<[1], [0], [0], [1], [0, 0, 1, 1], [], []>} : vector<16x16xf32>, vector<16x16xf32>, vector<16x16xf32> -> vector<16x16xf32>
    %c0_42 = arith.constant 0 : index
    %c0_43 = arith.constant 0 : index
    %c0_44 = arith.constant 0 : index
    %57 = vector.load %arg11[%c0_42, %c0_43, %c0_44] : memref<3x1x16xf32, #tpu.memory_space<vmem>>, vector<1x1x16xf32>
    %58 = vector.shape_cast %57 : vector<1x1x16xf32> to vector<1x16xf32>
    %59 = vector.broadcast %58 : vector<1x16xf32> to vector<16x16xf32>
    %60 = arith.addf %56, %59 : vector<16x16xf32>
    %cst_45 = arith.constant 5.000000e-01 : f32
    %61 = vector.broadcast %cst_45 : f32 to vector<16x16xf32>
    %62 = arith.mulf %61, %60 : vector<16x16xf32>
    %cst_46 = arith.constant 0.707106769 : f32
    %63 = vector.broadcast %cst_46 : f32 to vector<16x16xf32>
    %64 = arith.mulf %60, %63 : vector<16x16xf32>
    %cst_47 = arith.constant 0.000000e+00 : f32
    %65 = vector.broadcast %cst_47 : f32 to vector<16x16xf32>
    %66 = arith.cmpf olt, %64, %65 : vector<16x16xf32>
    %cst_48 = arith.constant -1.000000e+00 : f32
    %cst_49 = arith.constant 1.000000e+00 : f32
    %67 = vector.broadcast %cst_48 : f32 to vector<16x16xf32>
    %68 = vector.broadcast %cst_49 : f32 to vector<16x16xf32>
    %69 = arith.select %66, %67, %68 : vector<16x16xi1>, vector<16x16xf32>
    %70 = math.absf %64 : vector<16x16xf32>
    %cst_50 = arith.constant 0.327591091 : f32
    %71 = vector.broadcast %cst_50 : f32 to vector<16x16xf32>
    %72 = arith.mulf %71, %70 : vector<16x16xf32>
    %cst_51 = arith.constant 1.000000e+00 : f32
    %73 = vector.broadcast %cst_51 : f32 to vector<16x16xf32>
    %74 = arith.addf %73, %72 : vector<16x16xf32>
    %cst_52 = arith.constant 1.000000e+00 : f32
    %75 = vector.broadcast %cst_52 : f32 to vector<16x16xf32>
    %76 = arith.divf %75, %74 : vector<16x16xf32>
    %cst_53 = arith.constant 1.06140542 : f32
    %77 = vector.broadcast %cst_53 : f32 to vector<16x16xf32>
    %78 = arith.mulf %77, %76 : vector<16x16xf32>
    %cst_54 = arith.constant -1.45315206 : f32
    %79 = vector.broadcast %cst_54 : f32 to vector<16x16xf32>
    %80 = arith.addf %78, %79 : vector<16x16xf32>
    %81 = arith.mulf %80, %76 : vector<16x16xf32>
    %cst_55 = arith.constant 1.42141378 : f32
    %82 = vector.broadcast %cst_55 : f32 to vector<16x16xf32>
    %83 = arith.addf %81, %82 : vector<16x16xf32>
    %84 = arith.mulf %83, %76 : vector<16x16xf32>
    %cst_56 = arith.constant -0.284496725 : f32
    %85 = vector.broadcast %cst_56 : f32 to vector<16x16xf32>
    %86 = arith.addf %84, %85 : vector<16x16xf32>
    %87 = arith.mulf %86, %76 : vector<16x16xf32>
    %cst_57 = arith.constant 0.254829586 : f32
    %88 = vector.broadcast %cst_57 : f32 to vector<16x16xf32>
    %89 = arith.addf %87, %88 : vector<16x16xf32>
    %90 = arith.mulf %89, %76 : vector<16x16xf32>
    %cst_58 = arith.constant 0.000000e+00 : f32
    %91 = vector.broadcast %cst_58 : f32 to vector<16x16xf32>
    %92 = arith.subf %91, %70 : vector<16x16xf32>
    %93 = arith.mulf %92, %70 : vector<16x16xf32>
    %94 = math.exp %93 : vector<16x16xf32>
    %95 = arith.mulf %90, %94 : vector<16x16xf32>
    %cst_59 = arith.constant 1.000000e+00 : f32
    %96 = vector.broadcast %cst_59 : f32 to vector<16x16xf32>
    %97 = arith.subf %96, %95 : vector<16x16xf32>
    %98 = arith.mulf %69, %97 : vector<16x16xf32>
    %cst_60 = arith.constant 1.000000e+00 : f32
    %99 = vector.broadcast %cst_60 : f32 to vector<16x16xf32>
    %100 = arith.addf %99, %98 : vector<16x16xf32>
    %101 = arith.mulf %62, %100 : vector<16x16xf32>
    %c0_61 = arith.constant 0 : index
    %c0_62 = arith.constant 0 : index
    %c0_63 = arith.constant 0 : index
    %102 = vector.load %arg12[%c0_61, %c0_62, %c0_63] : memref<3x16x32xf32, #tpu.memory_space<vmem>>, vector<1x16x32xf32>
    %103 = vector.shape_cast %102 : vector<1x16x32xf32> to vector<16x32xf32>
    %cst_64 = arith.constant dense<0.000000e+00> : vector<16x32xf32>
    %104 = tpu.matmul %101, %103, %cst_64 {dimension_numbers = #tpu.dot_dimension_numbers<[1], [0], [0], [1], [0, 0, 1, 1], [], []>} : vector<16x16xf32>, vector<16x32xf32>, vector<16x32xf32> -> vector<16x32xf32>
    %105 = vector.broadcast %13 : vector<1x32xf32> to vector<16x32xf32>
    %106 = arith.addf %105, %104 : vector<16x32xf32>
    %107 = vector.extract_strided_slice %12 {offsets = [0, 512], sizes = [16, 512], strides = [1, 1]} : vector<16x1536xf32> to vector<16x512xf32>
    %c1 = arith.constant 1 : index
    %c0_65 = arith.constant 0 : index
    %c0_66 = arith.constant 0 : index
    %108 = vector.load %arg4[%c1, %c0_65, %c0_66] : memref<3x512x256xf32, #tpu.memory_space<vmem>>, vector<1x512x256xf32>
    %109 = vector.shape_cast %108 : vector<1x512x256xf32> to vector<512x256xf32>
    %cst_67 = arith.constant dense<0.000000e+00> : vector<16x256xf32>
    %110 = tpu.matmul %107, %109, %cst_67 {dimension_numbers = #tpu.dot_dimension_numbers<[1], [0], [0], [1], [0, 0, 1, 1], [], []>} : vector<16x512xf32>, vector<512x256xf32>, vector<16x256xf32> -> vector<16x256xf32>
    %c1_68 = arith.constant 1 : index
    %c0_69 = arith.constant 0 : index
    %c0_70 = arith.constant 0 : index
    %111 = vector.load %arg5[%c1_68, %c0_69, %c0_70] : memref<3x1x256xf32, #tpu.memory_space<vmem>>, vector<1x1x256xf32>
    %112 = vector.shape_cast %111 : vector<1x1x256xf32> to vector<1x256xf32>
    %113 = vector.broadcast %112 : vector<1x256xf32> to vector<16x256xf32>
    %114 = arith.addf %110, %113 : vector<16x256xf32>
    %cst_71 = arith.constant 0.000000e+00 : f32
    %115 = vector.broadcast %cst_71 : f32 to vector<16x256xf32>
    %116 = arith.maximumf %114, %115 : vector<16x256xf32>
    %c1_72 = arith.constant 1 : index
    %c0_73 = arith.constant 0 : index
    %c0_74 = arith.constant 0 : index
    %117 = vector.load %arg6[%c1_72, %c0_73, %c0_74] : memref<3x256x64xf32, #tpu.memory_space<vmem>>, vector<1x256x64xf32>
    %118 = vector.shape_cast %117 : vector<1x256x64xf32> to vector<256x64xf32>
    %cst_75 = arith.constant dense<0.000000e+00> : vector<16x64xf32>
    %119 = tpu.matmul %116, %118, %cst_75 {dimension_numbers = #tpu.dot_dimension_numbers<[1], [0], [0], [1], [0, 0, 1, 1], [], []>} : vector<16x256xf32>, vector<256x64xf32>, vector<16x64xf32> -> vector<16x64xf32>
    %c1_76 = arith.constant 1 : index
    %c0_77 = arith.constant 0 : index
    %c0_78 = arith.constant 0 : index
    %120 = vector.load %arg7[%c1_76, %c0_77, %c0_78] : memref<3x1x64xf32, #tpu.memory_space<vmem>>, vector<1x1x64xf32>
    %121 = vector.shape_cast %120 : vector<1x1x64xf32> to vector<1x64xf32>
    %122 = vector.broadcast %121 : vector<1x64xf32> to vector<16x64xf32>
    %123 = arith.addf %119, %122 : vector<16x64xf32>
    %cst_79 = arith.constant 0.000000e+00 : f32
    %124 = vector.broadcast %cst_79 : f32 to vector<16x64xf32>
    %125 = arith.cmpf ogt, %123, %124 : vector<16x64xf32>
    %126 = math.exp %123 : vector<16x64xf32>
    %cst_80 = arith.constant 1.000000e+00 : f32
    %127 = vector.broadcast %cst_80 : f32 to vector<16x64xf32>
    %128 = arith.subf %126, %127 : vector<16x64xf32>
    %129 = arith.select %125, %123, %128 : vector<16x64xi1>, vector<16x64xf32>
    %c1_81 = arith.constant 1 : index
    %c0_82 = arith.constant 0 : index
    %c0_83 = arith.constant 0 : index
    %130 = vector.load %arg8[%c1_81, %c0_82, %c0_83] : memref<3x64x16xf32, #tpu.memory_space<vmem>>, vector<1x64x16xf32>
    %131 = vector.shape_cast %130 : vector<1x64x16xf32> to vector<64x16xf32>
    %cst_84 = arith.constant dense<0.000000e+00> : vector<16x16xf32>
    %132 = tpu.matmul %129, %131, %cst_84 {dimension_numbers = #tpu.dot_dimension_numbers<[1], [0], [0], [1], [0, 0, 1, 1], [], []>} : vector<16x64xf32>, vector<64x16xf32>, vector<16x16xf32> -> vector<16x16xf32>
    %c1_85 = arith.constant 1 : index
    %c0_86 = arith.constant 0 : index
    %c0_87 = arith.constant 0 : index
    %133 = vector.load %arg9[%c1_85, %c0_86, %c0_87] : memref<3x1x16xf32, #tpu.memory_space<vmem>>, vector<1x1x16xf32>
    %134 = vector.shape_cast %133 : vector<1x1x16xf32> to vector<1x16xf32>
    %135 = vector.broadcast %134 : vector<1x16xf32> to vector<16x16xf32>
    %136 = arith.addf %132, %135 : vector<16x16xf32>
    %cst_88 = arith.constant 0.000000e+00 : f32
    %137 = vector.broadcast %cst_88 : f32 to vector<16x16xf32>
    %138 = arith.cmpf ogt, %136, %137 : vector<16x16xf32>
    %139 = math.exp %136 : vector<16x16xf32>
    %cst_89 = arith.constant 1.000000e+00 : f32
    %140 = vector.broadcast %cst_89 : f32 to vector<16x16xf32>
    %141 = arith.subf %139, %140 : vector<16x16xf32>
    %cst_90 = arith.constant 1.67326319 : f32
    %142 = vector.broadcast %cst_90 : f32 to vector<16x16xf32>
    %143 = arith.mulf %142, %141 : vector<16x16xf32>
    %144 = arith.select %138, %136, %143 : vector<16x16xi1>, vector<16x16xf32>
    %cst_91 = arith.constant 1.05070102 : f32
    %145 = vector.broadcast %cst_91 : f32 to vector<16x16xf32>
    %146 = arith.mulf %145, %144 : vector<16x16xf32>
    %c1_92 = arith.constant 1 : index
    %c0_93 = arith.constant 0 : index
    %c0_94 = arith.constant 0 : index
    %147 = vector.load %arg10[%c1_92, %c0_93, %c0_94] : memref<3x16x16xf32, #tpu.memory_space<vmem>>, vector<1x16x16xf32>
    %148 = vector.shape_cast %147 : vector<1x16x16xf32> to vector<16x16xf32>
    %cst_95 = arith.constant dense<0.000000e+00> : vector<16x16xf32>
    %149 = tpu.matmul %146, %148, %cst_95 {dimension_numbers = #tpu.dot_dimension_numbers<[1], [0], [0], [1], [0, 0, 1, 1], [], []>} : vector<16x16xf32>, vector<16x16xf32>, vector<16x16xf32> -> vector<16x16xf32>
    %c1_96 = arith.constant 1 : index
    %c0_97 = arith.constant 0 : index
    %c0_98 = arith.constant 0 : index
    %150 = vector.load %arg11[%c1_96, %c0_97, %c0_98] : memref<3x1x16xf32, #tpu.memory_space<vmem>>, vector<1x1x16xf32>
    %151 = vector.shape_cast %150 : vector<1x1x16xf32> to vector<1x16xf32>
    %152 = vector.broadcast %151 : vector<1x16xf32> to vector<16x16xf32>
    %153 = arith.addf %149, %152 : vector<16x16xf32>
    %cst_99 = arith.constant 5.000000e-01 : f32
    %154 = vector.broadcast %cst_99 : f32 to vector<16x16xf32>
    %155 = arith.mulf %154, %153 : vector<16x16xf32>
    %cst_100 = arith.constant 0.707106769 : f32
    %156 = vector.broadcast %cst_100 : f32 to vector<16x16xf32>
    %157 = arith.mulf %153, %156 : vector<16x16xf32>
    %cst_101 = arith.constant 0.000000e+00 : f32
    %158 = vector.broadcast %cst_101 : f32 to vector<16x16xf32>
    %159 = arith.cmpf olt, %157, %158 : vector<16x16xf32>
    %cst_102 = arith.constant -1.000000e+00 : f32
    %cst_103 = arith.constant 1.000000e+00 : f32
    %160 = vector.broadcast %cst_102 : f32 to vector<16x16xf32>
    %161 = vector.broadcast %cst_103 : f32 to vector<16x16xf32>
    %162 = arith.select %159, %160, %161 : vector<16x16xi1>, vector<16x16xf32>
    %163 = math.absf %157 : vector<16x16xf32>
    %cst_104 = arith.constant 0.327591091 : f32
    %164 = vector.broadcast %cst_104 : f32 to vector<16x16xf32>
    %165 = arith.mulf %164, %163 : vector<16x16xf32>
    %cst_105 = arith.constant 1.000000e+00 : f32
    %166 = vector.broadcast %cst_105 : f32 to vector<16x16xf32>
    %167 = arith.addf %166, %165 : vector<16x16xf32>
    %cst_106 = arith.constant 1.000000e+00 : f32
    %168 = vector.broadcast %cst_106 : f32 to vector<16x16xf32>
    %169 = arith.divf %168, %167 : vector<16x16xf32>
    %cst_107 = arith.constant 1.06140542 : f32
    %170 = vector.broadcast %cst_107 : f32 to vector<16x16xf32>
    %171 = arith.mulf %170, %169 : vector<16x16xf32>
    %cst_108 = arith.constant -1.45315206 : f32
    %172 = vector.broadcast %cst_108 : f32 to vector<16x16xf32>
    %173 = arith.addf %171, %172 : vector<16x16xf32>
    %174 = arith.mulf %173, %169 : vector<16x16xf32>
    %cst_109 = arith.constant 1.42141378 : f32
    %175 = vector.broadcast %cst_109 : f32 to vector<16x16xf32>
    %176 = arith.addf %174, %175 : vector<16x16xf32>
    %177 = arith.mulf %176, %169 : vector<16x16xf32>
    %cst_110 = arith.constant -0.284496725 : f32
    %178 = vector.broadcast %cst_110 : f32 to vector<16x16xf32>
    %179 = arith.addf %177, %178 : vector<16x16xf32>
    %180 = arith.mulf %179, %169 : vector<16x16xf32>
    %cst_111 = arith.constant 0.254829586 : f32
    %181 = vector.broadcast %cst_111 : f32 to vector<16x16xf32>
    %182 = arith.addf %180, %181 : vector<16x16xf32>
    %183 = arith.mulf %182, %169 : vector<16x16xf32>
    %cst_112 = arith.constant 0.000000e+00 : f32
    %184 = vector.broadcast %cst_112 : f32 to vector<16x16xf32>
    %185 = arith.subf %184, %163 : vector<16x16xf32>
    %186 = arith.mulf %185, %163 : vector<16x16xf32>
    %187 = math.exp %186 : vector<16x16xf32>
    %188 = arith.mulf %183, %187 : vector<16x16xf32>
    %cst_113 = arith.constant 1.000000e+00 : f32
    %189 = vector.broadcast %cst_113 : f32 to vector<16x16xf32>
    %190 = arith.subf %189, %188 : vector<16x16xf32>
    %191 = arith.mulf %162, %190 : vector<16x16xf32>
    %cst_114 = arith.constant 1.000000e+00 : f32
    %192 = vector.broadcast %cst_114 : f32 to vector<16x16xf32>
    %193 = arith.addf %192, %191 : vector<16x16xf32>
    %194 = arith.mulf %155, %193 : vector<16x16xf32>
    %c1_115 = arith.constant 1 : index
    %c0_116 = arith.constant 0 : index
    %c0_117 = arith.constant 0 : index
    %195 = vector.load %arg12[%c1_115, %c0_116, %c0_117] : memref<3x16x32xf32, #tpu.memory_space<vmem>>, vector<1x16x32xf32>
    %196 = vector.shape_cast %195 : vector<1x16x32xf32> to vector<16x32xf32>
    %cst_118 = arith.constant dense<0.000000e+00> : vector<16x32xf32>
    %197 = tpu.matmul %194, %196, %cst_118 {dimension_numbers = #tpu.dot_dimension_numbers<[1], [0], [0], [1], [0, 0, 1, 1], [], []>} : vector<16x16xf32>, vector<16x32xf32>, vector<16x32xf32> -> vector<16x32xf32>
    %198 = arith.addf %106, %197 : vector<16x32xf32>
    %199 = vector.extract_strided_slice %12 {offsets = [0, 1024], sizes = [16, 512], strides = [1, 1]} : vector<16x1536xf32> to vector<16x512xf32>
    %c2 = arith.constant 2 : index
    %c0_119 = arith.constant 0 : index
    %c0_120 = arith.constant 0 : index
    %200 = vector.load %arg4[%c2, %c0_119, %c0_120] : memref<3x512x256xf32, #tpu.memory_space<vmem>>, vector<1x512x256xf32>
    %201 = vector.shape_cast %200 : vector<1x512x256xf32> to vector<512x256xf32>
    %cst_121 = arith.constant dense<0.000000e+00> : vector<16x256xf32>
    %202 = tpu.matmul %199, %201, %cst_121 {dimension_numbers = #tpu.dot_dimension_numbers<[1], [0], [0], [1], [0, 0, 1, 1], [], []>} : vector<16x512xf32>, vector<512x256xf32>, vector<16x256xf32> -> vector<16x256xf32>
    %c2_122 = arith.constant 2 : index
    %c0_123 = arith.constant 0 : index
    %c0_124 = arith.constant 0 : index
    %203 = vector.load %arg5[%c2_122, %c0_123, %c0_124] : memref<3x1x256xf32, #tpu.memory_space<vmem>>, vector<1x1x256xf32>
    %204 = vector.shape_cast %203 : vector<1x1x256xf32> to vector<1x256xf32>
    %205 = vector.broadcast %204 : vector<1x256xf32> to vector<16x256xf32>
    %206 = arith.addf %202, %205 : vector<16x256xf32>
    %cst_125 = arith.constant 0.000000e+00 : f32
    %207 = vector.broadcast %cst_125 : f32 to vector<16x256xf32>
    %208 = arith.maximumf %206, %207 : vector<16x256xf32>
    %c2_126 = arith.constant 2 : index
    %c0_127 = arith.constant 0 : index
    %c0_128 = arith.constant 0 : index
    %209 = vector.load %arg6[%c2_126, %c0_127, %c0_128] : memref<3x256x64xf32, #tpu.memory_space<vmem>>, vector<1x256x64xf32>
    %210 = vector.shape_cast %209 : vector<1x256x64xf32> to vector<256x64xf32>
    %cst_129 = arith.constant dense<0.000000e+00> : vector<16x64xf32>
    %211 = tpu.matmul %208, %210, %cst_129 {dimension_numbers = #tpu.dot_dimension_numbers<[1], [0], [0], [1], [0, 0, 1, 1], [], []>} : vector<16x256xf32>, vector<256x64xf32>, vector<16x64xf32> -> vector<16x64xf32>
    %c2_130 = arith.constant 2 : index
    %c0_131 = arith.constant 0 : index
    %c0_132 = arith.constant 0 : index
    %212 = vector.load %arg7[%c2_130, %c0_131, %c0_132] : memref<3x1x64xf32, #tpu.memory_space<vmem>>, vector<1x1x64xf32>
    %213 = vector.shape_cast %212 : vector<1x1x64xf32> to vector<1x64xf32>
    %214 = vector.broadcast %213 : vector<1x64xf32> to vector<16x64xf32>
    %215 = arith.addf %211, %214 : vector<16x64xf32>
    %cst_133 = arith.constant 0.000000e+00 : f32
    %216 = vector.broadcast %cst_133 : f32 to vector<16x64xf32>
    %217 = arith.cmpf ogt, %215, %216 : vector<16x64xf32>
    %218 = math.exp %215 : vector<16x64xf32>
    %cst_134 = arith.constant 1.000000e+00 : f32
    %219 = vector.broadcast %cst_134 : f32 to vector<16x64xf32>
    %220 = arith.subf %218, %219 : vector<16x64xf32>
    %221 = arith.select %217, %215, %220 : vector<16x64xi1>, vector<16x64xf32>
    %c2_135 = arith.constant 2 : index
    %c0_136 = arith.constant 0 : index
    %c0_137 = arith.constant 0 : index
    %222 = vector.load %arg8[%c2_135, %c0_136, %c0_137] : memref<3x64x16xf32, #tpu.memory_space<vmem>>, vector<1x64x16xf32>
    %223 = vector.shape_cast %222 : vector<1x64x16xf32> to vector<64x16xf32>
    %cst_138 = arith.constant dense<0.000000e+00> : vector<16x16xf32>
    %224 = tpu.matmul %221, %223, %cst_138 {dimension_numbers = #tpu.dot_dimension_numbers<[1], [0], [0], [1], [0, 0, 1, 1], [], []>} : vector<16x64xf32>, vector<64x16xf32>, vector<16x16xf32> -> vector<16x16xf32>
    %c2_139 = arith.constant 2 : index
    %c0_140 = arith.constant 0 : index
    %c0_141 = arith.constant 0 : index
    %225 = vector.load %arg9[%c2_139, %c0_140, %c0_141] : memref<3x1x16xf32, #tpu.memory_space<vmem>>, vector<1x1x16xf32>
    %226 = vector.shape_cast %225 : vector<1x1x16xf32> to vector<1x16xf32>
    %227 = vector.broadcast %226 : vector<1x16xf32> to vector<16x16xf32>
    %228 = arith.addf %224, %227 : vector<16x16xf32>
    %cst_142 = arith.constant 0.000000e+00 : f32
    %229 = vector.broadcast %cst_142 : f32 to vector<16x16xf32>
    %230 = arith.cmpf ogt, %228, %229 : vector<16x16xf32>
    %231 = math.exp %228 : vector<16x16xf32>
    %cst_143 = arith.constant 1.000000e+00 : f32
    %232 = vector.broadcast %cst_143 : f32 to vector<16x16xf32>
    %233 = arith.subf %231, %232 : vector<16x16xf32>
    %cst_144 = arith.constant 1.67326319 : f32
    %234 = vector.broadcast %cst_144 : f32 to vector<16x16xf32>
    %235 = arith.mulf %234, %233 : vector<16x16xf32>
    %236 = arith.select %230, %228, %235 : vector<16x16xi1>, vector<16x16xf32>
    %cst_145 = arith.constant 1.05070102 : f32
    %237 = vector.broadcast %cst_145 : f32 to vector<16x16xf32>
    %238 = arith.mulf %237, %236 : vector<16x16xf32>
    %c2_146 = arith.constant 2 : index
    %c0_147 = arith.constant 0 : index
    %c0_148 = arith.constant 0 : index
    %239 = vector.load %arg10[%c2_146, %c0_147, %c0_148] : memref<3x16x16xf32, #tpu.memory_space<vmem>>, vector<1x16x16xf32>
    %240 = vector.shape_cast %239 : vector<1x16x16xf32> to vector<16x16xf32>
    %cst_149 = arith.constant dense<0.000000e+00> : vector<16x16xf32>
    %241 = tpu.matmul %238, %240, %cst_149 {dimension_numbers = #tpu.dot_dimension_numbers<[1], [0], [0], [1], [0, 0, 1, 1], [], []>} : vector<16x16xf32>, vector<16x16xf32>, vector<16x16xf32> -> vector<16x16xf32>
    %c2_150 = arith.constant 2 : index
    %c0_151 = arith.constant 0 : index
    %c0_152 = arith.constant 0 : index
    %242 = vector.load %arg11[%c2_150, %c0_151, %c0_152] : memref<3x1x16xf32, #tpu.memory_space<vmem>>, vector<1x1x16xf32>
    %243 = vector.shape_cast %242 : vector<1x1x16xf32> to vector<1x16xf32>
    %244 = vector.broadcast %243 : vector<1x16xf32> to vector<16x16xf32>
    %245 = arith.addf %241, %244 : vector<16x16xf32>
    %cst_153 = arith.constant 5.000000e-01 : f32
    %246 = vector.broadcast %cst_153 : f32 to vector<16x16xf32>
    %247 = arith.mulf %246, %245 : vector<16x16xf32>
    %cst_154 = arith.constant 0.707106769 : f32
    %248 = vector.broadcast %cst_154 : f32 to vector<16x16xf32>
    %249 = arith.mulf %245, %248 : vector<16x16xf32>
    %cst_155 = arith.constant 0.000000e+00 : f32
    %250 = vector.broadcast %cst_155 : f32 to vector<16x16xf32>
    %251 = arith.cmpf olt, %249, %250 : vector<16x16xf32>
    %cst_156 = arith.constant -1.000000e+00 : f32
    %cst_157 = arith.constant 1.000000e+00 : f32
    %252 = vector.broadcast %cst_156 : f32 to vector<16x16xf32>
    %253 = vector.broadcast %cst_157 : f32 to vector<16x16xf32>
    %254 = arith.select %251, %252, %253 : vector<16x16xi1>, vector<16x16xf32>
    %255 = math.absf %249 : vector<16x16xf32>
    %cst_158 = arith.constant 0.327591091 : f32
    %256 = vector.broadcast %cst_158 : f32 to vector<16x16xf32>
    %257 = arith.mulf %256, %255 : vector<16x16xf32>
    %cst_159 = arith.constant 1.000000e+00 : f32
    %258 = vector.broadcast %cst_159 : f32 to vector<16x16xf32>
    %259 = arith.addf %258, %257 : vector<16x16xf32>
    %cst_160 = arith.constant 1.000000e+00 : f32
    %260 = vector.broadcast %cst_160 : f32 to vector<16x16xf32>
    %261 = arith.divf %260, %259 : vector<16x16xf32>
    %cst_161 = arith.constant 1.06140542 : f32
    %262 = vector.broadcast %cst_161 : f32 to vector<16x16xf32>
    %263 = arith.mulf %262, %261 : vector<16x16xf32>
    %cst_162 = arith.constant -1.45315206 : f32
    %264 = vector.broadcast %cst_162 : f32 to vector<16x16xf32>
    %265 = arith.addf %263, %264 : vector<16x16xf32>
    %266 = arith.mulf %265, %261 : vector<16x16xf32>
    %cst_163 = arith.constant 1.42141378 : f32
    %267 = vector.broadcast %cst_163 : f32 to vector<16x16xf32>
    %268 = arith.addf %266, %267 : vector<16x16xf32>
    %269 = arith.mulf %268, %261 : vector<16x16xf32>
    %cst_164 = arith.constant -0.284496725 : f32
    %270 = vector.broadcast %cst_164 : f32 to vector<16x16xf32>
    %271 = arith.addf %269, %270 : vector<16x16xf32>
    %272 = arith.mulf %271, %261 : vector<16x16xf32>
    %cst_165 = arith.constant 0.254829586 : f32
    %273 = vector.broadcast %cst_165 : f32 to vector<16x16xf32>
    %274 = arith.addf %272, %273 : vector<16x16xf32>
    %275 = arith.mulf %274, %261 : vector<16x16xf32>
    %cst_166 = arith.constant 0.000000e+00 : f32
    %276 = vector.broadcast %cst_166 : f32 to vector<16x16xf32>
    %277 = arith.subf %276, %255 : vector<16x16xf32>
    %278 = arith.mulf %277, %255 : vector<16x16xf32>
    %279 = math.exp %278 : vector<16x16xf32>
    %280 = arith.mulf %275, %279 : vector<16x16xf32>
    %cst_167 = arith.constant 1.000000e+00 : f32
    %281 = vector.broadcast %cst_167 : f32 to vector<16x16xf32>
    %282 = arith.subf %281, %280 : vector<16x16xf32>
    %283 = arith.mulf %254, %282 : vector<16x16xf32>
    %cst_168 = arith.constant 1.000000e+00 : f32
    %284 = vector.broadcast %cst_168 : f32 to vector<16x16xf32>
    %285 = arith.addf %284, %283 : vector<16x16xf32>
    %286 = arith.mulf %247, %285 : vector<16x16xf32>
    %c2_169 = arith.constant 2 : index
    %c0_170 = arith.constant 0 : index
    %c0_171 = arith.constant 0 : index
    %287 = vector.load %arg12[%c2_169, %c0_170, %c0_171] : memref<3x16x32xf32, #tpu.memory_space<vmem>>, vector<1x16x32xf32>
    %288 = vector.shape_cast %287 : vector<1x16x32xf32> to vector<16x32xf32>
    %cst_172 = arith.constant dense<0.000000e+00> : vector<16x32xf32>
    %289 = tpu.matmul %286, %288, %cst_172 {dimension_numbers = #tpu.dot_dimension_numbers<[1], [0], [0], [1], [0, 0, 1, 1], [], []>} : vector<16x16xf32>, vector<16x32xf32>, vector<16x32xf32> -> vector<16x32xf32>
    %290 = arith.addf %198, %289 : vector<16x32xf32>
    %cst_173 = arith.constant 0.000000e+00 : f32
    %291 = vector.broadcast %cst_173 : f32 to vector<16x32xf32>
    %292 = arith.maximumf %290, %291 : vector<16x32xf32>
    %c0_174 = arith.constant 0 : index
    %c0_175 = arith.constant 0 : index
    %293 = vector.load %arg14[%c0_174, %c0_175] : memref<32x16xf32, #tpu.memory_space<vmem>>, vector<32x16xf32>
    %cst_176 = arith.constant dense<0.000000e+00> : vector<16x16xf32>
    %294 = tpu.matmul %292, %293, %cst_176 {dimension_numbers = #tpu.dot_dimension_numbers<[1], [0], [0], [1], [0, 0, 1, 1], [], []>} : vector<16x32xf32>, vector<32x16xf32>, vector<16x16xf32> -> vector<16x16xf32>
    %c0_177 = arith.constant 0 : index
    %c0_178 = arith.constant 0 : index
    %295 = vector.load %arg15[%c0_177, %c0_178] : memref<1x16xf32, #tpu.memory_space<vmem>>, vector<1x16xf32>
    %296 = vector.broadcast %295 : vector<1x16xf32> to vector<16x16xf32>
    %297 = arith.addf %294, %296 : vector<16x16xf32>
    %cst_179 = arith.constant 0.000000e+00 : f32
    %298 = vector.broadcast %cst_179 : f32 to vector<16x16xf32>
    %299 = arith.maximumf %297, %298 : vector<16x16xf32>
    %c0_180 = arith.constant 0 : index
    %c0_181 = arith.constant 0 : index
    %300 = vector.load %arg16[%c0_180, %c0_181] : memref<16x128xf32, #tpu.memory_space<vmem>>, vector<16x128xf32>
    %cst_182 = arith.constant dense<0.000000e+00> : vector<16x128xf32>
    %301 = tpu.matmul %299, %300, %cst_182 {dimension_numbers = #tpu.dot_dimension_numbers<[1], [0], [0], [1], [0, 0, 1, 1], [], []>} : vector<16x16xf32>, vector<16x128xf32>, vector<16x128xf32> -> vector<16x128xf32>
    %c0_183 = arith.constant 0 : index
    %c0_184 = arith.constant 0 : index
    %302 = vector.load %arg17[%c0_183, %c0_184] : memref<1x128xf32, #tpu.memory_space<vmem>>, vector<1x128xf32>
    %303 = vector.broadcast %302 : vector<1x128xf32> to vector<16x128xf32>
    %304 = arith.addf %301, %303 : vector<16x128xf32>
    %c0_185 = arith.constant 0 : index
    %c0_186 = arith.constant 0 : index
    %305 = vector.load %arg18[%c0_185, %c0_186] : memref<16x128xf32, #tpu.memory_space<vmem>>, vector<16x128xf32>
    tpu.vector_store %arg18[%c0_185, %c0_186], %304 {strides = array<i32>} : memref<16x128xf32, #tpu.memory_space<vmem>>, vector<16x128xf32>,
    return
  }
  func.func @transform_0(%arg0: i32) -> (i32, i32) {
    %c0_i32 = arith.constant 0 : i32
    %c0_i32_0 = arith.constant 0 : i32
    return %arg0, %c0_i32 : i32, i32
  }
  func.func @transform_1(%arg0: i32) -> (i32, i32) {
    %c0_i32 = arith.constant 0 : i32
    %c0_i32_0 = arith.constant 0 : i32
    %c0_i32_1 = arith.constant 0 : i32
    return %c0_i32, %c0_i32_0 : i32, i32
  }
  func.func @transform_2(%arg0: i32) -> (i32, i32) {
    %c0_i32 = arith.constant 0 : i32
    %c0_i32_0 = arith.constant 0 : i32
    %c0_i32_1 = arith.constant 0 : i32
    return %c0_i32, %c0_i32_0 : i32, i32
  }
  func.func @transform_3(%arg0: i32) -> (i32, i32, i32) {
    %c0_i32 = arith.constant 0 : i32
    %c0_i32_0 = arith.constant 0 : i32
    %c0_i32_1 = arith.constant 0 : i32
    %c0_i32_2 = arith.constant 0 : i32
    return %c0_i32, %c0_i32_0, %c0_i32_1 : i32, i32, i32
  }
  func.func @transform_4(%arg0: i32) -> (i32, i32, i32) {
    %c0_i32 = arith.constant 0 : i32
    %c0_i32_0 = arith.constant 0 : i32
    %c0_i32_1 = arith.constant 0 : i32
    %c0_i32_2 = arith.constant 0 : i32
    return %c0_i32, %c0_i32_0, %c0_i32_1 : i32, i32, i32
  }
  func.func @transform_5(%arg0: i32) -> (i32, i32, i32) {
    %c0_i32 = arith.constant 0 : i32
    %c0_i32_0 = arith.constant 0 : i32
    %c0_i32_1 = arith.constant 0 : i32
    %c0_i32_2 = arith.constant 0 : i32
    return %c0_i32, %c0_i32_0, %c0_i32_1 : i32, i32, i32
  }
  func.func @transform_6(%arg0: i32) -> (i32, i32, i32) {
    %c0_i32 = arith.constant 0 : i32
    %c0_i32_0 = arith.constant 0 : i32
    %c0_i32_1 = arith.constant 0 : i32
    %c0_i32_2 = arith.constant 0 : i32
    return %c0_i32, %c0_i32_0, %c0_i32_1 : i32, i32, i32
  }
  func.func @transform_7(%arg0: i32) -> (i32, i32, i32) {
    %c0_i32 = arith.constant 0 : i32
    %c0_i32_0 = arith.constant 0 : i32
    %c0_i32_1 = arith.constant 0 : i32
    %c0_i32_2 = arith.constant 0 : i32
    return %c0_i32, %c0_i32_0, %c0_i32_1 : i32, i32, i32
  }
  func.func @transform_8(%arg0: i32) -> (i32, i32, i32) {
    %c0_i32 = arith.constant 0 : i32
    %c0_i32_0 = arith.constant 0 : i32
    %c0_i32_1 = arith.constant 0 : i32
    %c0_i32_2 = arith.constant 0 : i32
    return %c0_i32, %c0_i32_0, %c0_i32_1 : i32, i32, i32
  }
  func.func @transform_9(%arg0: i32) -> (i32, i32, i32) {
    %c0_i32 = arith.constant 0 : i32
    %c0_i32_0 = arith.constant 0 : i32
    %c0_i32_1 = arith.constant 0 : i32
    %c0_i32_2 = arith.constant 0 : i32
    return %c0_i32, %c0_i32_0, %c0_i32_1 : i32, i32, i32
  }
  func.func @transform_10(%arg0: i32) -> (i32, i32, i32) {
    %c0_i32 = arith.constant 0 : i32
    %c0_i32_0 = arith.constant 0 : i32
    %c0_i32_1 = arith.constant 0 : i32
    %c0_i32_2 = arith.constant 0 : i32
    return %c0_i32, %c0_i32_0, %c0_i32_1 : i32, i32, i32
  }
  func.func @transform_11(%arg0: i32) -> (i32, i32, i32) {
    %c0_i32 = arith.constant 0 : i32
    %c0_i32_0 = arith.constant 0 : i32
    %c0_i32_1 = arith.constant 0 : i32
    %c0_i32_2 = arith.constant 0 : i32
    return %c0_i32, %c0_i32_0, %c0_i32_1 : i32, i32, i32
  }
  func.func @transform_12(%arg0: i32) -> (i32, i32) {
    %c0_i32 = arith.constant 0 : i32
    %c0_i32_0 = arith.constant 0 : i32
    %c0_i32_1 = arith.constant 0 : i32
    return %c0_i32, %c0_i32_0 : i32, i32
  }
  func.func @transform_13(%arg0: i32) -> (i32, i32) {
    %c0_i32 = arith.constant 0 : i32
    %c0_i32_0 = arith.constant 0 : i32
    %c0_i32_1 = arith.constant 0 : i32
    return %c0_i32, %c0_i32_0 : i32, i32
  }
  func.func @transform_14(%arg0: i32) -> (i32, i32) {
    %c0_i32 = arith.constant 0 : i32
    %c0_i32_0 = arith.constant 0 : i32
    %c0_i32_1 = arith.constant 0 : i32
    return %c0_i32, %c0_i32_0 : i32, i32
  }
  func.func @transform_15(%arg0: i32) -> (i32, i32) {
    %c0_i32 = arith.constant 0 : i32
    %c0_i32_0 = arith.constant 0 : i32
    %c0_i32_1 = arith.constant 0 : i32
    return %c0_i32, %c0_i32_0 : i32, i32
  }
  func.func @transform_16(%arg0: i32) -> (i32, i32) {
    %c0_i32 = arith.constant 0 : i32
    %c0_i32_0 = arith.constant 0 : i32
    %c0_i32_1 = arith.constant 0 : i32
    return %c0_i32, %c0_i32_0 : i32, i32
  }
  func.func @transform_17(%arg0: i32) -> (i32, i32) {
    %c0_i32 = arith.constant 0 : i32
    %c0_i32_0 = arith.constant 0 : i32
    return %arg0, %c0_i32 : i32, i32
  }
}

</mosaic_0001>

<bundles_post_ra>
// kernel: tpu_custom_call.1
= control target key start
LH: loop header
LB: loop body
LE: loop exit
PB: predicated region body
PF: predicated region fallthrough
CT: control target
= control target key end

     0   :  { %s5036_s0 = inlined_call_operand.hbm [shape: f32[16,128], index: 0, kind: input, shape index: {}]   ;;  %s5037_s1 = inlined_call_operand.hbm [shape: f32[128,1536], index: 1, kind: input, shape index: {}]   ;;  %s5038_s2 = inlined_call_operand.hbm [shape: f32[1,1536], index: 2, kind: input, shape index: {}]   ;;  %s5039_s3 = inlined_call_operand.hbm [shape: f32[3,512,256], index: 3, kind: input, shape index: {}]   ;;  %s5040_s4 = inlined_call_operand.hbm [shape: f32[3,1,256], index: 4, kind: input, shape index: {}]   ;;  %s5041_s5 = inlined_call_operand.vmem [shape: f32[3,256,64], index: 5, kind: input, shape index: {}]   ;;  %s5042_s6 = inlined_call_operand.hbm [shape: f32[3,1,64], index: 6, kind: input, shape index: {}]   ;;  %s5043_s7 = inlined_call_operand.vmem [shape: f32[3,64,16], index: 7, kind: input, shape index: {}]   ;;  %s5044_s8 = inlined_call_operand.hbm [shape: f32[3,1,16], index: 8, kind: input, shape index: {}]   ;;  %s5045_s9 = inlined_call_operand.hbm [shape: f32[3,16,16], index: 9, kind: input, shape index: {}]   ;;  %s5046_s10 = inlined_call_operand.hbm [shape: f32[3,1,16], index: 10, kind: input, shape index: {}]   ;;  %s5047_s11 = inlined_call_operand.hbm [shape: f32[3,16,32], index: 11, kind: input, shape index: {}]   ;;  %s5048_s12 = inlined_call_operand.hbm [shape: f32[1,32], index: 12, kind: input, shape index: {}]   ;;  %s5049_s13 = inlined_call_operand.vmem [shape: f32[32,16], index: 13, kind: input, shape index: {}]   ;;  %s5050_s14 = inlined_call_operand.hbm [shape: f32[1,16], index: 14, kind: input, shape index: {}]   ;;  %s5051_s15 = inlined_call_operand.hbm [shape: f32[16,128], index: 15, kind: input, shape index: {}]   ;;  %s5052_s16 = inlined_call_operand.hbm [shape: f32[1,128], index: 16, kind: input, shape index: {}]   ;;  %s5053_s17 = inlined_call_operand.hbm [shape: f32[16,128], index: 17, kind: output, shape index: {}]  }
   0x1   :  { %5054 = sst [smem:[#allocation35_spill]] %s5036_s0 }
   0x2   :  { %5055 = sst [smem:[#allocation36_spill]] %s5037_s1 }
   0x3   :  { %5056 = sst [smem:[#allocation37_spill]] %s5053_s17 }
   0x4   :  { %22 = vsyncpa [#allocation3], 0 }
   0x5   :  { %23 = vsyncpa [#allocation6], 0 }
   0x6   :  { %24 = vsyncpa [#allocation9], 0 }
   0x7   :  { %25 = vsyncpa [#allocation12], 0 }
   0x8   :  { %26 = vsyncpa [#allocation15], 0 }
   0x9   :  { %27 = vsyncpa [#allocation18], 0 }
   0xa   :  { %28 = vsyncpa [#allocation21], 0 }
   0xb   :  { %29 = vsyncpa [#allocation24], 0  ;;  %s5057_s26 = sld [smem:[#allocation36_spill]] }
  0x11   :  { %s48_s27 = sshll.u32 %s5057_s26, 4  ;;  %s49_s27 = int_to_ptr.hbm [resolvable:$true] %s48_s27 }
  0x12   :  { %30 = vsyncpa [#allocation4], 0  ;;  %s3884_s28 = smov [#allocation5]   ;;  %s72_s18 = sshll.u32 %s5039_s3, 4  ;;  %s73_s18 = int_to_ptr.hbm [resolvable:$true] %s72_s18 }
  0x13   :  { %s50_s29 = sshll.u32 %s3884_s28, 4  ;;  %s3885_s19 = smov 1536   ;;  %s51_s29 = int_to_ptr.vmem [resolvable:$true] %s50_s29 }
  0x14   :  { %s3886_s1 = smov 96   ;;  %s3887_s20 = smov [#allocation8]  }
  0x15   :  { %56 = dma.hbm_to_vmem [thread:$0]  %s49_s27, 24576, %s51_s29, [#allocation6], %s3885_s19, %s3885_s19, %s3886_s1  }
  0x16   :  { %s74_s21 = sshll.u32 %s3887_s20, 4  ;;  %s3888_s22 = smov 256   ;;  %s75_s21 = int_to_ptr.vmem [resolvable:$true] %s74_s21 }
  0x17   :  { %s3889_s23 = smov 16   ;;  %s100_s26 = sshll.u32 %s5042_s6, 4  ;;  %s101_s26 = int_to_ptr.hbm [resolvable:$true] %s100_s26 }
  0x18   :  { %80 = dma.hbm_to_vmem [thread:$0]  %s73_s18, 49152, %s75_s21, [#allocation9], %s3888_s22, %s3888_s22, %s3889_s23  }
  0x19   :  { %s3890_s28 = smov [#allocation11]   ;;  %s3891_s3 = smov 1  }
  0x1a   :  { %s102_s17 = sshll.u32 %s3890_s28, 4  ;;  %s128_s0 = sshll.u32 %s5045_s9, 4  ;;  %s103_s17 = int_to_ptr.vmem [resolvable:$true] %s102_s17  ;;  %s129_s0 = int_to_ptr.hbm [resolvable:$true] %s128_s0 }
  0x1b   :  { %108 = dma.hbm_to_vmem [thread:$0]  %s101_s26, 48, %s103_s17, [#allocation12], %s3889_s23, %s3889_s23, %s3891_s3  }
  0x1c   :  { %s3892_s30 = smov [#allocation14]   ;;  %s154_s6 = sshll.u32 %s5047_s11, 4  ;;  %s155_s6 = int_to_ptr.hbm [resolvable:$true] %s154_s6 }
  0x1d   :  { %s130_s18 = sshll.u32 %s3892_s30, 4  ;;  %s3893_s20 = smov 128   ;;  %s131_s18 = int_to_ptr.vmem [resolvable:$true] %s130_s18 }
  0x1e   :  { %s3894_s21 = smov 8   ;;  %s3895_s17 = smov [#allocation17]  }
  0x1f   :  { %136 = dma.hbm_to_vmem [thread:$0]  %s129_s0, 768, %s131_s18, [#allocation15], %s3893_s20, %s3893_s20, %s3894_s21  }
  0x20   :  { %s156_s22 = sshll.u32 %s3895_s17, 4  ;;  %s181_s9 = sshll.u32 %s5050_s14, 4  ;;  %s157_s22 = int_to_ptr.vmem [resolvable:$true] %s156_s22  ;;  %s182_s9 = int_to_ptr.hbm [resolvable:$true] %s181_s9 }
  0x21   :  { %162 = dma.hbm_to_vmem [thread:$0]  %s155_s6, 768, %s157_s22, [#allocation18], %s3893_s20, %s3893_s20, %s3894_s21  }
  0x22   :  { %s5058_s28 = sld [smem:[#allocation35_spill]]  ;;  %s3896_s29 = smov [#allocation20]  }
  0x23   :  { %s183_s30 = sshll.u32 %s3896_s29, 4  ;;  %s3897_s0 = smov [#allocation2]   ;;  %s184_s30 = int_to_ptr.vmem [resolvable:$true] %s183_s30 }
  0x24   :  { %186 = dma.hbm_to_vmem [thread:$0]  %s182_s9, 16, %s184_s30, [#allocation21]  }
  0x25   :  { %s37_s18 = sshll.u32 %s3897_s0, 4  ;;  %s62_s14 = sshll.u32 %s5038_s2, 4  ;;  %s38_s18 = int_to_ptr.vmem [resolvable:$true] %s37_s18  ;;  %s63_s14 = int_to_ptr.hbm [resolvable:$true] %s62_s14 }
  0x26   :  { %s85_s22 = sshll.u32 %s5040_s4, 4  ;;  %s3898_s24 = smov [#allocation7]   ;;  %s86_s22 = int_to_ptr.hbm [resolvable:$true] %s85_s22 }
  0x27   :  { %s64_s25 = sshll.u32 %s3898_s24, 4  ;;  %s3899_s9 = smov [#allocation10]   ;;  %s65_s25 = int_to_ptr.vmem [resolvable:$true] %s64_s25 }
  0x28   :  { %s35_s27 = sshll.u32 %s5058_s28, 4  ;;  %s87_s11 = sshll.u32 %s3899_s9, 4  ;;  %s36_s27 = int_to_ptr.hbm [resolvable:$true] %s35_s27  ;;  %s88_s11 = int_to_ptr.vmem [resolvable:$true] %s87_s11 }
  0x29   :  { %43 = dma.hbm_to_vmem [thread:$0]  %s36_s27, 256, %s38_s18, [#allocation3], %s3893_s20, %s3893_s20, %s3894_s21  }
  0x2a   :  { %67 = dma.hbm_to_vmem [thread:$0]  %s63_s14, 192, %s65_s25, [#allocation6]  }
  0x2b   :  { %s3900_s26 = smov 32   ;;  %s3901_s2 = smov 2  }
  0x2c   :  { %93 = dma.hbm_to_vmem [thread:$0]  %s86_s22, 96, %s88_s11, [#allocation9], %s3900_s26, %s3900_s26, %s3901_s2  }
  0x2d   :  { %s115_s30 = sshll.u32 %s5044_s8, 4  ;;  %s3902_s27 = smov [#allocation13]   ;;  %s116_s30 = int_to_ptr.hbm [resolvable:$true] %s115_s30 }
  0x2e   :  { %s117_s0 = sshll.u32 %s3902_s27, 4  ;;  %s141_s19 = sshll.u32 %s5046_s10, 4  ;;  %s118_s0 = int_to_ptr.vmem [resolvable:$true] %s117_s0  ;;  %s142_s19 = int_to_ptr.hbm [resolvable:$true] %s141_s19 }
  0x2f   :  { %123 = dma.hbm_to_vmem [thread:$0]  %s116_s30, 48, %s118_s0, [#allocation12], %s3889_s23, %s3889_s23, %s3891_s3  }
  0x30   :  { %s3903_s1 = smov [#allocation16]   ;;  %s168_s22 = sshll.u32 %s5048_s12, 4  ;;  %s169_s22 = int_to_ptr.hbm [resolvable:$true] %s168_s22 }
  0x31   :  { %s143_s14 = sshll.u32 %s3903_s1, 4  ;;  %s191_s10 = sshll.u32 %s5051_s15, 4  ;;  %s144_s14 = int_to_ptr.vmem [resolvable:$true] %s143_s14  ;;  %s192_s10 = int_to_ptr.hbm [resolvable:$true] %s191_s10 }
  0x32   :  { %149 = dma.hbm_to_vmem [thread:$0]  %s142_s19, 48, %s144_s14, [#allocation15], %s3889_s23, %s3889_s23, %s3891_s3  }
  0x33   :  { %s3904_s25 = smov [#allocation19]   ;;  %s3905_s11 = smov [#allocation22]  }
  0x34   :  { %s170_s9 = sshll.u32 %s3904_s25, 4  ;;  %s193_s26 = sshll.u32 %s3905_s11, 4  ;;  %s171_s9 = int_to_ptr.vmem [resolvable:$true] %s170_s9  ;;  %s194_s26 = int_to_ptr.vmem [resolvable:$true] %s193_s26 }
  0x35   :  { %173 = dma.hbm_to_vmem [thread:$0]  %s169_s22, 16, %s171_s9, [#allocation18]  }
  0x36   :  { %s205_s12 = sshll.u32 %s5052_s16, 4  ;;  %s3906_s23 = smov [#allocation23]   ;;  %s206_s12 = int_to_ptr.hbm [resolvable:$true] %s205_s12 }
  0x37   :  { %199 = dma.hbm_to_vmem [thread:$0]  %s192_s10, 256, %s194_s26, [#allocation21], %s3893_s20, %s3893_s20, %s3894_s21  }
  0x38   :  { %s207_s3 = sshll.u32 %s3906_s23, 4  ;;  %s208_s3 = int_to_ptr.vmem [resolvable:$true] %s207_s3 }
  0x39   :  { %210 = dma.hbm_to_vmem [thread:$0]  %s206_s12, 16, %s208_s3, [#allocation24]  }
  0x3a   :  { %3866 = dma.done.wait [#allocation3], 256  }
  0x3b   :  { %3867 = vsyncadd [#allocation3], 4294967040 }
  0x3c   :  { %3868 = dma.done.wait [#allocation6], 24768  }
  0x3d   :  { %3869 = vsyncadd [#allocation6], 4294942528 }
  0x3e   :  { %3870 = dma.done.wait [#allocation9], 49248  }
  0x3f   :  { %3871 = vsyncadd [#allocation9], 4294918048 }
  0x40   :  { %3872 = dma.done.wait [#allocation12], 96  }
  0x41   :  { %3873 = vsyncadd [#allocation12], 4294967200 }
  0x42   :  { %3874 = dma.done.wait [#allocation15], 816  }
  0x43   :  { %3875 = vsyncadd [#allocation15], 4294966480 }
  0x44   :  { %3876 = dma.done.wait [#allocation18], 784  }
  0x45   :  { %3877 = vsyncadd [#allocation18], 4294966512 }
  0x46   :  { %3878 = dma.done.wait [#allocation21], 272  }
  0x47   :  { %3879 = vsyncadd [#allocation21], 4294967024 }
  0x48   :  { %3880 = dma.done.wait [#allocation24], 16  }
  0x49   :  { %3881 = vsyncadd [#allocation24], 4294967280  ;;  %v449_v0 = vld [vmem:[#allocation5 + $0x5a0] sm:$0xff]  ;;  %v450_v1 = vld [vmem:[#allocation5 + $0x5a8] sm:$0xff]  ;;  %s5087_s24 = sld [smem:[#allocation37_spill]] }
  0x4a   :  { %v451_v2 = vld [vmem:[#allocation5 + $0x5b0] sm:$0xff]  ;;  %489 = vmatpush.msra.mxu0 %v449_v0  ;;  %512 = vmatpush.msra.mxu1 %v450_v1  ;;  %v452_v3 = vld [vmem:[#allocation5 + $0x5b8] sm:$0xff]  ;;  %v437_v4 = vld [vmem:[#allocation5 + $0x540] sm:$0xff] }
  0x4b   :  { %v438_v5 = vld [vmem:[#allocation5 + $0x548] sm:$0xff]  ;;  %535 = vmatpush.msra.mxu2 %v451_v2  ;;  %558 = vmatpush.msra.mxu3 %v452_v3  ;;  %v439_v6 = vld [vmem:[#allocation5 + $0x550] sm:$0xff]  ;;  %v440_v7 = vld [vmem:[#allocation5 + $0x558] sm:$0xff] }
  0x4c   :  { %v425_v8 = vld [vmem:[#allocation5 + $0x4e0] sm:$0xff]  ;;  %490 = vmatpush.msra.mxu0 %v437_v4  ;;  %513 = vmatpush.msra.mxu1 %v438_v5  ;;  %v426_v9 = vld [vmem:[#allocation5 + $0x4e8] sm:$0xff]  ;;  %v427_v10 = vld [vmem:[#allocation5 + $0x4f0] sm:$0xff] }
  0x4d   :  { %v428_v11 = vld [vmem:[#allocation5 + $0x4f8] sm:$0xff]  ;;  %536 = vmatpush.msra.mxu2 %v439_v6  ;;  %559 = vmatpush.msra.mxu3 %v440_v7  ;;  %v413_v12 = vld [vmem:[#allocation5 + $0x480] sm:$0xff]  ;;  %v414_v13 = vld [vmem:[#allocation5 + $0x488] sm:$0xff] }
  0x4e   :  { %491 = vmatpush.msra.mxu0 %v425_v8  ;;  %514 = vmatpush.msra.mxu1 %v426_v9  ;;  %v415_v14 = vld [vmem:[#allocation5 + $0x490] sm:$0xff]  ;;  %v416_v15 = vld [vmem:[#allocation5 + $0x498] sm:$0xff]  ;;  %v401_v16 = vld [vmem:[#allocation5 + $0x420] sm:$0xff] }
  0x4f   :  { %537 = vmatpush.msra.mxu2 %v427_v10  ;;  %560 = vmatpush.msra.mxu3 %v428_v11  ;;  %v402_v17 = vld [vmem:[#allocation5 + $0x428] sm:$0xff]  ;;  %v403_v18 = vld [vmem:[#allocation5 + $0x430] sm:$0xff]  ;;  %v404_v19 = vld [vmem:[#allocation5 + $0x438] sm:$0xff] }
  0x50   :  { %492 = vmatpush.msra.mxu0 %v413_v12  ;;  %515 = vmatpush.msra.mxu1 %v414_v13  ;;  %v389_v20 = vld [vmem:[#allocation5 + $0x3c0] sm:$0xff]  ;;  %v390_v21 = vld [vmem:[#allocation5 + $0x3c8] sm:$0xff]  ;;  %v391_v22 = vld [vmem:[#allocation5 + $0x3d0] sm:$0xff] }
  0x51   :  { %538 = vmatpush.msra.mxu2 %v415_v14  ;;  %561 = vmatpush.msra.mxu3 %v416_v15  ;;  %v392_v23 = vld [vmem:[#allocation5 + $0x3d8] sm:$0xff]  ;;  %v377_v24 = vld [vmem:[#allocation5 + $0x360] sm:$0xff]  ;;  %v378_v25 = vld [vmem:[#allocation5 + $0x368] sm:$0xff] }
  0x52   :  { %493 = vmatpush.msra.mxu0 %v401_v16  ;;  %516 = vmatpush.msra.mxu1 %v402_v17  ;;  %v379_v26 = vld [vmem:[#allocation5 + $0x370] sm:$0xff]  ;;  %v380_v27 = vld [vmem:[#allocation5 + $0x378] sm:$0xff]  ;;  %v365_v28 = vld [vmem:[#allocation5 + $0x300] sm:$0xff] }
  0x53   :  { %539 = vmatpush.msra.mxu2 %v403_v18  ;;  %562 = vmatpush.msra.mxu3 %v404_v19  ;;  %v366_v29 = vld [vmem:[#allocation5 + $0x308] sm:$0xff]  ;;  %v367_v30 = vld [vmem:[#allocation5 + $0x310] sm:$0xff]  ;;  %v368_v31 = vld [vmem:[#allocation5 + $0x318] sm:$0xff] }
  0x54   :  { %494 = vmatpush.msra.mxu0 %v389_v20  ;;  %517 = vmatpush.msra.mxu1 %v390_v21  ;;  %v353_v32 = vld [vmem:[#allocation5 + $0x2a0] sm:$0xff]  ;;  %v354_v33 = vld [vmem:[#allocation5 + $0x2a8] sm:$0xff]  ;;  %v355_v34 = vld [vmem:[#allocation5 + $0x2b0] sm:$0xff] }
  0x55   :  { %540 = vmatpush.msra.mxu2 %v391_v22  ;;  %563 = vmatpush.msra.mxu3 %v392_v23  ;;  %v356_v35 = vld [vmem:[#allocation5 + $0x2b8] sm:$0xff]  ;;  %v341_v36 = vld [vmem:[#allocation5 + $0x240] sm:$0xff]  ;;  %v342_v37 = vld [vmem:[#allocation5 + $0x248] sm:$0xff] }
  0x56   :  { %495 = vmatpush.msra.mxu0 %v377_v24  ;;  %518 = vmatpush.msra.mxu1 %v378_v25  ;;  %v343_v38 = vld [vmem:[#allocation5 + $0x250] sm:$0xff]  ;;  %v344_v39 = vld [vmem:[#allocation5 + $0x258] sm:$0xff]  ;;  %v329_v40 = vld [vmem:[#allocation5 + $0x1e0] sm:$0xff] }
  0x57   :  { %541 = vmatpush.msra.mxu2 %v379_v26  ;;  %564 = vmatpush.msra.mxu3 %v380_v27  ;;  %v330_v41 = vld [vmem:[#allocation5 + $0x1e8] sm:$0xff]  ;;  %v331_v42 = vld [vmem:[#allocation5 + $0x1f0] sm:$0xff]  ;;  %v332_v43 = vld [vmem:[#allocation5 + $0x1f8] sm:$0xff] }
  0x58   :  { %496 = vmatpush.msra.mxu0 %v365_v28  ;;  %519 = vmatpush.msra.mxu1 %v366_v29  ;;  %v317_v44 = vld [vmem:[#allocation5 + $0x180] sm:$0xff]  ;;  %v318_v45 = vld [vmem:[#allocation5 + $0x188] sm:$0xff]  ;;  %v319_v46 = vld [vmem:[#allocation5 + $0x190] sm:$0xff] }
  0x59   :  { %542 = vmatpush.msra.mxu2 %v367_v30  ;;  %565 = vmatpush.msra.mxu3 %v368_v31  ;;  %v320_v47 = vld [vmem:[#allocation5 + $0x198] sm:$0xff]  ;;  %v305_v48 = vld [vmem:[#allocation5 + $0x120] sm:$0xff]  ;;  %v306_v49 = vld [vmem:[#allocation5 + $0x128] sm:$0xff] }
  0x5a   :  { %497 = vmatpush.msra.mxu0 %v353_v32  ;;  %520 = vmatpush.msra.mxu1 %v354_v33  ;;  %v307_v50 = vld [vmem:[#allocation5 + $0x130] sm:$0xff]  ;;  %v308_v51 = vld [vmem:[#allocation5 + $0x138] sm:$0xff]  ;;  %v293_v52 = vld [vmem:[#allocation5 + $0xc0] sm:$0xff] }
  0x5b   :  { %543 = vmatpush.msra.mxu2 %v355_v34  ;;  %566 = vmatpush.msra.mxu3 %v356_v35  ;;  %v294_v53 = vld [vmem:[#allocation5 + $0xc8] sm:$0xff]  ;;  %v295_v54 = vld [vmem:[#allocation5 + $0xd0] sm:$0xff]  ;;  %v296_v55 = vld [vmem:[#allocation5 + $0xd8] sm:$0xff] }
  0x5c   :  { %498 = vmatpush.msra.mxu0 %v341_v36  ;;  %521 = vmatpush.msra.mxu1 %v342_v37  ;;  %v281_v56 = vld [vmem:[#allocation5 + $0x60] sm:$0xff]  ;;  %v282_v57 = vld [vmem:[#allocation5 + $0x68] sm:$0xff]  ;;  %v283_v58 = vld [vmem:[#allocation5 + $0x70] sm:$0xff] }
  0x5d   :  { %544 = vmatpush.msra.mxu2 %v343_v38  ;;  %567 = vmatpush.msra.mxu3 %v344_v39  ;;  %v284_v59 = vld [vmem:[#allocation5 + $0x78] sm:$0xff]  ;;  %v269_v60 = vld [vmem:[#allocation5] sm:$0xff]  ;;  %v270_v61 = vld [vmem:[#allocation5 + $0x8] sm:$0xff] }
  0x5e   :  { %499 = vmatpush.msra.mxu0 %v329_v40  ;;  %522 = vmatpush.msra.mxu1 %v330_v41  ;;  %v271_v62 = vld [vmem:[#allocation5 + $0x10] sm:$0xff]  ;;  %v272_v63 = vld [vmem:[#allocation5 + $0x18] sm:$0xff]  ;;  %v453_v1 = vld [vmem:[#allocation5 + $0x5c0] sm:$0xff] }
  0x5f   :  { %545 = vmatpush.msra.mxu2 %v331_v42  ;;  %568 = vmatpush.msra.mxu3 %v332_v43  ;;  %v4063_v0 = vld [vmem:[#allocation2] sm:$0xff]  ;;  %v454_v2 = vld [vmem:[#allocation5 + $0x5c8] sm:$0xff]  ;;  %v456_v4 = vld [vmem:[#allocation5 + $0x5d8] sm:$0xff] }
  0x60   :  { %500 = vmatpush.msra.mxu0 %v317_v44  ;;  %523 = vmatpush.msra.mxu1 %v318_v45  ;;  %v455_v3 = vld [vmem:[#allocation5 + $0x5d0] sm:$0xff]  ;;  %v441_v5 = vld [vmem:[#allocation5 + $0x560] sm:$0xff]  ;;  %v442_v6 = vld [vmem:[#allocation5 + $0x568] sm:$0xff] }
  0x61   :  { %546 = vmatpush.msra.mxu2 %v319_v46  ;;  %569 = vmatpush.msra.mxu3 %v320_v47  ;;  %v443_v7 = vld [vmem:[#allocation5 + $0x570] sm:$0xff]  ;;  %v444_v8 = vld [vmem:[#allocation5 + $0x578] sm:$0xff]  ;;  %v429_v9 = vld [vmem:[#allocation5 + $0x500] sm:$0xff] }
  0x62   :  { %501 = vmatpush.msra.mxu0 %v305_v48  ;;  %524 = vmatpush.msra.mxu1 %v306_v49  ;;  %v430_v10 = vld [vmem:[#allocation5 + $0x508] sm:$0xff]  ;;  %v431_v11 = vld [vmem:[#allocation5 + $0x510] sm:$0xff]  ;;  %v432_v12 = vld [vmem:[#allocation5 + $0x518] sm:$0xff] }
  0x63   :  { %547 = vmatpush.msra.mxu2 %v307_v50  ;;  %570 = vmatpush.msra.mxu3 %v308_v51  ;;  %v4069_v13 = vld [vmem:[#allocation2 + $0x8] sm:$0xff]  ;;  %v417_v14 = vld [vmem:[#allocation5 + $0x4a0] sm:$0xff]  ;;  %v418_v15 = vld [vmem:[#allocation5 + $0x4a8] sm:$0xff] }
  0x64   :  { %502 = vmatpush.msra.mxu0 %v293_v52  ;;  %525 = vmatpush.msra.mxu1 %v294_v53  ;;  %v419_v16 = vld [vmem:[#allocation5 + $0x4b0] sm:$0xff]  ;;  %v420_v17 = vld [vmem:[#allocation5 + $0x4b8] sm:$0xff]  ;;  %v405_v18 = vld [vmem:[#allocation5 + $0x440] sm:$0xff] }
  0x65   :  { %548 = vmatpush.msra.mxu2 %v295_v54  ;;  %571 = vmatpush.msra.mxu3 %v296_v55  ;;  %v406_v19 = vld [vmem:[#allocation5 + $0x448] sm:$0xff]  ;;  %v407_v20 = vld [vmem:[#allocation5 + $0x450] sm:$0xff]  ;;  %v408_v21 = vld [vmem:[#allocation5 + $0x458] sm:$0xff] }
  0x66   :  { %503 = vmatpush.msra.mxu0 %v281_v56  ;;  %526 = vmatpush.msra.mxu1 %v282_v57  ;;  %v393_v22 = vld [vmem:[#allocation5 + $0x3e0] sm:$0xff]  ;;  %v394_v23 = vld [vmem:[#allocation5 + $0x3e8] sm:$0xff]  ;;  %v395_v24 = vld [vmem:[#allocation5 + $0x3f0] sm:$0xff] }
  0x67   :  { %549 = vmatpush.msra.mxu2 %v283_v58  ;;  %572 = vmatpush.msra.mxu3 %v284_v59  ;;  %v396_v25 = vld [vmem:[#allocation5 + $0x3f8] sm:$0xff]  ;;  %v381_v26 = vld [vmem:[#allocation5 + $0x380] sm:$0xff]  ;;  %v382_v27 = vld [vmem:[#allocation5 + $0x388] sm:$0xff] }
  0x68   :  { %504 = vmatpush.msra.mxu0 %v269_v60  ;;  %527 = vmatpush.msra.mxu1 %v270_v61  ;;  %v383_v28 = vld [vmem:[#allocation5 + $0x390] sm:$0xff]  ;;  %v384_v29 = vld [vmem:[#allocation5 + $0x398] sm:$0xff]  ;;  %v369_v30 = vld [vmem:[#allocation5 + $0x320] sm:$0xff] }
  0x69   :  { %550 = vmatpush.msra.mxu2 %v271_v62  ;;  %573 = vmatpush.msra.mxu3 %v272_v63  ;;  %v370_v31 = vld [vmem:[#allocation5 + $0x328] sm:$0xff]  ;;  %v371_v32 = vld [vmem:[#allocation5 + $0x330] sm:$0xff]  ;;  %v372_v33 = vld [vmem:[#allocation5 + $0x338] sm:$0xff] }
  0x6a   :  { %505 = vmatmul.f32.vlgmr.msra.gmra.mxu0 %v4063_v0  ;;  %528 = vmatmul.f32.vlgmr.msra.gmra.mxu1 %v4063_v0  ;;  %v357_v34 = vld [vmem:[#allocation5 + $0x2c0] sm:$0xff]  ;;  %v358_v35 = vld [vmem:[#allocation5 + $0x2c8] sm:$0xff]  ;;  %v359_v36 = vld [vmem:[#allocation5 + $0x2d0] sm:$0xff] }
  0x6b   :  { %551 = vmatmul.f32.vlgmr.msra.gmra.mxu2 %v4063_v0  ;;  %574 = vmatmul.f32.vlgmr.msra.gmra.mxu3 %v4063_v0  ;;  %v360_v37 = vld [vmem:[#allocation5 + $0x2d8] sm:$0xff]  ;;  %v345_v38 = vld [vmem:[#allocation5 + $0x260] sm:$0xff]  ;;  %v346_v39 = vld [vmem:[#allocation5 + $0x268] sm:$0xff] }
  0x6c   :  { %581 = vmatpush.msrb.mxu0 %v453_v1  ;;  %604 = vmatpush.msrb.mxu1 %v454_v2  ;;  %v347_v40 = vld [vmem:[#allocation5 + $0x270] sm:$0xff]  ;;  %v348_v41 = vld [vmem:[#allocation5 + $0x278] sm:$0xff]  ;;  %v333_v42 = vld [vmem:[#allocation5 + $0x200] sm:$0xff] }
  0x6d   :  { %627 = vmatpush.msrb.mxu2 %v455_v3  ;;  %650 = vmatpush.msrb.mxu3 %v456_v4  ;;  %v334_v43 = vld [vmem:[#allocation5 + $0x208] sm:$0xff]  ;;  %v335_v44 = vld [vmem:[#allocation5 + $0x210] sm:$0xff]  ;;  %v336_v45 = vld [vmem:[#allocation5 + $0x218] sm:$0xff] }
  0x6e   :  { %582 = vmatpush.msrb.mxu0 %v441_v5  ;;  %605 = vmatpush.msrb.mxu1 %v442_v6  ;;  %v321_v46 = vld [vmem:[#allocation5 + $0x1a0] sm:$0xff]  ;;  %v322_v47 = vld [vmem:[#allocation5 + $0x1a8] sm:$0xff]  ;;  %v323_v48 = vld [vmem:[#allocation5 + $0x1b0] sm:$0xff] }
  0x6f   :  { %628 = vmatpush.msrb.mxu2 %v443_v7  ;;  %651 = vmatpush.msrb.mxu3 %v444_v8  ;;  %v324_v49 = vld [vmem:[#allocation5 + $0x1b8] sm:$0xff]  ;;  %v309_v50 = vld [vmem:[#allocation5 + $0x140] sm:$0xff]  ;;  %v310_v51 = vld [vmem:[#allocation5 + $0x148] sm:$0xff] }
  0x70   :  { %583 = vmatpush.msrb.mxu0 %v429_v9  ;;  %606 = vmatpush.msrb.mxu1 %v430_v10  ;;  %v311_v52 = vld [vmem:[#allocation5 + $0x150] sm:$0xff]  ;;  %v312_v53 = vld [vmem:[#allocation5 + $0x158] sm:$0xff]  ;;  %v297_v54 = vld [vmem:[#allocation5 + $0xe0] sm:$0xff] }
  0x71   :  { %629 = vmatpush.msrb.mxu2 %v431_v11  ;;  %652 = vmatpush.msrb.mxu3 %v432_v12  ;;  %v298_v55 = vld [vmem:[#allocation5 + $0xe8] sm:$0xff]  ;;  %v299_v56 = vld [vmem:[#allocation5 + $0xf0] sm:$0xff]  ;;  %v300_v57 = vld [vmem:[#allocation5 + $0xf8] sm:$0xff] }
  0x72   :  { %508 = vmatmul.f32.gmra.mxu0 %v4069_v13  ;;  %531 = vmatmul.f32.gmra.mxu1 %v4069_v13  ;;  %v285_v58 = vld [vmem:[#allocation5 + $0x80] sm:$0xff]  ;;  %v286_v59 = vld [vmem:[#allocation5 + $0x88] sm:$0xff]  ;;  %v287_v60 = vld [vmem:[#allocation5 + $0x90] sm:$0xff] }
  0x73   :  { %554 = vmatmul.f32.gmra.mxu2 %v4069_v13  ;;  %577 = vmatmul.f32.gmra.mxu3 %v4069_v13  ;;  %v288_v61 = vld [vmem:[#allocation5 + $0x98] sm:$0xff]  ;;  %v273_v62 = vld [vmem:[#allocation5 + $0x20] sm:$0xff]  ;;  %v274_v63 = vld [vmem:[#allocation5 + $0x28] sm:$0xff] }
  0x74   :  { %584 = vmatpush.msrb.mxu0 %v417_v14  ;;  %607 = vmatpush.msrb.mxu1 %v418_v15  ;;  %v457_v1 = vld [vmem:[#allocation5 + $0x5e0] sm:$0xff]  ;;  %v458_v2 = vld [vmem:[#allocation5 + $0x5e8] sm:$0xff]  ;;  %v275_v3 = vld [vmem:[#allocation5 + $0x30] sm:$0xff] }
  0x75   :  { %630 = vmatpush.msrb.mxu2 %v419_v16  ;;  %653 = vmatpush.msrb.mxu3 %v420_v17  ;;  %v276_v4 = vld [vmem:[#allocation5 + $0x38] sm:$0xff]  ;;  %v445_v5 = vld [vmem:[#allocation5 + $0x580] sm:$0xff]  ;;  %v446_v6 = vld [vmem:[#allocation5 + $0x588] sm:$0xff] }
  0x76   :  { %585 = vmatpush.msrb.mxu0 %v405_v18  ;;  %608 = vmatpush.msrb.mxu1 %v406_v19  ;;  %v459_v7 = vld [vmem:[#allocation5 + $0x5f0] sm:$0xff]  ;;  %v460_v8 = vld [vmem:[#allocation5 + $0x5f8] sm:$0xff]  ;;  %v433_v9 = vld [vmem:[#allocation5 + $0x520] sm:$0xff] }
  0x77   :  { %631 = vmatpush.msrb.mxu2 %v407_v20  ;;  %654 = vmatpush.msrb.mxu3 %v408_v21  ;;  %v434_v10 = vld [vmem:[#allocation5 + $0x528] sm:$0xff]  ;;  %v447_v11 = vld [vmem:[#allocation5 + $0x590] sm:$0xff]  ;;  %v448_v12 = vld [vmem:[#allocation5 + $0x598] sm:$0xff] }
  0x78   :  { %586 = vmatpush.msrb.mxu0 %v393_v22  ;;  %609 = vmatpush.msrb.mxu1 %v394_v23  ;;  %v421_v14 = vld [vmem:[#allocation5 + $0x4c0] sm:$0xff]  ;;  %v422_v15 = vld [vmem:[#allocation5 + $0x4c8] sm:$0xff]  ;;  %v435_v16 = vld [vmem:[#allocation5 + $0x530] sm:$0xff] }
  0x79   :  { %632 = vmatpush.msrb.mxu2 %v395_v24  ;;  %655 = vmatpush.msrb.mxu3 %v396_v25  ;;  %v436_v17 = vld [vmem:[#allocation5 + $0x538] sm:$0xff]  ;;  %v409_v18 = vld [vmem:[#allocation5 + $0x460] sm:$0xff]  ;;  %v410_v19 = vld [vmem:[#allocation5 + $0x468] sm:$0xff] }
  0x7a   :  { %587 = vmatpush.msrb.mxu0 %v381_v26  ;;  %610 = vmatpush.msrb.mxu1 %v382_v27  ;;  %v423_v20 = vld [vmem:[#allocation5 + $0x4d0] sm:$0xff]  ;;  %v424_v21 = vld [vmem:[#allocation5 + $0x4d8] sm:$0xff]  ;;  %v397_v22 = vld [vmem:[#allocation5 + $0x400] sm:$0xff] }
  0x7b   :  { %633 = vmatpush.msrb.mxu2 %v383_v28  ;;  %656 = vmatpush.msrb.mxu3 %v384_v29  ;;  %v398_v23 = vld [vmem:[#allocation5 + $0x408] sm:$0xff]  ;;  %v411_v24 = vld [vmem:[#allocation5 + $0x470] sm:$0xff]  ;;  %v412_v25 = vld [vmem:[#allocation5 + $0x478] sm:$0xff] }
  0x7c   :  { %588 = vmatpush.msrb.mxu0 %v369_v30  ;;  %611 = vmatpush.msrb.mxu1 %v370_v31  ;;  %v385_v26 = vld [vmem:[#allocation5 + $0x3a0] sm:$0xff]  ;;  %v386_v27 = vld [vmem:[#allocation5 + $0x3a8] sm:$0xff]  ;;  %v399_v28 = vld [vmem:[#allocation5 + $0x410] sm:$0xff] }
  0x7d   :  { %634 = vmatpush.msrb.mxu2 %v371_v32  ;;  %657 = vmatpush.msrb.mxu3 %v372_v33  ;;  %v400_v29 = vld [vmem:[#allocation5 + $0x418] sm:$0xff]  ;;  %v373_v30 = vld [vmem:[#allocation5 + $0x340] sm:$0xff]  ;;  %v374_v31 = vld [vmem:[#allocation5 + $0x348] sm:$0xff] }
  0x7e   :  { %589 = vmatpush.msrb.mxu0 %v357_v34  ;;  %612 = vmatpush.msrb.mxu1 %v358_v35  ;;  %v387_v32 = vld [vmem:[#allocation5 + $0x3b0] sm:$0xff]  ;;  %v388_v33 = vld [vmem:[#allocation5 + $0x3b8] sm:$0xff]  ;;  %v361_v34 = vld [vmem:[#allocation5 + $0x2e0] sm:$0xff] }
  0x7f   :  { %635 = vmatpush.msrb.mxu2 %v359_v36  ;;  %658 = vmatpush.msrb.mxu3 %v360_v37  ;;  %v362_v35 = vld [vmem:[#allocation5 + $0x2e8] sm:$0xff]  ;;  %v375_v36 = vld [vmem:[#allocation5 + $0x350] sm:$0xff]  ;;  %v376_v37 = vld [vmem:[#allocation5 + $0x358] sm:$0xff] }
  0x80   :  { %590 = vmatpush.msrb.mxu0 %v345_v38  ;;  %613 = vmatpush.msrb.mxu1 %v346_v39  ;;  %v349_v38 = vld [vmem:[#allocation5 + $0x280] sm:$0xff]  ;;  %v350_v39 = vld [vmem:[#allocation5 + $0x288] sm:$0xff] }
  0x81   :  { %636 = vmatpush.msrb.mxu2 %v347_v40  ;;  %659 = vmatpush.msrb.mxu3 %v348_v41  ;;  %v363_v40 = vld [vmem:[#allocation5 + $0x2f0] sm:$0xff]  ;;  %v364_v41 = vld [vmem:[#allocation5 + $0x2f8] sm:$0xff] }
  0x82   :  { %591 = vmatpush.msrb.mxu0 %v333_v42  ;;  %614 = vmatpush.msrb.mxu1 %v334_v43  ;;  %v337_v42 = vld [vmem:[#allocation5 + $0x220] sm:$0xff]  ;;  %v338_v43 = vld [vmem:[#allocation5 + $0x228] sm:$0xff] }
  0x83   :  { %637 = vmatpush.msrb.mxu2 %v335_v44  ;;  %660 = vmatpush.msrb.mxu3 %v336_v45  ;;  %v352_v44 = vld [vmem:[#allocation5 + $0x298] sm:$0xff]  ;;  %v325_v45 = vld [vmem:[#allocation5 + $0x1c0] sm:$0xff] }
  0x84   :  { %592 = vmatpush.msrb.mxu0 %v321_v46  ;;  %615 = vmatpush.msrb.mxu1 %v322_v47  ;;  %v326_v46 = vld [vmem:[#allocation5 + $0x1c8] sm:$0xff]  ;;  %v351_v47 = vld [vmem:[#allocation5 + $0x290] sm:$0xff] }
  0x85   :  { %638 = vmatpush.msrb.mxu2 %v323_v48  ;;  %661 = vmatpush.msrb.mxu3 %v324_v49  ;;  %v313_v48 = vld [vmem:[#allocation5 + $0x160] sm:$0xff]  ;;  %v314_v49 = vld [vmem:[#allocation5 + $0x168] sm:$0xff] }
  0x86   :  { %593 = vmatpush.msrb.mxu0 %v309_v50  ;;  %616 = vmatpush.msrb.mxu1 %v310_v51  ;;  %v339_v50 = vld [vmem:[#allocation5 + $0x230] sm:$0xff]  ;;  %v301_v51 = vld [vmem:[#allocation5 + $0x100] sm:$0xff] }
  0x87   :  { %639 = vmatpush.msrb.mxu2 %v311_v52  ;;  %662 = vmatpush.msrb.mxu3 %v312_v53  ;;  %v302_v52 = vld [vmem:[#allocation5 + $0x108] sm:$0xff]  ;;  %v340_v53 = vld [vmem:[#allocation5 + $0x238] sm:$0xff] }
  0x88   :  { %594 = vmatpush.msrb.mxu0 %v297_v54  ;;  %617 = vmatpush.msrb.mxu1 %v298_v55  ;;  %v289_v54 = vld [vmem:[#allocation5 + $0xa0] sm:$0xff]  ;;  %v290_v55 = vld [vmem:[#allocation5 + $0xa8] sm:$0xff] }
  0x89   :  { %640 = vmatpush.msrb.mxu2 %v299_v56  ;;  %663 = vmatpush.msrb.mxu3 %v300_v57  ;;  %v327_v56 = vld [vmem:[#allocation5 + $0x1d0] sm:$0xff]  ;;  %v328_v57 = vld [vmem:[#allocation5 + $0x1d8] sm:$0xff] }
  0x8a   :  { %595 = vmatpush.msrb.mxu0 %v285_v58  ;;  %618 = vmatpush.msrb.mxu1 %v286_v59  ;;  %v277_v58 = vld [vmem:[#allocation5 + $0x40] sm:$0xff]  ;;  %v278_v59 = vld [vmem:[#allocation5 + $0x48] sm:$0xff] }
  0x8b   :  { %641 = vmatpush.msrb.mxu2 %v287_v60  ;;  %664 = vmatpush.msrb.mxu3 %v288_v61  ;;  %v315_v60 = vld [vmem:[#allocation5 + $0x170] sm:$0xff]  ;;  %v316_v61 = vld [vmem:[#allocation5 + $0x178] sm:$0xff] }
  0x8c   :  { %596 = vmatpush.msrb.mxu0 %v273_v62  ;;  %619 = vmatpush.msrb.mxu1 %v274_v63  ;;  %v1252_v62 = vld [vmem:[#allocation8 + $0xf0] sm:$0xff] }
  0x8d   :  { %642 = vmatpush.msrb.mxu2 %v275_v3  ;;  %665 = vmatpush.msrb.mxu3 %v276_v4  ;;  %v1284_v63 = vld [vmem:[#allocation8 + $0x1f0] sm:$0xff]  ;;  %v1250_v3 = vld [vmem:[#allocation8 + $0xe0] sm:$0xff] }
  0x8e   :  { %673 = vmatpush.msra.mxu0 %v457_v1  ;;  %696 = vmatpush.msra.mxu1 %v458_v2  ;;  %v303_v1 = vld [vmem:[#allocation5 + $0x110] sm:$0xff]  ;;  %v304_v2 = vld [vmem:[#allocation5 + $0x118] sm:$0xff] }
  0x8f   :  { %719 = vmatpush.msra.mxu2 %v459_v7  ;;  %742 = vmatpush.msra.mxu3 %v460_v8  ;;  %v1282_v4 = vld [vmem:[#allocation8 + $0x1e0] sm:$0xff]  ;;  %v1248_v7 = vld [vmem:[#allocation8 + $0xd0] sm:$0xff] }
  0x90   :  { %674 = vmatpush.msra.mxu0 %v445_v5  ;;  %697 = vmatpush.msra.mxu1 %v446_v6  ;;  %v291_v5 = vld [vmem:[#allocation5 + $0xb0] sm:$0xff]  ;;  %v292_v6 = vld [vmem:[#allocation5 + $0xb8] sm:$0xff] }
  0x91   :  { %720 = vmatpush.msra.mxu2 %v447_v11  ;;  %743 = vmatpush.msra.mxu3 %v448_v12  ;;  %v1280_v8 = vld [vmem:[#allocation8 + $0x1d0] sm:$0xff]  ;;  %v1246_v11 = vld [vmem:[#allocation8 + $0xc0] sm:$0xff] }
  0x92   :  { %675 = vmatpush.msra.mxu0 %v433_v9  ;;  %698 = vmatpush.msra.mxu1 %v434_v10  ;;  %v279_v9 = vld [vmem:[#allocation5 + $0x50] sm:$0xff]  ;;  %v280_v10 = vld [vmem:[#allocation5 + $0x58] sm:$0xff] }
  0x93   :  { %721 = vmatpush.msra.mxu2 %v435_v16  ;;  %744 = vmatpush.msra.mxu3 %v436_v17  ;;  %v1278_v12 = vld [vmem:[#allocation8 + $0x1c0] sm:$0xff]  ;;  %v1244_v16 = vld [vmem:[#allocation8 + $0xb0] sm:$0xff] }
  0x94   :  { %676 = vmatpush.msra.mxu0 %v421_v14  ;;  %699 = vmatpush.msra.mxu1 %v422_v15  ;;  %v1316_v14 = vld [vmem:[#allocation8 + $0x2f0] sm:$0xff] }
  0x95   :  { %722 = vmatpush.msra.mxu2 %v423_v20  ;;  %745 = vmatpush.msra.mxu3 %v424_v21  ;;  %v1348_v15 = vld [vmem:[#allocation8 + $0x3f0] sm:$0xff]  ;;  %v1242_v20 = vld [vmem:[#allocation8 + $0xa0] sm:$0xff] }
  0x96   :  { %677 = vmatpush.msra.mxu0 %v409_v18  ;;  %700 = vmatpush.msra.mxu1 %v410_v19  ;;  %v1276_v17 = vld [vmem:[#allocation8 + $0x1b0] sm:$0xff]  ;;  %v1314_v18 = vld [vmem:[#allocation8 + $0x2e0] sm:$0xff] }
  0x97   :  { %723 = vmatpush.msra.mxu2 %v411_v24  ;;  %746 = vmatpush.msra.mxu3 %v412_v25  ;;  %v1346_v19 = vld [vmem:[#allocation8 + $0x3e0] sm:$0xff]  ;;  %v1240_v24 = vld [vmem:[#allocation8 + $0x90] sm:$0xff] }
  0x98   :  { %678 = vmatpush.msra.mxu0 %v397_v22  ;;  %701 = vmatpush.msra.mxu1 %v398_v23  ;;  %v1274_v21 = vld [vmem:[#allocation8 + $0x1a0] sm:$0xff]  ;;  %v1312_v22 = vld [vmem:[#allocation8 + $0x2d0] sm:$0xff] }
  0x99   :  { %724 = vmatpush.msra.mxu2 %v399_v28  ;;  %747 = vmatpush.msra.mxu3 %v400_v29  ;;  %v1344_v23 = vld [vmem:[#allocation8 + $0x3d0] sm:$0xff]  ;;  %v1238_v28 = vld [vmem:[#allocation8 + $0x80] sm:$0xff] }
  0x9a   :  { %679 = vmatpush.msra.mxu0 %v385_v26  ;;  %702 = vmatpush.msra.mxu1 %v386_v27  ;;  %v1272_v25 = vld [vmem:[#allocation8 + $0x190] sm:$0xff]  ;;  %v1310_v26 = vld [vmem:[#allocation8 + $0x2c0] sm:$0xff] }
  0x9b   :  { %725 = vmatpush.msra.mxu2 %v387_v32  ;;  %748 = vmatpush.msra.mxu3 %v388_v33  ;;  %v1342_v27 = vld [vmem:[#allocation8 + $0x3c0] sm:$0xff]  ;;  %v1236_v32 = vld [vmem:[#allocation8 + $0x70] sm:$0xff] }
  0x9c   :  { %680 = vmatpush.msra.mxu0 %v373_v30  ;;  %703 = vmatpush.msra.mxu1 %v374_v31  ;;  %v1270_v29 = vld [vmem:[#allocation8 + $0x180] sm:$0xff]  ;;  %v1308_v30 = vld [vmem:[#allocation8 + $0x2b0] sm:$0xff] }
  0x9d   :  { %726 = vmatpush.msra.mxu2 %v375_v36  ;;  %749 = vmatpush.msra.mxu3 %v376_v37  ;;  %v1340_v31 = vld [vmem:[#allocation8 + $0x3b0] sm:$0xff]  ;;  %v1234_v36 = vld [vmem:[#allocation8 + $0x60] sm:$0xff] }
  0x9e   :  { %681 = vmatpush.msra.mxu0 %v361_v34  ;;  %704 = vmatpush.msra.mxu1 %v362_v35  ;;  %v1268_v33 = vld [vmem:[#allocation8 + $0x170] sm:$0xff]  ;;  %v1306_v34 = vld [vmem:[#allocation8 + $0x2a0] sm:$0xff] }
  0x9f   :  { %727 = vmatpush.msra.mxu2 %v363_v40  ;;  %750 = vmatpush.msra.mxu3 %v364_v41  ;;  %v1338_v35 = vld [vmem:[#allocation8 + $0x3a0] sm:$0xff]  ;;  %v1264_v40 = vld [vmem:[#allocation8 + $0x150] sm:$0xff] }
  0xa0   :  { %682 = vmatpush.msra.mxu0 %v349_v38  ;;  %705 = vmatpush.msra.mxu1 %v350_v39  ;;  %v1266_v37 = vld [vmem:[#allocation8 + $0x160] sm:$0xff]  ;;  %v1304_v38 = vld [vmem:[#allocation8 + $0x290] sm:$0xff] }
  0xa1   :  { %643 = vmatmul.f32.vlgmr.msrb.gmra.mxu2 %v4063_v0  ;;  %751 = vmatpush.msra.mxu3 %v352_v44  ;;  %v1232_v39 = vld [vmem:[#allocation8 + $0x50] sm:$0xff]  ;;  %v1302_v41 = vld [vmem:[#allocation8 + $0x280] sm:$0xff] }
  0xa2   :  { %683 = vmatpush.msra.mxu0 %v337_v42  ;;  %706 = vmatpush.msra.mxu1 %v338_v43  ;;  %v1334_v42 = vld [vmem:[#allocation8 + $0x380] sm:$0xff] }
  0xa3   :  { %728 = vmatpush.msra.mxu2 %v351_v47  ;;  %597 = vmatmul.f32.vlgmr.msrb.gmra.mxu0 %v4063_v0  ;;  %v1230_v43 = vld [vmem:[#allocation8 + $0x40] sm:$0xff]  ;;  %v1228_v47 = vld [vmem:[#allocation8 + $0x30] sm:$0xff] }
  0xa4   :  { %684 = vmatpush.msra.mxu0 %v325_v45  ;;  %707 = vmatpush.msra.mxu1 %v326_v46  ;;  %v1262_v44 = vld [vmem:[#allocation8 + $0x140] sm:$0xff]  ;;  %v1300_v45 = vld [vmem:[#allocation8 + $0x270] sm:$0xff] }
  0xa5   :  { %666 = vmatmul.f32.vlgmr.msrb.gmra.mxu3 %v4063_v0  ;;  %729 = vmatpush.msra.mxu2 %v339_v50  ;;  %v1332_v46 = vld [vmem:[#allocation8 + $0x370] sm:$0xff]  ;;  %v1330_v50 = vld [vmem:[#allocation8 + $0x360] sm:$0xff] }
  0xa6   :  { %685 = vmatpush.msra.mxu0 %v313_v48  ;;  %708 = vmatpush.msra.mxu1 %v314_v49  ;;  %v1260_v48 = vld [vmem:[#allocation8 + $0x130] sm:$0xff]  ;;  %v1298_v49 = vld [vmem:[#allocation8 + $0x260] sm:$0xff] }
  0xa7   :  { %752 = vmatpush.msra.mxu3 %v340_v53  ;;  %620 = vmatmul.f32.vlgmr.msrb.gmra.mxu1 %v4063_v0  ;;  %v1296_v53 = vld [vmem:[#allocation8 + $0x250] sm:$0xff] }
  0xa8   :  { %686 = vmatpush.msra.mxu0 %v301_v51  ;;  %709 = vmatpush.msra.mxu1 %v302_v52  ;;  %v1226_v51 = vld [vmem:[#allocation8 + $0x20] sm:$0xff] }
  0xa9   :  { %730 = vmatpush.msra.mxu2 %v327_v56  ;;  %753 = vmatpush.msra.mxu3 %v328_v57  ;;  %v1258_v52 = vld [vmem:[#allocation8 + $0x120] sm:$0xff] }
  0xaa   :  { %687 = vmatpush.msra.mxu0 %v289_v54  ;;  %710 = vmatpush.msra.mxu1 %v290_v55  ;;  %v1224_v54 = vld [vmem:[#allocation8 + $0x10] sm:$0xff]  ;;  %v1294_v56 = vld [vmem:[#allocation8 + $0x240] sm:$0xff] }
  0xab   :  { %731 = vmatpush.msra.mxu2 %v315_v60  ;;  %754 = vmatpush.msra.mxu3 %v316_v61  ;;  %v1256_v55 = vld [vmem:[#allocation8 + $0x110] sm:$0xff]  ;;  %v1326_v57 = vld [vmem:[#allocation8 + $0x340] sm:$0xff] }
  0xac   :  { %688 = vmatpush.msra.mxu0 %v277_v58  ;;  %711 = vmatpush.msra.mxu1 %v278_v59  ;;  %v1222_v58 = vld [vmem:[#allocation8] sm:$0xff]  ;;  %v1292_v60 = vld [vmem:[#allocation8 + $0x230] sm:$0xff] }
  0xad   :  { %732 = vmatpush.msra.mxu2 %v303_v1  ;;  %755 = vmatpush.msra.mxu3 %v304_v2  ;;  %v1254_v59 = vld [vmem:[#allocation8 + $0x100] sm:$0xff]  ;;  %v1324_v61 = vld [vmem:[#allocation8 + $0x330] sm:$0xff] }
  0xae   :  { %1356 = vmatpush.msrb.mxu0 %v1252_v62  ;;  %1379 = vmatpush.msrb.mxu1 %v1284_v63  ;;  %v1253_v62 = vld [vmem:[#allocation8 + $0xf8] sm:$0xff]  ;;  %v1290_v1 = vld [vmem:[#allocation8 + $0x220] sm:$0xff] }
  0xaf   :  { %733 = vmatpush.msra.mxu2 %v291_v5  ;;  %756 = vmatpush.msra.mxu3 %v292_v6  ;;  %v1285_v63 = vld [vmem:[#allocation8 + $0x1f8] sm:$0xff]  ;;  %v1322_v2 = vld [vmem:[#allocation8 + $0x320] sm:$0xff]  ;;  %v1288_v5 = vld [vmem:[#allocation8 + $0x210] sm:$0xff] }
  0xb0   :  { %1357 = vmatpush.msrb.mxu0 %v1250_v3  ;;  %1380 = vmatpush.msrb.mxu1 %v1282_v4  ;;  %v1251_v3 = vld [vmem:[#allocation8 + $0xe8] sm:$0xff]  ;;  %v1320_v6 = vld [vmem:[#allocation8 + $0x310] sm:$0xff] }
  0xb1   :  { %734 = vmatpush.msra.mxu2 %v279_v9  ;;  %757 = vmatpush.msra.mxu3 %v280_v10  ;;  %v1283_v4 = vld [vmem:[#allocation8 + $0x1e8] sm:$0xff]  ;;  %v4091_v9 = vld [vmem:[#allocation7] sm:$0xff]  ;;  %v1286_v10 = vld [vmem:[#allocation8 + $0x200] sm:$0xff] }
  0xb2   :  { %1358 = vmatpush.msrb.mxu0 %v1248_v7  ;;  %1381 = vmatpush.msrb.mxu1 %v1280_v8  ;;  %v1249_v7 = vld [vmem:[#allocation8 + $0xd8] sm:$0xff] }
  0xb3   :  { %1402 = vmatpush.msrb.mxu2 %v1316_v14  ;;  %1425 = vmatpush.msrb.mxu3 %v1348_v15  ;;  %v1281_v8 = vld [vmem:[#allocation8 + $0x1d8] sm:$0xff]  ;;  %v1279_v14 = vld [vmem:[#allocation8 + $0x1c8] sm:$0xff] }
  0xb4   :  { %1359 = vmatpush.msrb.mxu0 %v1246_v11  ;;  %1382 = vmatpush.msrb.mxu1 %v1278_v12  ;;  %v1318_v11 = vld [vmem:[#allocation8 + $0x300] sm:$0xff]  ;;  %v1247_v12 = vld [vmem:[#allocation8 + $0xc8] sm:$0xff]  ;;  %v1317_v15 = vld [vmem:[#allocation8 + $0x2f8] sm:$0xff] }
  0xb5   :  { %1403 = vmatpush.msrb.mxu2 %v1314_v18  ;;  %1426 = vmatpush.msrb.mxu3 %v1346_v19  ;;  %v466_v18 = vperm.slane %v4091_v9, 1  ;;  %v1245_v19 = vld [vmem:[#allocation8 + $0xb8] sm:$0xff] }
  0xb6   :  { %1360 = vmatpush.msrb.mxu0 %v1244_v16  ;;  %1383 = vmatpush.msrb.mxu1 %v1276_v17  ;;  %v1349_v16 = vld [vmem:[#allocation8 + $0x3f8] sm:$0xff]  ;;  %v465_v17 = vperm.slane %v4091_v9, 0 }
  0xb7   :  { %1404 = vmatpush.msrb.mxu2 %v1312_v22  ;;  %1427 = vmatpush.msrb.mxu3 %v1344_v23  ;;  %v1347_v22 = vld [vmem:[#allocation8 + $0x3e8] sm:$0xff] }
  0xb8   :  { %1361 = vmatpush.msrb.mxu0 %v1242_v20  ;;  %1384 = vmatpush.msrb.mxu1 %v1274_v21  ;;  %v1277_v20 = vld [vmem:[#allocation8 + $0x1b8] sm:$0xff]  ;;  %v1315_v21 = vld [vmem:[#allocation8 + $0x2e8] sm:$0xff] }
  0xb9   :  { %1405 = vmatpush.msrb.mxu2 %v1310_v26  ;;  %1428 = vmatpush.msrb.mxu3 %v1342_v27  ;;  %v1243_v23 = vld [vmem:[#allocation8 + $0xa8] sm:$0xff] }
  0xba   :  { %1362 = vmatpush.msrb.mxu0 %v1240_v24  ;;  %1385 = vmatpush.msrb.mxu1 %v1272_v25  ;;  %v1275_v24 = vld [vmem:[#allocation8 + $0x1a8] sm:$0xff]  ;;  %v1313_v25 = vld [vmem:[#allocation8 + $0x2d8] sm:$0xff] }
  0xbb   :  { %646 = vmatmul.f32.gmra.mxu2 %v4069_v13  ;;  %600 = vmatmul.f32.gmra.mxu0 %v4069_v13 }
  0xbc   :  { %669 = vmatmul.f32.gmra.mxu3 %v4069_v13  ;;  %623 = vmatmul.f32.gmra.mxu1 %v4069_v13 }
  0xbd   :  { %1363 = vmatpush.msrb.mxu0 %v1238_v28  ;;  %1386 = vmatpush.msrb.mxu1 %v1270_v29  ;;  %v1345_v28 = vld [vmem:[#allocation8 + $0x3d8] sm:$0xff] }
  0xbe   :  { %1406 = vmatpush.msrb.mxu2 %v1308_v30  ;;  %1429 = vmatpush.msrb.mxu3 %v1340_v31  ;;  %v1241_v31 = vld [vmem:[#allocation8 + $0x98] sm:$0xff] }
  0xbf   :  { %1364 = vmatpush.msrb.mxu0 %v1236_v32  ;;  %1387 = vmatpush.msrb.mxu1 %v1268_v33  ;;  %v1273_v32 = vld [vmem:[#allocation8 + $0x198] sm:$0xff]  ;;  %v1311_v33 = vld [vmem:[#allocation8 + $0x2c8] sm:$0xff] }
  0xc0   :  { %1407 = vmatpush.msrb.mxu2 %v1306_v34  ;;  %1430 = vmatpush.msrb.mxu3 %v1338_v35  ;;  %v1343_v34 = vld [vmem:[#allocation8 + $0x3c8] sm:$0xff] }
  0xc1   :  { %1365 = vmatpush.msrb.mxu0 %v1234_v36  ;;  %1388 = vmatpush.msrb.mxu1 %v1266_v37  ;;  %v1239_v35 = vld [vmem:[#allocation8 + $0x88] sm:$0xff] }
  0xc2   :  { %1408 = vmatpush.msrb.mxu2 %v1304_v38  ;;  %v1271_v36 = vld [vmem:[#allocation8 + $0x188] sm:$0xff] }
  0xc3   :  { %735 = vmatmul.f32.vlgmr.msra.gmra.mxu2 %v4063_v0  ;;  %689 = vmatmul.f32.vlgmr.msra.gmra.mxu0 %v4063_v0 }
  0xc4   :  { %758 = vmatmul.f32.vlgmr.msra.gmra.mxu3 %v4063_v0  ;;  %712 = vmatmul.f32.vlgmr.msra.gmra.mxu1 %v4063_v0  ;;  %v1336_v0 = vld [vmem:[#allocation8 + $0x390] sm:$0xff] }
  0xc5   :  { %1431 = vmatpush.msrb.mxu3 %v1336_v0  ;;  %1366 = vmatpush.msrb.mxu0 %v1232_v39  ;;  %v1309_v0 = vld [vmem:[#allocation8 + $0x2b8] sm:$0xff] }
  0xc6   :  { %1389 = vmatpush.msrb.mxu1 %v1264_v40  ;;  %1409 = vmatpush.msrb.mxu2 %v1302_v41  ;;  %v1341_v39 = vld [vmem:[#allocation8 + $0x3b8] sm:$0xff]  ;;  %v467_v40 = vperm.slane %v4091_v9, 2  ;;  %v468_v41 = vperm.slane %v4091_v9, 3 }
  0xc7   :  { %1432 = vmatpush.msrb.mxu3 %v1334_v42  ;;  %1367 = vmatpush.msrb.mxu0 %v1230_v43  ;;  %v1237_v42 = vld [vmem:[#allocation8 + $0x78] sm:$0xff] }
  0xc8   :  { %1390 = vmatpush.msrb.mxu1 %v1262_v44  ;;  %1410 = vmatpush.msrb.mxu2 %v1300_v45  ;;  %v1269_v43 = vld [vmem:[#allocation8 + $0x178] sm:$0xff] }
  0xc9   :  { %1433 = vmatpush.msrb.mxu3 %v1332_v46  ;;  %1368 = vmatpush.msrb.mxu0 %v1228_v47  ;;  %v1307_v46 = vld [vmem:[#allocation8 + $0x2a8] sm:$0xff] }
  0xca   :  { %1391 = vmatpush.msrb.mxu1 %v1260_v48  ;;  %1411 = vmatpush.msrb.mxu2 %v1298_v49  ;;  %v1339_v47 = vld [vmem:[#allocation8 + $0x3a8] sm:$0xff] }
  0xcb   :  { %738 = vmatmul.f32.gmra.mxu2 %v4069_v13  ;;  %692 = vmatmul.f32.gmra.mxu0 %v4069_v13  ;;  %v1235_v48 = vld [vmem:[#allocation8 + $0x68] sm:$0xff] }
  0xcc   :  { %761 = vmatmul.f32.gmra.mxu3 %v4069_v13  ;;  %715 = vmatmul.f32.gmra.mxu1 %v4069_v13  ;;  %v1328_v13 = vld [vmem:[#allocation8 + $0x350] sm:$0xff]  ;;  %v1267_v49 = vld [vmem:[#allocation8 + $0x168] sm:$0xff] }
  0xcd   :  { %1434 = vmatpush.msrb.mxu3 %v1330_v50  ;;  %1369 = vmatpush.msrb.mxu0 %v1226_v51 }
  0xce   :  { %1392 = vmatpush.msrb.mxu1 %v1258_v52  ;;  %1412 = vmatpush.msrb.mxu2 %v1296_v53  ;;  %v1305_v52 = vld [vmem:[#allocation8 + $0x298] sm:$0xff] }
  0xcf   :  { %1435 = vmatpush.msrb.mxu3 %v1328_v13  ;;  %1370 = vmatpush.msrb.mxu0 %v1224_v54  ;;  %v1337_v53 = vld [vmem:[#allocation8 + $0x398] sm:$0xff] }
  0xd0   :  { %1393 = vmatpush.msrb.mxu1 %v1256_v55  ;;  %1413 = vmatpush.msrb.mxu2 %v1294_v56 }
  0xd1   :  { %1436 = vmatpush.msrb.mxu3 %v1326_v57  ;;  %1371 = vmatpush.msrb.mxu0 %v1222_v58  ;;  %v1233_v57 = vld [vmem:[#allocation8 + $0x58] sm:$0xff] }
  0xd2   :  { %1394 = vmatpush.msrb.mxu1 %v1254_v59  ;;  %1414 = vmatpush.msrb.mxu2 %v1292_v60  ;;  %v1265_v58 = vld [vmem:[#allocation8 + $0x158] sm:$0xff] }
  0xd3   :  { %1437 = vmatpush.msrb.mxu3 %v1324_v61  ;;  %1448 = vmatpush.msra.mxu0 %v1253_v62  ;;  %v1303_v61 = vld [vmem:[#allocation8 + $0x288] sm:$0xff] }
  0xd4   :  { %1471 = vmatpush.msra.mxu1 %v1285_v63  ;;  %1415 = vmatpush.msrb.mxu2 %v1290_v1  ;;  %v1335_v62 = vld [vmem:[#allocation8 + $0x388] sm:$0xff] }
  0xd5   :  { %1438 = vmatpush.msrb.mxu3 %v1322_v2  ;;  %1449 = vmatpush.msra.mxu0 %v1251_v3  ;;  %v1231_v2 = vld [vmem:[#allocation8 + $0x48] sm:$0xff] }
  0xd6   :  { %1472 = vmatpush.msra.mxu1 %v1283_v4  ;;  %1416 = vmatpush.msrb.mxu2 %v1288_v5  ;;  %v1263_v3 = vld [vmem:[#allocation8 + $0x148] sm:$0xff] }
  0xd7   :  { %1439 = vmatpush.msrb.mxu3 %v1320_v6  ;;  %1450 = vmatpush.msra.mxu0 %v1249_v7  ;;  %v1301_v6 = vld [vmem:[#allocation8 + $0x278] sm:$0xff] }
  0xd8   :  { %1473 = vmatpush.msra.mxu1 %v1281_v8  ;;  %1417 = vmatpush.msrb.mxu2 %v1286_v10  ;;  %v1333_v7 = vld [vmem:[#allocation8 + $0x378] sm:$0xff] }
  0xd9   :  { %1440 = vmatpush.msrb.mxu3 %v1318_v11  ;;  %1451 = vmatpush.msra.mxu0 %v1247_v12  ;;  %v1229_v12 = vld [vmem:[#allocation8 + $0x38] sm:$0xff] }
  0xda   :  { %1474 = vmatpush.msra.mxu1 %v1279_v14  ;;  %1494 = vmatpush.msra.mxu2 %v1317_v15  ;;  %v1261_v14 = vld [vmem:[#allocation8 + $0x138] sm:$0xff] }
  0xdb   :  { %1517 = vmatpush.msra.mxu3 %v1349_v16  ;;  %1452 = vmatpush.msra.mxu0 %v1245_v19  ;;  %v1331_v19 = vld [vmem:[#allocation8 + $0x368] sm:$0xff] }
  0xdc   :  { %1475 = vmatpush.msra.mxu1 %v1277_v20  ;;  %1495 = vmatpush.msra.mxu2 %v1315_v21  ;;  %v1227_v20 = vld [vmem:[#allocation8 + $0x28] sm:$0xff] }
  0xdd   :  { %1518 = vmatpush.msra.mxu3 %v1347_v22  ;;  %1453 = vmatpush.msra.mxu0 %v1243_v23 }
  0xde   :  { %1476 = vmatpush.msra.mxu1 %v1275_v24  ;;  %1496 = vmatpush.msra.mxu2 %v1313_v25  ;;  %v1259_v25 = vld [vmem:[#allocation8 + $0x128] sm:$0xff] }
  0xdf   :  { %1519 = vmatpush.msra.mxu3 %v1345_v28  ;;  %1454 = vmatpush.msra.mxu0 %v1241_v31  ;;  %v1257_v31 = vld [vmem:[#allocation8 + $0x118] sm:$0xff] }
  0xe0   :  { %1477 = vmatpush.msra.mxu1 %v1273_v32  ;;  %1497 = vmatpush.msra.mxu2 %v1311_v33  ;;  %v1295_v32 = vld [vmem:[#allocation8 + $0x248] sm:$0xff] }
  0xe1   :  { %1520 = vmatpush.msra.mxu3 %v1343_v34  ;;  %1455 = vmatpush.msra.mxu0 %v1239_v35  ;;  %v1327_v33 = vld [vmem:[#allocation8 + $0x348] sm:$0xff] }
  0xe2   :  { %1478 = vmatpush.msra.mxu1 %v1271_v36  ;;  %1498 = vmatpush.msra.mxu2 %v1309_v0 }
  0xe3   :  { %1521 = vmatpush.msra.mxu3 %v1341_v39  ;;  %1456 = vmatpush.msra.mxu0 %v1237_v42  ;;  %v1223_v39 = vld [vmem:[#allocation8 + $0x8] sm:$0xff] }
  0xe4   :  { %1479 = vmatpush.msra.mxu1 %v1269_v43  ;;  %1499 = vmatpush.msra.mxu2 %v1307_v46  ;;  %v1255_v43 = vld [vmem:[#allocation8 + $0x108] sm:$0xff] }
  0xe5   :  { %1522 = vmatpush.msra.mxu3 %v1339_v47  ;;  %1457 = vmatpush.msra.mxu0 %v1235_v48 }
  0xe6   :  { %1480 = vmatpush.msra.mxu1 %v1267_v49  ;;  %1500 = vmatpush.msra.mxu2 %v1305_v52  ;;  %v1291_v49 = vld [vmem:[#allocation8 + $0x228] sm:$0xff] }
  0xe7   :  { %v506_v26 = vpop.f32.mrf.mxu0  ;;  %v529_v27 = vpop.f32.mrf.mxu1  ;;  %1523 = vmatpush.msra.mxu3 %v1337_v53  ;;  %1458 = vmatpush.msra.mxu0 %v1233_v57 }
  0xe8   :  { %v507_v29 = vadd.f32 %v506_v26, %v465_v17  ;;  %v530_v30 = vadd.f32 %v529_v27, %v466_v18  ;;  %1481 = vmatpush.msra.mxu1 %v1265_v58  ;;  %1501 = vmatpush.msra.mxu2 %v1303_v61  ;;  %v1297_v26 = vld [vmem:[#allocation8 + $0x258] sm:$0xff] }
  0xe9   :  { %1524 = vmatpush.msra.mxu3 %v1335_v62  ;;  %1459 = vmatpush.msra.mxu0 %v1231_v2  ;;  %v1329_v27 = vld [vmem:[#allocation8 + $0x358] sm:$0xff] }
  0xea   :  { %v765_v37 = vsub.f32 0.0, %v507_v29  ;;  %v766_v38 = vsub.f32 0.0, %v530_v30  ;;  %1482 = vmatpush.msra.mxu1 %v1263_v3  ;;  %1502 = vmatpush.msra.mxu2 %v1301_v6  ;;  %v1225_v30 = vld [vmem:[#allocation8 + $0x18] sm:$0xff] }
  0xeb   :  { %1525 = vmatpush.msra.mxu3 %v1333_v7  ;;  %1460 = vmatpush.msra.mxu0 %v1229_v12  ;;  %v1321_v58 = vld [vmem:[#allocation8 + $0x318] sm:$0xff] }
  0xec   :  { %v789_v44 = vmul.f32 1.442695, %v765_v37  ;;  %v791_v45 = vmul.f32 1.442695, %v766_v38  ;;  %1483 = vmatpush.msra.mxu1 %v1261_v14 }
  0xed   :  { %1526 = vmatpush.msra.mxu3 %v1331_v19  ;;  %1461 = vmatpush.msra.mxu0 %v1227_v20 }
  0xee   :  { %3360 = vpow2.f32 %v789_v44  ;;  %v552_v50 = vpop.f32.mrf.mxu2  ;;  %v575_v51 = vpop.f32.mrf.mxu3  ;;  %1484 = vmatpush.msra.mxu1 %v1259_v25  ;;  %v1293_v44 = vld [vmem:[#allocation8 + $0x238] sm:$0xff] }
  0xef   :  { %3362 = vpow2.f32 %v791_v45  ;;  %v553_v13 = vadd.f32 %v552_v50, %v467_v40  ;;  %v576_v54 = vadd.f32 %v575_v51, %v468_v41  ;;  %v509_v55 = vpop.f32.mrf.mxu0  ;;  %v532_v56 = vpop.f32.mrf.mxu1  ;;  %1527 = vmatpush.msra.mxu3 %v1329_v27  ;;  %1462 = vmatpush.msra.mxu0 %v1225_v30  ;;  %v1325_v45 = vld [vmem:[#allocation8 + $0x338] sm:$0xff]  ;;  %v1323_v50 = vld [vmem:[#allocation8 + $0x328] sm:$0xff] }
  0xf0   :  { %v510_v59 = vadd.f32 %v509_v55, %v465_v17  ;;  %v533_v60 = vadd.f32 %v532_v56, %v466_v18  ;;  %v1299_v18 = vld [vmem:[#allocation8 + $0x268] sm:$0xff]  ;;  %1485 = vmatpush.msra.mxu1 %v1257_v31 }
  0xf1   :  { %v767_v63 = vsub.f32 0.0, %v553_v13  ;;  %v768_v1 = vsub.f32 0.0, %v576_v54  ;;  %1503 = vmatpush.msra.mxu2 %v1299_v18  ;;  %1528 = vmatpush.msra.mxu3 %v1327_v33  ;;  %v1289_v13 = vld [vmem:[#allocation8 + $0x218] sm:$0xff] }
  0xf2   :  { %v777_v4 = vsub.f32 0.0, %v510_v59  ;;  %v778_v5 = vsub.f32 0.0, %v533_v60  ;;  %1463 = vmatpush.msra.mxu0 %v1223_v39  ;;  %1486 = vmatpush.msra.mxu1 %v1255_v43 }
  0xf3   :  { %v793_v8 = vmul.f32 1.442695, %v767_v63  ;;  %v795_v10 = vmul.f32 1.442695, %v768_v1  ;;  %1504 = vmatpush.msra.mxu2 %v1297_v26  ;;  %1529 = vmatpush.msra.mxu3 %v1325_v45  ;;  %v1287_v63 = vld [vmem:[#allocation8 + $0x208] sm:$0xff] }
  0xf4   :  { %v3361_v11 = vpop.eup %3360  ;;  %v813_v17 = vmul.f32 1.442695, %v777_v4  ;;  %v815_v22 = vmul.f32 1.442695, %v778_v5  ;;  %v1319_v5 = vld [vmem:[#allocation8 + $0x308] sm:$0xff] }
  0xf5   :  { %v3363_v15 = vpop.eup %3362  ;;  %v4109_v16 = vadd.f32 1.0, %v3361_v11  ;;  %3364 = vpow2.f32 %v793_v8  ;;  %1505 = vmatpush.msra.mxu2 %v1295_v32  ;;  %1530 = vmatpush.msra.mxu3 %v1323_v50 }
  0xf6   :  { %v4111_v21 = vadd.f32 1.0, %v3363_v15  ;;  %3366 = vpow2.f32 %v795_v10  ;;  %v555_v23 = vpop.f32.mrf.mxu2  ;;  %v578_v24 = vpop.f32.mrf.mxu3 }
  0xf7   :  { %3368 = vrcp.f32 %v4109_v16  ;;  %v556_v28 = vadd.f32 %v555_v23, %v467_v40  ;;  %v579_v29 = vadd.f32 %v578_v24, %v468_v41  ;;  %v870_v38 = vand.u32 2147483647, %v4109_v16  ;;  %1506 = vmatpush.msra.mxu2 %v1293_v44  ;;  %1531 = vmatpush.msra.mxu3 %v1321_v58 }
  0xf8   :  { %3370 = vrcp.f32 %v4111_v21  ;;  %v872_v0 = vand.u32 2147483648, %v4109_v16  ;;  %vm866_vm0 = vweird.f32 %v4109_v16  ;;  %v885_v48 = vand.u32 2147483647, %v4111_v21 }
  0xf9   :  { %3372 = vpow2.f32 %v813_v17  ;;  %v779_v34 = vsub.f32 0.0, %v556_v28  ;;  %v780_v35 = vsub.f32 0.0, %v579_v29  ;;  %vm881_vm1 = vweird.f32 %v4111_v21  ;;  %1507 = vmatpush.msra.mxu2 %v1291_v49  ;;  %1532 = vmatpush.msra.mxu3 %v1319_v5 }
  0xfa   :  { %3374 = vpow2.f32 %v815_v22  ;;  %v887_v53 = vand.u32 2147483648, %v4111_v21  ;;  %vm4137_vm2 = vcmp.eq.f32.partialorder %v870_v38, 8.507059e+37  ;;  %v873_v56 = vor.u32 1.1754944e-38, %v872_v0  ;;  %v1570_v0 = vld [vmem:[%s5041_s5 + $0xd0] sm:$0xff] }
  0xfb   :  { %v3365_v36 = vpop.eup %3364  ;;  %v817_v37 = vmul.f32 1.442695, %v779_v34  ;;  %v819_v42 = vmul.f32 1.442695, %v780_v35  ;;  %vm4148_vm3 = vcmp.eq.f32.partialorder %v885_v48, 8.507059e+37  ;;  %1508 = vmatpush.msra.mxu2 %v1289_v13 }
  0xfc   :  { %v3367_v40 = vpop.eup %3366  ;;  %v4121_v41 = vadd.f32 1.0, %v3365_v36  ;;  %v888_v7 = vor.u32 1.1754944e-38, %v887_v53 }
  0xfd   :  { %v4123_v46 = vpop.eup %3368  ;;  %v4125_v47 = vadd.f32 1.0, %v3367_v40  ;;  %3376 = vpow2.f32 %v817_v37  ;;  %1509 = vmatpush.msra.mxu2 %v1287_v63 }
  0xfe   :  { %v4129_v51 = vpop.eup %3370  ;;  %3378 = vrcp.f32 %v4121_v41  ;;  %v862_v52 = vmul.f32 %v4123_v46, %v4109_v16  ;;  %v902_v62 = vand.u32 2147483648, %v4121_v41  ;;  %v900_v4 = vand.u32 2147483647, %v4121_v41 }
  0xff   :  { %v3373_v54 = vpop.eup %3372  ;;  %3380 = vrcp.f32 %v4125_v47  ;;  %v877_v57 = vmul.f32 %v4129_v51, %v4111_v21  ;;  %vm867_vm4 = vweird.f32 %v4123_v46  ;;  %vm882_vm5 = vweird.f32 %v4129_v51 }
 0x100   :  { %v3375_v59 = vpop.eup %3374  ;;  %v4143_v60 = vadd.f32 1.0, %v3373_v54  ;;  %3382 = vpow2.f32 %v819_v42  ;;  %v863_v61 = vsub.f32 1.0, %v862_v52  ;;  %vm896_vm6 = vweird.f32 %v4121_v41  ;;  %vm868_vm8 = vmor %vm866_vm0, %vm867_vm4 }
 0x101   :  { %v4146_v1 = vadd.f32 1.0, %v3375_v59  ;;  %v878_v2 = vsub.f32 1.0, %v877_v57  ;;  %v903_v15 = vor.u32 1.1754944e-38, %v902_v62  ;;  %vm911_vm7 = vweird.f32 %v4125_v47  ;;  %vm883_vm11 = vmor %vm881_vm1, %vm882_vm5 }
 0x102   :  { %3384 = vrcp.f32 %v4143_v60  ;;  %v864_v6 = vmul.f32 %v4123_v46, %v863_v61  ;;  %v915_v17 = vand.u32 2147483647, %v4125_v47  ;;  %vm4171_vm9 = vcmp.eq.f32.partialorder %v900_v4, 8.507059e+37 }
 0x103   :  { %v3377_v8 = vpop.eup %3376  ;;  %3386 = vrcp.f32 %v4146_v1  ;;  %v879_v10 = vmul.f32 %v4129_v51, %v878_v2  ;;  %v917_v23 = vand.u32 2147483648, %v4125_v47  ;;  %vm1046_vm10 = vweird.f32 %v4143_v60 }
 0x104   :  { %v3379_v11 = vpop.eup %3378  ;;  %v4160_v12 = vadd.f32 1.0, %v3377_v8  ;;  %v865_v14 = vadd.f32 %v4123_v46, %v864_v6  ;;  %v1050_v26 = vand.u32 2147483647, %v4143_v60  ;;  %vm4197_vm13 = vcmp.eq.f32.partialorder %v915_v17, 8.507059e+37 }
 0x105   :  { %v3381_v18 = vpop.eup %3380  ;;  %v880_v19 = vadd.f32 %v4129_v51, %v879_v10  ;;  %v892_v20 = vmul.f32 %v3379_v11, %v4121_v41  ;;  %vm897_vm12 = vweird.f32 %v3379_v11  ;;  %v918_v36 = vor.u32 1.1754944e-38, %v917_v23  ;;  %v1557_v23 = vld [vmem:[%s5041_s5 + $0x68] sm:$0xff] }
 0x106   :  { %v3383_v24 = vpop.eup %3382  ;;  %3388 = vrcp.f32 %v4160_v12  ;;  %v869_v25 = vsel %vm868_vm8, %v4123_v46, %v865_v14  ;;  %v907_v16 = vmul.f32 %v3381_v18, %v4125_v47  ;;  %vm912_vm14 = vweird.f32 %v3381_v18  ;;  %vm898_vm1 = vmor %vm896_vm6, %vm897_vm12 }
 0x107   :  { %v4185_v27 = vadd.f32 1.0, %v3383_v24  ;;  %v4189_v28 = vsel %vm4137_vm2, %v873_v56, %v869_v25  ;;  %v884_v29 = vsel %vm883_vm11, %v4129_v51, %v880_v19  ;;  %v893_v30 = vsub.f32 1.0, %v892_v20  ;;  %v1559_v19 = vld [vmem:[%s5041_s5 + $0x78] sm:$0xff]  ;;  %v1558_v20 = vld [vmem:[%s5041_s5 + $0x70] sm:$0xff]  ;;  %v1556_v24 = vld [vmem:[%s5041_s5 + $0x60] sm:$0xff] }
 0x108   :  { %v3385_v31 = vpop.eup %3384  ;;  %1372 = vmatmul.f32.vlgmr.msrb.gmra.mxu0 %v4189_v28  ;;  %v4195_v21 = vsel %vm4148_vm3, %v888_v7, %v884_v29  ;;  %v908_v32 = vsub.f32 1.0, %v907_v16  ;;  %vm4204_vm15 = vcmp.eq.f32.partialorder %v1050_v26, 8.507059e+37  ;;  %v1052_v43 = vand.u32 2147483648, %v4143_v60  ;;  %vm913_vm3 = vmor %vm911_vm7, %vm912_vm14  ;;  %v1555_v25 = vld [vmem:[%s5041_s5 + $0x58] sm:$0xff]  ;;  %v1554_v16 = vld [vmem:[%s5041_s5 + $0x50] sm:$0xff] }
 0x109   :  { %v3387_v34 = vpop.eup %3386  ;;  %3390 = vrcp.f32 %v4185_v27  ;;  %1395 = vmatmul.f32.vlgmr.msrb.gmra.mxu1 %v4195_v21  ;;  %v894_v35 = vmul.f32 %v3379_v11, %v893_v30  ;;  %v1042_v37 = vmul.f32 %v3385_v31, %v4143_v60  ;;  %vm1047_vm0 = vweird.f32 %v3385_v31  ;;  %1580 = vmatpush.msrb.mxu0 %v1559_v19  ;;  %v1553_v26 = vld [vmem:[%s5041_s5 + $0x48] sm:$0xff]  ;;  %v1575_v29 = vld [vmem:[%s5041_s5 + $0xf8] sm:$0xff]  ;;  %v1550_v30 = vld [vmem:[%s5041_s5 + $0x30] sm:$0xff] }
 0x10a   :  { %v909_v38 = vmul.f32 %v3381_v18, %v908_v32  ;;  %v1057_v39 = vmul.f32 %v3387_v34, %v4146_v1  ;;  %vm1061_vm2 = vweird.f32 %v4146_v1  ;;  %v1067_v48 = vand.u32 2147483648, %v4146_v1  ;;  %vm1048_vm5 = vmor %vm1046_vm10, %vm1047_vm0  ;;  %1603 = vmatpush.msrb.mxu1 %v1575_v29  ;;  %v1573_v32 = vld [vmem:[%s5041_s5 + $0xe8] sm:$0xff] }
 0x10b   :  { %v895_v40 = vadd.f32 %v3379_v11, %v894_v35  ;;  %v1043_v42 = vsub.f32 1.0, %v1042_v37  ;;  %vm1062_vm4 = vweird.f32 %v3387_v34  ;;  %v1065_v13 = vand.u32 2147483647, %v4146_v1  ;;  %1581 = vmatpush.msrb.mxu0 %v1558_v20  ;;  %v1572_v35 = vld [vmem:[%s5041_s5 + $0xe0] sm:$0xff]  ;;  %v1571_v37 = vld [vmem:[%s5041_s5 + $0xd8] sm:$0xff]  ;;  %v1887_v20 = vld [vmem:[#allocation8 + $0x550] sm:$0xff] }
 0x10c   :  { %v3389_v44 = vpop.eup %3388  ;;  %v910_v45 = vadd.f32 %v3381_v18, %v909_v38  ;;  %v1058_v46 = vsub.f32 1.0, %v1057_v39  ;;  %v1053_v57 = vor.u32 1.1754944e-38, %v1052_v43  ;;  %v1068_v59 = vor.u32 1.1754944e-38, %v1067_v48  ;;  %vm1063_vm6 = vmor %vm1061_vm2, %vm1062_vm4  ;;  %v1546_v38 = vld [vmem:[%s5041_s5 + $0x10] sm:$0xff]  ;;  %v1545_v43 = vld [vmem:[%s5041_s5 + $0x8] sm:$0xff] }
 0x10d   :  { %v899_v49 = vsel %vm898_vm1, %v3379_v11, %v895_v40  ;;  %v1044_v50 = vmul.f32 %v3385_v31, %v1043_v42  ;;  %v1072_v51 = vmul.f32 %v3389_v44, %v4160_v12  ;;  %v1082_v61 = vand.u32 2147483648, %v4160_v12  ;;  %1582 = vmatpush.msrb.mxu0 %v1557_v23  ;;  %v462_v42 = vld [vmem:[#allocation7 + $0x8] sm:$0xf]  ;;  %v1568_v48 = vld [vmem:[%s5041_s5 + $0xc0] sm:$0xff] }
 0x10e   :  { %v904_v52 = vsel %vm4171_vm9, %v903_v15, %v899_v49  ;;  %v914_v53 = vsel %vm913_vm3, %v3381_v18, %v910_v45  ;;  %v1059_v41 = vmul.f32 %v3387_v34, %v1058_v46  ;;  %vm1077_vm7 = vweird.f32 %v3389_v44  ;;  %v1544_v46 = vld [vmem:[%s5041_s5] sm:$0xff] }
 0x10f   :  { %v3391_v54 = vpop.eup %3390  ;;  %1418 = vmatmul.f32.vlgmr.msrb.gmra.mxu2 %v904_v52  ;;  %v919_v55 = vsel %vm4197_vm13, %v918_v36, %v914_v53  ;;  %v1045_v56 = vadd.f32 %v3385_v31, %v1044_v50  ;;  %v1073_v47 = vsub.f32 1.0, %v1072_v51  ;;  %v1080_v3 = vand.u32 2147483647, %v4160_v12  ;;  %1583 = vmatpush.msrb.mxu0 %v1556_v24  ;;  %v1547_v36 = vld [vmem:[%s5041_s5 + $0x18] sm:$0xff]  ;;  %v1907_v51 = vld [vmem:[#allocation8 + $0x5f0] sm:$0xff] }
 0x110   :  { %1441 = vmatmul.f32.vlgmr.msrb.gmra.mxu3 %v919_v55  ;;  %v1060_v58 = vadd.f32 %v3387_v34, %v1059_v41  ;;  %v1087_v62 = vmul.f32 %v3391_v54, %v4185_v27  ;;  %vm1066_vm8 = vcmp.eq.f32.partialorder %v1065_v13, 8.507059e+37  ;;  %vm1076_vm9 = vweird.f32 %v4160_v12  ;;  %v1905_v41 = vld [vmem:[#allocation8 + $0x5e0] sm:$0xff]  ;;  %v1566_v13 = vld [vmem:[%s5041_s5 + $0xb0] sm:$0xff] }
 0x111   :  { %v1049_v63 = vsel %vm1048_vm5, %v3385_v31, %v1045_v56  ;;  %v1074_v2 = vmul.f32 %v3389_v44, %v1073_v47  ;;  %vm1078_vm10 = vmor %vm1076_vm9, %vm1077_vm7  ;;  %v1083_v8 = vor.u32 1.1754944e-38, %v1082_v61  ;;  %vm1092_vm11 = vweird.f32 %v3391_v54  ;;  %1584 = vmatpush.msrb.mxu0 %v1555_v25  ;;  %v1574_v31 = vld [vmem:[%s5041_s5 + $0xf0] sm:$0xff]  ;;  %v1565_v56 = vld [vmem:[%s5041_s5 + $0xa8] sm:$0xff] }
 0x112   :  { %v1054_v4 = vsel %vm4204_vm15, %v1053_v57, %v1049_v63  ;;  %v1064_v60 = vsel %vm1063_vm6, %v3387_v34, %v1060_v58  ;;  %v1088_v7 = vsub.f32 1.0, %v1087_v62  ;;  %v1097_v1 = vand.u32 2147483648, %v4185_v27  ;;  %1604 = vmatpush.msrb.mxu1 %v1574_v31  ;;  %v1548_v34 = vld [vmem:[%s5041_s5 + $0x20] sm:$0xff]  ;;  %v1563_v61 = vld [vmem:[%s5041_s5 + $0x98] sm:$0xff] }
 0x113   :  { %1375 = vmatmul.f32.gmra.mxu0 %v1054_v4  ;;  %v1069_v5 = vsel %vm1066_vm8, %v1068_v59, %v1064_v60  ;;  %v1075_v6 = vadd.f32 %v3389_v44, %v1074_v2  ;;  %vm1081_vm12 = vcmp.eq.f32.partialorder %v1080_v3, 8.507059e+37  ;;  %v1095_v14 = vand.u32 2147483647, %v4185_v27  ;;  %v1901_v57 = vld [vmem:[#allocation8 + $0x5c0] sm:$0xff]  ;;  %v1899_v59 = vld [vmem:[#allocation8 + $0x5b0] sm:$0xff] }
 0x114   :  { %1398 = vmatmul.f32.gmra.mxu1 %v1069_v5  ;;  %v1089_v11 = vmul.f32 %v3391_v54, %v1088_v7  ;;  %vm1091_vm13 = vweird.f32 %v4185_v27  ;;  %v1098_v18 = vor.u32 1.1754944e-38, %v1097_v1  ;;  %1585 = vmatpush.msrb.mxu0 %v1554_v16  ;;  %v1552_v27 = vld [vmem:[%s5041_s5 + $0x40] sm:$0xff]  ;;  %v473_v45 = vperm.slane %v462_v42, 0  ;;  %v1895_v7 = vld [vmem:[#allocation8 + $0x590] sm:$0xff] }
 0x115   :  { %v1079_v10 = vsel %vm1078_vm10, %v3389_v44, %v1075_v6  ;;  %vm1093_vm14 = vmor %vm1091_vm13, %vm1092_vm11  ;;  %vm1096_vm15 = vcmp.eq.f32.partialorder %v1095_v14, 8.507059e+37  ;;  %1605 = vmatpush.msrb.mxu1 %v1573_v32  ;;  %v1569_v44 = vld [vmem:[%s5041_s5 + $0xc8] sm:$0xff]  ;;  %v1564_v47 = vld [vmem:[%s5041_s5 + $0xa0] sm:$0xff]  ;;  %v470_v19 = vperm.slane %v4091_v9, 5 }
 0x116   :  { %v1084_v15 = vsel %vm1081_vm12, %v1083_v8, %v1079_v10  ;;  %v1090_v17 = vadd.f32 %v3391_v54, %v1089_v11  ;;  %1586 = vmatpush.msrb.mxu0 %v1553_v26  ;;  %v1897_v63 = vld [vmem:[#allocation8 + $0x5a0] sm:$0xff]  ;;  %v1562_v6 = vld [vmem:[%s5041_s5 + $0x90] sm:$0xff]  ;;  %v1561_v8 = vld [vmem:[%s5041_s5 + $0x88] sm:$0xff] }
 0x117   :  { %1421 = vmatmul.f32.gmra.mxu2 %v1084_v15  ;;  %1606 = vmatpush.msrb.mxu1 %v1572_v35  ;;  %v1893_v1 = vld [vmem:[#allocation8 + $0x580] sm:$0xff]  ;;  %v1891_v11 = vld [vmem:[#allocation8 + $0x570] sm:$0xff] }
 0x118   :  { %v1094_v12 = vsel %vm1093_vm14, %v3391_v54, %v1090_v17  ;;  %1587 = vmatpush.msrb.mxu0 %v1552_v27  ;;  %v476_v54 = vperm.slane %v462_v42, 3  ;;  %v1560_v10 = vld [vmem:[%s5041_s5 + $0x80] sm:$0xff]  ;;  %v1939_v14 = vld [vmem:[#allocation8 + $0x6f0] sm:$0xff] }
 0x119   :  { %v1099_v22 = vsel %vm1096_vm15, %v1098_v18, %v1094_v12  ;;  %1607 = vmatpush.msrb.mxu1 %v1571_v37  ;;  %v1937_v17 = vld [vmem:[#allocation8 + $0x6e0] sm:$0xff]  ;;  %v1883_v26 = vld [vmem:[#allocation8 + $0x530] sm:$0xff] }
 0x11a   :  { %1444 = vmatmul.f32.gmra.mxu3 %v1099_v22  ;;  %v1885_v23 = vld [vmem:[#allocation8 + $0x540] sm:$0xff]  ;;  %v1931_v27 = vld [vmem:[#allocation8 + $0x6b0] sm:$0xff] }
 0x11b   :  { %1464 = vmatmul.f32.vlgmr.msra.gmra.mxu0 %v4189_v28  ;;  %v1551_v28 = vld [vmem:[%s5041_s5 + $0x38] sm:$0xff]  ;;  %1608 = vmatpush.msrb.mxu1 %v1570_v0  ;;  %v1927_v32 = vld [vmem:[#allocation8 + $0x690] sm:$0xff] }
 0x11c   :  { %1487 = vmatmul.f32.vlgmr.msra.gmra.mxu1 %v4195_v21  ;;  %1588 = vmatpush.msrb.mxu0 %v1551_v28  ;;  %v1549_v21 = vld [vmem:[%s5041_s5 + $0x28] sm:$0xff]  ;;  %v1933_v24 = vld [vmem:[#allocation8 + $0x6c0] sm:$0xff] }
 0x11d   :  { %1609 = vmatpush.msrb.mxu1 %v1569_v44  ;;  %v1881_v28 = vld [vmem:[#allocation8 + $0x520] sm:$0xff] }
 0x11e   :  { %1589 = vmatpush.msrb.mxu0 %v1550_v30  ;;  %v1929_v30 = vld [vmem:[#allocation8 + $0x6a0] sm:$0xff] }
 0x11f   :  { %1510 = vmatmul.f32.vlgmr.msra.gmra.mxu2 %v904_v52  ;;  %1610 = vmatpush.msrb.mxu1 %v1568_v48  ;;  %v1567_v52 = vld [vmem:[%s5041_s5 + $0xb8] sm:$0xff] }
 0x120   :  { %v4282_v33 = vpop.f32.mrf.mxu0  ;;  %1590 = vmatpush.msrb.mxu0 %v1549_v21  ;;  %v1879_v21 = vld [vmem:[#allocation8 + $0x510] sm:$0xff]  ;;  %v1925_v35 = vld [vmem:[#allocation8 + $0x680] sm:$0xff] }
 0x121   :  { %1611 = vmatpush.msrb.mxu1 %v1567_v52  ;;  %v4360_v52 = vld [vmem:[#allocation10] sm:$0x3] }
 0x122   :  { %1533 = vmatmul.f32.vlgmr.msra.gmra.mxu3 %v919_v55  ;;  %1591 = vmatpush.msrb.mxu0 %v1548_v34  ;;  %v1903_v55 = vld [vmem:[#allocation8 + $0x5d0] sm:$0xff]  ;;  %v1877_v34 = vld [vmem:[#allocation8 + $0x500] sm:$0xff] }
 0x123   :  { %1467 = vmatmul.f32.gmra.mxu0 %v1054_v4  ;;  %1612 = vmatpush.msrb.mxu1 %v1566_v13 }
 0x124   :  { %1490 = vmatmul.f32.gmra.mxu1 %v1069_v5  ;;  %1592 = vmatpush.msrb.mxu0 %v1547_v36  ;;  %v621_v5 = vpop.f32.mrf.mxu1  ;;  %v644_v18 = vpop.f32.mrf.mxu2 }
 0x125   :  { %1613 = vmatpush.msrb.mxu1 %v1565_v56  ;;  %v622_v25 = vadd.f32 %v621_v5, %v470_v19 }
 0x126   :  { %1593 = vmatpush.msrb.mxu0 %v1546_v38  ;;  %v471_v38 = vperm.slane %v4091_v9, 6 }
 0x127   :  { %1513 = vmatmul.f32.gmra.mxu2 %v1084_v15  ;;  %1614 = vmatpush.msrb.mxu1 %v1564_v47  ;;  %v1889_v15 = vld [vmem:[#allocation8 + $0x560] sm:$0xff]  ;;  %v770_v31 = vsub.f32 0.0, %v622_v25 }
 0x128   :  { %v4302_v39 = vpop.f32.mrf.mxu3  ;;  %1594 = vmatpush.msrb.mxu0 %v1545_v43  ;;  %v1923_v43 = vld [vmem:[#allocation8 + $0x670] sm:$0xff]  ;;  %v645_v48 = vadd.f32 %v644_v18, %v471_v38 }
 0x129   :  { %1615 = vmatpush.msrb.mxu1 %v1563_v61  ;;  %v799_v36 = vmul.f32 1.442695, %v770_v31 }
 0x12a   :  { %1536 = vmatmul.f32.gmra.mxu3 %v1099_v22  ;;  %1595 = vmatpush.msrb.mxu0 %v1544_v46  ;;  %v1935_v22 = vld [vmem:[#allocation8 + $0x6d0] sm:$0xff]  ;;  %v771_v9 = vsub.f32 0.0, %v645_v48 }
 0x12b   :  { %1616 = vmatpush.msrb.mxu1 %v1562_v6  ;;  %3392 = vpow2.f32 %v799_v36  ;;  %v1919_v46 = vld [vmem:[#allocation8 + $0x650] sm:$0xff]  ;;  %v1902_v36 = vld [vmem:[#allocation8 + $0x5c8] sm:$0xff] }
 0x12c   :  { %2003 = vmatpush.msra.mxu0 %v1907_v51  ;;  %v1917_v51 = vld [vmem:[#allocation8 + $0x640] sm:$0xff]  ;;  %v801_v61 = vmul.f32 1.442695, %v771_v9 }
 0x12d   :  { %1617 = vmatpush.msrb.mxu1 %v1561_v8 }
 0x12e   :  { %2004 = vmatpush.msra.mxu0 %v1905_v41 }
 0x12f   :  { %1618 = vmatpush.msrb.mxu1 %v1560_v10 }
 0x130   :  { %2005 = vmatpush.msra.mxu0 %v1903_v55  ;;  %v1915_v55 = vld [vmem:[#allocation8 + $0x630] sm:$0xff] }
 0x131   :  { %2026 = vmatpush.msra.mxu1 %v1939_v14  ;;  %v3393_v13 = vpop.eup %3392 }
 0x132   :  { %2006 = vmatpush.msra.mxu0 %v1901_v57  ;;  %v4363_v56 = vadd.f32 1.0, %v3393_v13 }
 0x133   :  { %2027 = vmatpush.msra.mxu1 %v1937_v17 }
 0x134   :  { %2007 = vmatpush.msra.mxu0 %v1899_v59  ;;  %v1911_v59 = vld [vmem:[#allocation8 + $0x610] sm:$0xff]  ;;  %vm941_vm0 = vweird.f32 %v4363_v56 }
 0x135   :  { %2028 = vmatpush.msra.mxu1 %v1935_v22 }
 0x136   :  { %2008 = vmatpush.msra.mxu0 %v1897_v63 }
 0x137   :  { %2029 = vmatpush.msra.mxu1 %v1933_v24 }
 0x138   :  { %v4304_v40 = vpop.f32.mrf.mxu0  ;;  %2009 = vmatpush.msra.mxu0 %v1895_v7 }
 0x139   :  { %v624_v12 = vpop.f32.mrf.mxu1  ;;  %2030 = vmatpush.msra.mxu1 %v1931_v27  ;;  %v1353_v27 = vperm.slane %v4360_v52, 1 }
 0x13a   :  { %2010 = vmatpush.msra.mxu0 %v1893_v1  ;;  %v625_v37 = vadd.f32 %v624_v12, %v470_v19 }
 0x13b   :  { %2031 = vmatpush.msra.mxu1 %v1929_v30 }
 0x13c   :  { %2011 = vmatpush.msra.mxu0 %v1891_v11  ;;  %v782_v42 = vsub.f32 0.0, %v625_v37 }
 0x13d   :  { %2032 = vmatpush.msra.mxu1 %v1927_v32 }
 0x13e   :  { %2012 = vmatpush.msra.mxu0 %v1889_v15  ;;  %v647_v16 = vpop.f32.mrf.mxu2 }
 0x13f   :  { %v4318_v49 = vpop.f32.mrf.mxu3  ;;  %2033 = vmatpush.msra.mxu1 %v1925_v35  ;;  %v648_v63 = vadd.f32 %v647_v16, %v471_v38 }
 0x140   :  { %v690_v50 = vpop.f32.mrf.mxu0  ;;  %2013 = vmatpush.msra.mxu0 %v1887_v20 }
 0x141   :  { %v4323_v53 = vadd.f32 %v690_v50, %v473_v45  ;;  %v4353_v29 = vpop.f32.mrf.mxu1  ;;  %2034 = vmatpush.msra.mxu1 %v1923_v43  ;;  %v823_v50 = vmul.f32 1.442695, %v782_v42  ;;  %v783_v7 = vsub.f32 0.0, %v648_v63 }
 0x142   :  { %2014 = vmatpush.msra.mxu0 %v1885_v23  ;;  %v1908_v23 = vld [vmem:[#allocation8 + $0x5f8] sm:$0xff] }
 0x143   :  { %3394 = vpow2.f32 %v823_v50  ;;  %v825_v18 = vmul.f32 1.442695, %v783_v7 }
 0x144   :  { %2015 = vmatpush.msra.mxu0 %v1883_v26  ;;  %3396 = vrcp.f32 %v4363_v56 }
 0x145   :  { %3398 = vpow2.f32 %v801_v61  ;;  %v945_v61 = vand.u32 2147483647, %v4363_v56 }
 0x146   :  { %2016 = vmatpush.msra.mxu0 %v1881_v28  ;;  %v4356_v0 = vpop.f32.mrf.mxu2  ;;  %v1906_v28 = vld [vmem:[#allocation8 + $0x5e8] sm:$0xff] }
 0x147   :  { %v759_v58 = vpop.f32.mrf.mxu3  ;;  %vm946_vm3 = vcmp.eq.f32.partialorder %v945_v61, 8.507059e+37  ;;  %v1928_v61 = vld [vmem:[#allocation8 + $0x698] sm:$0xff] }
 0x148   :  { %v4337_v62 = vadd.f32 %v759_v58, %v476_v54  ;;  %v693_v2 = vpop.f32.mrf.mxu0  ;;  %2017 = vmatpush.msra.mxu0 %v1879_v21  ;;  %v1913_v58 = vld [vmem:[#allocation8 + $0x620] sm:$0xff]  ;;  %v1904_v21 = vld [vmem:[#allocation8 + $0x5d8] sm:$0xff] }
 0x149   :  { %v4339_v3 = vadd.f32 %v693_v2, %v473_v45  ;;  %v4358_v44 = vpop.f32.mrf.mxu1  ;;  %v1921_v45 = vld [vmem:[#allocation8 + $0x660] sm:$0xff]  ;;  %v3395_v5 = vpop.eup %3394 }
 0x14a   :  { %2018 = vmatpush.msra.mxu0 %v1877_v34  ;;  %2035 = vmatpush.msra.mxu1 %v1921_v45  ;;  %v4368_v1 = vadd.f32 1.0, %v3395_v5  ;;  %v4370_v14 = vpop.eup %3396  ;;  %v1900_v45 = vld [vmem:[#allocation8 + $0x5b8] sm:$0xff]  ;;  %v1894_v5 = vld [vmem:[#allocation8 + $0x588] sm:$0xff] }
 0x14b   :  { %v3399_v20 = vpop.eup %3398  ;;  %v937_v24 = vmul.f32 %v4370_v14, %v4363_v56  ;;  %vm942_vm1 = vweird.f32 %v4370_v14 }
 0x14c   :  { %2036 = vmatpush.msra.mxu1 %v1919_v46  ;;  %3400 = vrcp.f32 %v4368_v1  ;;  %v4375_v16 = vadd.f32 1.0, %v3399_v20  ;;  %vm4395_vm2 = vmor %vm941_vm0, %vm942_vm1  ;;  %v1890_v20 = vld [vmem:[#allocation8 + $0x568] sm:$0xff]  ;;  %vm1121_vm4 = vweird.f32 %v4368_v1  ;;  %vm1648_vm0 = vcmask 523264  }
 0x14d   :  { %3402 = vpow2.f32 %v825_v18  ;;  %v938_v32 = vsub.f32 1.0, %v937_v24 }
 0x14e   :  { %2037 = vmatpush.msra.mxu1 %v1917_v51  ;;  %v4365_v57 = vpop.f32.mrf.mxu2  ;;  %3404 = vrcp.f32 %v4375_v16  ;;  %vm956_vm8 = vweird.f32 %v4375_v16 }
 0x14f   :  { %v762_v4 = vpop.f32.mrf.mxu3  ;;  %v939_v46 = vmul.f32 %v4370_v14, %v938_v32  ;;  %v1936_v32 = vld [vmem:[#allocation8 + $0x6d8] sm:$0xff] }
 0x150   :  { %v4341_v60 = vadd.f32 %v762_v4, %v476_v54  ;;  %v1352_v54 = vperm.slane %v4360_v52, 0  ;;  %2038 = vmatpush.msra.mxu1 %v1915_v55  ;;  %v1909_v4 = vld [vmem:[#allocation8 + $0x600] sm:$0xff]  ;;  %v1898_v52 = vld [vmem:[#allocation8 + $0x5a8] sm:$0xff] }
 0x152   :  { %2039 = vmatpush.msra.mxu1 %v1913_v58  ;;  %v4378_v34 = vpop.eup %3400  ;;  %v1896_v58 = vld [vmem:[#allocation8 + $0x598] sm:$0xff] }
 0x153   :  { %v3403_v42 = vpop.eup %3402  ;;  %v1117_v48 = vmul.f32 %v4378_v34, %v4368_v1  ;;  %vm1122_vm5 = vweird.f32 %v4378_v34 }
 0x154   :  { %2040 = vmatpush.msra.mxu1 %v1911_v59  ;;  %v4389_v55 = vpop.eup %3404  ;;  %v940_v59 = vadd.f32 %v4370_v14, %v939_v46  ;;  %vm4420_vm6 = vmor %vm1121_vm4, %vm1122_vm5  ;;  %vm1698_vm4 = vcmask 130048  }
 0x155   :  { %v1118_v63 = vsub.f32 1.0, %v1117_v48  ;;  %vm957_vm9 = vweird.f32 %v4389_v55 }
 0x156   :  { %2041 = vmatpush.msra.mxu1 %v1909_v4  ;;  %vm4437_vm10 = vmor %vm956_vm8, %vm957_vm9 }
 0x185   :  { %v1373_v41 = vpop.f32.mrf.mxu0 }
 0x186   :  { %v1396_v47 = vpop.f32.mrf.mxu1  ;;  %v1374_v2 = vadd.f32 %v1373_v41, %v1352_v54  ;;  %v4386_v41 = vadd.f32 1.0, %v3403_v42 }
 0x188   :  { %v1397_v8 = vadd.f32 %v1396_v47, %v1374_v2  ;;  %3406 = vrcp.f32 %v4386_v41  ;;  %vm1136_vm12 = vweird.f32 %v4386_v41 }
 0x190   :  { %v1376_v6 = vpop.f32.mrf.mxu0 }
 0x191   :  { %v1399_v15 = vpop.f32.mrf.mxu1  ;;  %v1377_v12 = vadd.f32 %v1376_v6, %v1352_v54  ;;  %v947_v54 = vand.u32 2147483648, %v4363_v56  ;;  %v1892_v56 = vld [vmem:[#allocation8 + $0x578] sm:$0xff] }
 0x192   :  { %v1419_v10 = vpop.f32.mrf.mxu2 }
 0x193   :  { %v1420_v11 = vadd.f32 %v1419_v10, %v1397_v8  ;;  %v1442_v17 = vpop.f32.mrf.mxu3  ;;  %v1400_v26 = vadd.f32 %v1399_v15, %v1377_v12  ;;  %v948_v7 = vor.u32 1.1754944e-38, %v947_v54  ;;  %v952_v8 = vmul.f32 %v4389_v55, %v4375_v16 }
 0x194   :  { %v1119_v15 = vmul.f32 %v4378_v34, %v1118_v63  ;;  %v1878_v63 = vld [vmem:[#allocation8 + $0x508] sm:$0xff] }
 0x195   :  { %v1443_v19 = vadd.f32 %v1442_v17, %v1420_v11  ;;  %v944_v11 = vsel %vm4395_vm2, %v4370_v14, %v940_v59  ;;  %v1127_v14 = vand.u32 2147483648, %v4368_v1  ;;  %v953_v24 = vsub.f32 1.0, %v952_v8  ;;  %v1865_v59 = vld [vmem:[#allocation8 + $0x4a0] sm:$0xff] }
 0x196   :  { %v1142_v8 = vand.u32 2147483648, %v4386_v41 }
 0x197   :  { %v1540_v22 = vmax.f32 %v1443_v19, 0.0  ;;  %v1940_v19 = vld [vmem:[#allocation8 + $0x6f8] sm:$0xff] }
 0x198   :  { %v1465_v25 = vpop.f32.mrf.mxu0 }
 0x199   :  { %1596 = vmatmul.f32.vlgmr.msrb.gmra.mxu0 %v1540_v22  ;;  %v1466_v35 = vadd.f32 %v1465_v25, %v1353_v27  ;;  %v1488_v37 = vpop.f32.mrf.mxu1  ;;  %v4408_v22 = vsel %vm946_vm3, %v948_v7, %v944_v11  ;;  %v1140_v11 = vand.u32 2147483647, %v4386_v41 }
 0x19a   :  { %v1422_v30 = vpop.f32.mrf.mxu2  ;;  %2095 = vmatpush.msrb.mxu0 %v1908_v23 }
 0x19b   :  { %v1423_v31 = vadd.f32 %v1422_v30, %v1400_v26  ;;  %v1489_v50 = vadd.f32 %v1488_v37, %v1466_v35  ;;  %v1938_v26 = vld [vmem:[#allocation8 + $0x6e8] sm:$0xff]  ;;  %v1125_v30 = vand.u32 2147483647, %v4368_v1  ;;  %v1128_v37 = vor.u32 1.1754944e-38, %v1127_v14  ;;  %v1884_v1 = vld [vmem:[#allocation8 + $0x538] sm:$0xff] }
 0x19c   :  { %2096 = vmatpush.msrb.mxu0 %v1906_v28  ;;  %v1120_v28 = vadd.f32 %v4378_v34, %v1119_v15  ;;  %v1886_v35 = vld [vmem:[#allocation8 + $0x548] sm:$0xff]  ;;  %v1143_v15 = vor.u32 1.1754944e-38, %v1142_v8  ;;  %vm1141_vm15 = vcmp.eq.f32.partialorder %v1140_v11, 8.507059e+37  ;;  %v1642_v14 = vld [vmem:[%s5043_s7 + $0x30] sm:$0xff]  ;;  %v1857_v8 = vld [vmem:[#allocation8 + $0x460] sm:$0xff] }
 0x19d   :  { %v1445_v38 = vpop.f32.mrf.mxu3  ;;  %vm1126_vm7 = vcmp.eq.f32.partialorder %v1125_v30, 8.507059e+37  ;;  %v1636_v30 = vld [vmem:[%s5043_s7] sm:$0xff] }
 0x19e   :  { %2097 = vmatpush.msrb.mxu0 %v1904_v21  ;;  %v1446_v43 = vadd.f32 %v1445_v38, %v1423_v31  ;;  %v4414_v31 = vpop.eup %3406  ;;  %v954_v38 = vmul.f32 %v4389_v55, %v953_v24  ;;  %v1641_v24 = vld [vmem:[%s5043_s7 + $0x28] sm:$0xff]  ;;  %v3348_v21 = vld [vmem:[#allocation11] ss:$0 sm:$0xff] }
 0x19f   :  { %v1132_v46 = vmul.f32 %v4414_v31, %v4386_v41  ;;  %vm1137_vm13 = vweird.f32 %v4414_v31  ;;  %v1910_v41 = vld [vmem:[#allocation8 + $0x608] sm:$0xff]  ;;  %v1853_v11 = vld [vmem:[#allocation8 + $0x440] sm:$0xff] }
 0x1a0   :  { %2098 = vmatpush.msrb.mxu0 %v1902_v36  ;;  %v1542_v51 = vmax.f32 %v1446_v43, 0.0  ;;  %v1468_v13 = vpop.f32.mrf.mxu0  ;;  %v1934_v43 = vld [vmem:[#allocation8 + $0x6c8] sm:$0xff]  ;;  %v955_v54 = vadd.f32 %v4389_v55, %v954_v38  ;;  %vm1138_vm14 = vmor %vm1136_vm12, %vm1137_vm13 }
 0x1a1   :  { %v1469_v4 = vadd.f32 %v1468_v13, %v1353_v27  ;;  %v1491_v17 = vpop.f32.mrf.mxu1  ;;  %v1888_v27 = vld [vmem:[#allocation8 + $0x558] sm:$0xff]  ;;  %v962_v13 = vand.u32 2147483648, %v4375_v16 }
 0x1a2   :  { %v1511_v9 = vpop.f32.mrf.mxu2  ;;  %2099 = vmatpush.msrb.mxu0 %v1900_v45  ;;  %v1124_v45 = vsel %vm4420_vm6, %v4378_v34, %v1120_v28  ;;  %v1930_v34 = vld [vmem:[#allocation8 + $0x6a8] sm:$0xff] }
 0x1a3   :  { %1599 = vmatmul.f32.gmra.mxu0 %v1542_v51  ;;  %v1512_v47 = vadd.f32 %v1511_v9, %v1489_v50  ;;  %v1492_v18 = vadd.f32 %v1491_v17, %v1469_v4  ;;  %v1932_v50 = vld [vmem:[#allocation8 + $0x6b8] sm:$0xff]  ;;  %v1882_v51 = vld [vmem:[#allocation8 + $0x528] sm:$0xff]  ;;  %v963_v2 = vor.u32 1.1754944e-38, %v962_v13 }
 0x1a4   :  { %2100 = vmatpush.msrb.mxu0 %v1898_v52  ;;  %v1129_v52 = vsel %vm1126_vm7, %v1128_v37, %v1124_v45  ;;  %v1880_v9 = vld [vmem:[#allocation8 + $0x518] sm:$0xff]  ;;  %v1926_v4 = vld [vmem:[#allocation8 + $0x688] sm:$0xff] }
 0x1a5   :  { %v1534_v6 = vpop.f32.mrf.mxu3  ;;  %v1918_v17 = vld [vmem:[#allocation8 + $0x648] sm:$0xff]  ;;  %v1693_v45 = vld [vmem:[#allocation14 + $0x8] sm:$0xff] }
 0x1a6   :  { %2101 = vmatpush.msrb.mxu0 %v1896_v58  ;;  %v1535_v10 = vadd.f32 %v1534_v6, %v1512_v47  ;;  %v960_v47 = vand.u32 2147483647, %v4375_v16  ;;  %v1133_v58 = vsub.f32 1.0, %v1132_v46  ;;  %v1924_v16 = vld [vmem:[#allocation8 + $0x678] sm:$0xff]  ;;  %v1637_v28 = vld [vmem:[%s5043_s7 + $0x8] sm:$0xff]  ;;  %1719 = vmatpush.msrb.mxu3 %v1693_v45 }
 0x1a7   :  { %v1874_v45 = vld [vmem:[#allocation8 + $0x4e8] sm:$0xff] }
 0x1a8   :  { %2102 = vmatpush.msrb.mxu0 %v1894_v5  ;;  %v1541_v12 = vmax.f32 %v1535_v10, 0.0  ;;  %v959_v5 = vsel %vm4437_vm10, %v4389_v55, %v955_v54  ;;  %vm961_vm11 = vcmp.eq.f32.partialorder %v960_v47, 8.507059e+37  ;;  %v1134_v6 = vmul.f32 %v4414_v31, %v1133_v58  ;;  %v1922_v10 = vld [vmem:[#allocation8 + $0x668] sm:$0xff]  ;;  %v1869_v54 = vld [vmem:[#allocation8 + $0x4c0] sm:$0xff]  ;;  %v1867_v47 = vld [vmem:[#allocation8 + $0x4b0] sm:$0xff] }
 0x1a9   :  { %v964_v7 = vsel %vm961_vm11, %v963_v2, %v959_v5  ;;  %v4478_v2 = vld [vmem:[#allocation7] sm:$0xff] }
 0x1aa   :  { %v1514_v23 = vpop.f32.mrf.mxu2  ;;  %2103 = vmatpush.msrb.mxu0 %v1892_v56  ;;  %1619 = vmatmul.f32.vlgmr.msrb.gmra.mxu1 %v1541_v12  ;;  %v1135_v55 = vadd.f32 %v4414_v31, %v1134_v6  ;;  %v1920_v56 = vld [vmem:[#allocation8 + $0x658] sm:$0xff]  ;;  %v1863_v5 = vld [vmem:[#allocation8 + $0x490] sm:$0xff]  ;;  %v1861_v6 = vld [vmem:[#allocation8 + $0x480] sm:$0xff] }
 0x1ab   :  { %2019 = vmatmul.f32.vlgmr.msra.gmra.mxu0 %v4408_v22  ;;  %v1515_v25 = vadd.f32 %v1514_v23, %v1492_v18  ;;  %2118 = vmatpush.msrb.mxu1 %v1940_v19  ;;  %v1916_v12 = vld [vmem:[#allocation8 + $0x638] sm:$0xff] }
 0x1ac   :  { %2104 = vmatpush.msrb.mxu0 %v1890_v20  ;;  %v1139_v18 = vsel %vm1138_vm14, %v4414_v31, %v1135_v55  ;;  %v1914_v20 = vld [vmem:[#allocation8 + $0x628] sm:$0xff]  ;;  %v1643_v23 = vld [vmem:[%s5043_s7 + $0x38] sm:$0xff]  ;;  %v1855_v55 = vld [vmem:[#allocation8 + $0x450] sm:$0xff] }
 0x1ad   :  { %v1537_v36 = vpop.f32.mrf.mxu3  ;;  %2119 = vmatpush.msrb.mxu1 %v1938_v26  ;;  %v1144_v19 = vsel %vm1141_vm15, %v1143_v15, %v1139_v18  ;;  %1663 = vmatpush.msrb.mxu2 %v1643_v23  ;;  %v1639_v26 = vld [vmem:[%s5043_s7 + $0x18] sm:$0xff] }
 0x1ae   :  { %2105 = vmatpush.msrb.mxu0 %v1888_v27  ;;  %v1538_v42 = vadd.f32 %v1537_v36, %v1515_v25  ;;  %v1640_v25 = vld [vmem:[%s5043_s7 + $0x20] sm:$0xff]  ;;  %v1638_v27 = vld [vmem:[%s5043_s7 + $0x10] sm:$0xff] }
 0x1af   :  { %2120 = vmatpush.msrb.mxu1 %v1936_v32  ;;  %1664 = vmatpush.msrb.mxu2 %v1642_v14  ;;  %v1849_v18 = vld [vmem:[#allocation8 + $0x420] sm:$0xff] }
 0x1b0   :  { %2106 = vmatpush.msrb.mxu0 %v1886_v35  ;;  %v1543_v48 = vmax.f32 %v1538_v42, 0.0 }
 0x1b1   :  { %2121 = vmatpush.msrb.mxu1 %v1934_v43  ;;  %1665 = vmatpush.msrb.mxu2 %v1641_v24 }
 0x1b2   :  { %2107 = vmatpush.msrb.mxu0 %v1884_v1  ;;  %1622 = vmatmul.f32.gmra.mxu1 %v1543_v48  ;;  %v1692_v1 = vld [vmem:[#allocation14] sm:$0xff] }
 0x1b3   :  { %2022 = vmatmul.f32.gmra.mxu0 %v1129_v52  ;;  %2122 = vmatpush.msrb.mxu1 %v1932_v50  ;;  %v1875_v48 = vld [vmem:[#allocation8 + $0x4f0] sm:$0xff] }
 0x1b4   :  { %2108 = vmatpush.msrb.mxu0 %v1882_v51  ;;  %1666 = vmatpush.msrb.mxu2 %v1640_v25 }
 0x1b5   :  { %2123 = vmatpush.msrb.mxu1 %v1930_v34  ;;  %1720 = vmatpush.msrb.mxu3 %v1692_v1  ;;  %v1871_v34 = vld [vmem:[#allocation8 + $0x4d0] sm:$0xff] }
 0x1b6   :  { %2109 = vmatpush.msrb.mxu0 %v1880_v9  ;;  %1667 = vmatpush.msrb.mxu2 %v1639_v26 }
 0x1b7   :  { %2124 = vmatpush.msrb.mxu1 %v1928_v61  ;;  %1980 = vmatpush.msra.mxu3 %v1875_v48 }
 0x1b8   :  { %2110 = vmatpush.msrb.mxu0 %v1878_v63  ;;  %1668 = vmatpush.msrb.mxu2 %v1638_v27 }
 0x1b9   :  { %2125 = vmatpush.msrb.mxu1 %v1926_v4  ;;  %v469_v4 = vperm.slane %v4478_v2, 4 }
 0x1ba   :  { %2042 = vmatmul.f32.vlgmr.msra.gmra.mxu1 %v964_v7  ;;  %1669 = vmatpush.msrb.mxu2 %v1637_v28 }
 0x1bb   :  { %2111 = vmatmul.f32.vlgmr.msrb.gmra.mxu0 %v4408_v22  ;;  %2126 = vmatpush.msrb.mxu1 %v1924_v16  ;;  %v1912_v22 = vld [vmem:[#allocation8 + $0x618] sm:$0xff]  ;;  %v599_v16 = vadd.f32 %v4282_v33, %v469_v4  ;;  %v602_v15 = vadd.f32 %v4304_v40, %v469_v4  ;;  %v1845_v33 = vld [vmem:[#allocation8 + $0x400] sm:$0xff] }
 0x1bc   :  { %1670 = vmatpush.msrb.mxu2 %v1636_v30 }
 0x1bd   :  { %2127 = vmatpush.msrb.mxu1 %v1922_v10  ;;  %v769_v10 = vsub.f32 0.0, %v599_v16  ;;  %v1862_v16 = vld [vmem:[#allocation8 + $0x488] sm:$0xff] }
 0x1bf   :  { %2128 = vmatpush.msrb.mxu1 %v1920_v56  ;;  %v797_v56 = vmul.f32 1.442695, %v769_v10  ;;  %v1860_v10 = vld [vmem:[#allocation8 + $0x478] sm:$0xff] }
 0x1c1   :  { %2129 = vmatpush.msrb.mxu1 %v1918_v17  ;;  %v1851_v17 = vld [vmem:[#allocation8 + $0x430] sm:$0xff] }
 0x1c2   :  { %2045 = vmatmul.f32.gmra.mxu1 %v1144_v19 }
 0x1c3   :  { %2114 = vmatmul.f32.gmra.mxu0 %v1129_v52  ;;  %2130 = vmatpush.msrb.mxu1 %v1916_v12  ;;  %v1873_v52 = vld [vmem:[#allocation8 + $0x4e0] sm:$0xff]  ;;  %v1847_v12 = vld [vmem:[#allocation8 + $0x410] sm:$0xff] }
 0x1c4   :  { %1981 = vmatpush.msra.mxu3 %v1873_v52  ;;  %v1870_v52 = vld [vmem:[#allocation8 + $0x4c8] sm:$0xff] }
 0x1c5   :  { %2131 = vmatpush.msrb.mxu1 %v1914_v20 }
 0x1c6   :  { %1982 = vmatpush.msra.mxu3 %v1871_v34 }
 0x1c7   :  { %2132 = vmatpush.msrb.mxu1 %v1912_v22  ;;  %v3349_v22 = vld [vmem:[#allocation13] ss:$0 sm:$0xff] }
 0x1c8   :  { %1983 = vmatpush.msra.mxu3 %v1869_v54 }
 0x1c9   :  { %2133 = vmatpush.msrb.mxu1 %v1910_v41 }
 0x1ca   :  { %2134 = vmatmul.f32.vlgmr.msrb.gmra.mxu1 %v964_v7  ;;  %1984 = vmatpush.msra.mxu3 %v1867_v47  ;;  %v1859_v7 = vld [vmem:[#allocation8 + $0x470] sm:$0xff]  ;;  %v1868_v47 = vld [vmem:[#allocation8 + $0x4b8] sm:$0xff] }
 0x1cc   :  { %1985 = vmatpush.msra.mxu3 %v1865_v59  ;;  %v1866_v59 = vld [vmem:[#allocation8 + $0x4a8] sm:$0xff] }
 0x1ce   :  { %1986 = vmatpush.msra.mxu3 %v1863_v5  ;;  %v1864_v5 = vld [vmem:[#allocation8 + $0x498] sm:$0xff] }
 0x1d0   :  { %1987 = vmatpush.msra.mxu3 %v1861_v6 }
 0x1d2   :  { %2137 = vmatmul.f32.gmra.mxu1 %v1144_v19  ;;  %1988 = vmatpush.msra.mxu3 %v1859_v7  ;;  %v781_v19 = vsub.f32 0.0, %v602_v15 }
 0x1d4   :  { %1989 = vmatpush.msra.mxu3 %v1857_v8  ;;  %v821_v20 = vmul.f32 1.442695, %v781_v19  ;;  %v1854_v19 = vld [vmem:[#allocation8 + $0x448] sm:$0xff] }
 0x1d6   :  { %1990 = vmatpush.msra.mxu3 %v1855_v55 }
 0x1d8   :  { %1991 = vmatpush.msra.mxu3 %v1853_v11 }
 0x1da   :  { %1992 = vmatpush.msra.mxu3 %v1851_v17 }
 0x1dc   :  { %1993 = vmatpush.msra.mxu3 %v1849_v18  ;;  %v1856_v18 = vld [vmem:[#allocation8 + $0x458] sm:$0xff] }
 0x1de   :  { %1994 = vmatpush.msra.mxu3 %v1847_v12 }
 0x1e0   :  { %1995 = vmatpush.msra.mxu3 %v1845_v33 }
 0x216   :  { %v1597_v31 = vpop.f32.mrf.mxu0 }
 0x217   :  { %v1598_v32 = vadd.f32 %v3348_v21, %v1597_v31 }
 0x220   :  { %v1600_v38 = vpop.f32.mrf.mxu0 }
 0x221   :  { %v1601_v42 = vadd.f32 %v3348_v21, %v1600_v38 }
 0x227   :  { %v1620_v35 = vpop.f32.mrf.mxu1 }
 0x228   :  { %v1621_v36 = vadd.f32 %v1620_v35, %v1598_v32 }
 0x22a   :  { %v1628_v37 = vmul.f32 1.442695, %v1621_v36  ;;  %vm1626_vm1 = vcmp.gt.f32.partialorder %v1621_v36, 0.0 }
 0x22c   :  { %3408 = vpow2.f32 %v1628_v37 }
 0x22f   :  { %v1623_v43 = vpop.f32.mrf.mxu1 }
 0x230   :  { %v1624_v46 = vadd.f32 %v1623_v43, %v1601_v42  ;;  %v1876_v42 = vld [vmem:[#allocation8 + $0x4f8] sm:$0xff] }
 0x232   :  { %v3409_v50 = vpop.eup %3408  ;;  %v1630_v51 = vmul.f32 1.442695, %v1624_v46  ;;  %vm1627_vm2 = vcmp.gt.f32.partialorder %v1624_v46, 0.0 }
 0x233   :  { %v3201_v13 = vadd.f32 -1.0, %v3409_v50  ;;  %v1872_v50 = vld [vmem:[#allocation8 + $0x4d8] sm:$0xff] }
 0x234   :  { %3410 = vpow2.f32 %v1630_v51 }
 0x235   :  { %v1634_v9 = vsel %vm1626_vm1, %v1621_v36, %v3201_v13  ;;  %3412 = vpow2.f32 %v797_v56  ;;  %v1858_v56 = vld [vmem:[#allocation8 + $0x468] sm:$0xff] }
 0x236   :  { %3203 = vmatmul.msk.f32.vlgmr.msrb.gmra.mxu2 %vm1648_vm0, %v1634_v9  ;;  %3414 = vpow2.f32 %v821_v20  ;;  %v1852_v20 = vld [vmem:[#allocation8 + $0x438] sm:$0xff] }
 0x23a   :  { %v3411_v58 = vpop.eup %3410 }
 0x23b   :  { %v3202_v61 = vadd.f32 -1.0, %v3411_v58  ;;  %v3413_v41 = vpop.eup %3412 }
 0x23c   :  { %v841_v24 = vadd.f32 1.0, %v3413_v41  ;;  %v3415_v40 = vpop.eup %3414  ;;  %v1850_v41 = vld [vmem:[#allocation8 + $0x428] sm:$0xff] }
 0x23d   :  { %v1635_v63 = vsel %vm1627_vm2, %v1624_v46, %v3202_v61  ;;  %v4483_v28 = vadd.f32 1.0, %v3415_v40  ;;  %v1809_v40 = vld [vmem:[#allocation17 + $0x8] sm:$0xff] }
 0x23e   :  { %3204 = vmatmul.msk.f32.gmra.mxu2 %vm1648_vm0, %v1635_v63  ;;  %vm926_vm6 = vweird.f32 %v841_v24  ;;  %v932_v58 = vand.u32 2147483648, %v841_v24  ;;  %v930_v63 = vand.u32 2147483647, %v841_v24 }
 0x23f   :  { %vm1106_vm10 = vweird.f32 %v4483_v28  ;;  %v1112_v11 = vand.u32 2147483648, %v4483_v28  ;;  %v1110_v17 = vand.u32 2147483647, %v4483_v28  ;;  %1830 = vmatpush.msra.mxu2 %v1809_v40 }
 0x240   :  { %v933_v6 = vor.u32 1.1754944e-38, %v932_v58  ;;  %vm931_vm9 = vcmp.eq.f32.partialorder %v930_v63, 8.507059e+37 }
 0x241   :  { %v1113_v12 = vor.u32 1.1754944e-38, %v1112_v11  ;;  %vm1111_vm13 = vcmp.eq.f32.partialorder %v1110_v17, 8.507059e+37 }
 0x2b9   :  { %v1672_v23 = vpop.f32.mrf.mxu2 }
 0x2ba   :  { %v1673_v14 = vadd.f32 %v3349_v22, %v1672_v23  ;;  %v1848_v23 = vld [vmem:[#allocation8 + $0x418] sm:$0xff] }
 0x2bc   :  { %v1680_v25 = vmul.f32 1.442695, %v1673_v14  ;;  %vm1678_vm3 = vcmp.gt.f32.partialorder %v1673_v14, 0.0 }
 0x2be   :  { %3416 = vpow2.f32 %v1680_v25 }
 0x2bf   :  { %3418 = vrcp.f32 %v841_v24 }
 0x2c1   :  { %v1675_v26 = vpop.f32.mrf.mxu2 }
 0x2c2   :  { %v1676_v27 = vadd.f32 %v3349_v22, %v1675_v26 }
 0x2c4   :  { %v3417_v30 = vpop.eup %3416  ;;  %v1682_v31 = vmul.f32 1.442695, %v1676_v27  ;;  %vm1679_vm5 = vcmp.gt.f32.partialorder %v1676_v27, 0.0 }
 0x2c5   :  { %v3419_v21 = vpop.eup %3418  ;;  %v3205_v32 = vadd.f32 -1.0, %v3417_v30  ;;  %v1971_v30 = vld [vmem:[#allocation8 + $0x7f0] sm:$0xff] }
 0x2c6   :  { %3420 = vpow2.f32 %v1682_v31  ;;  %v922_v36 = vmul.f32 %v3419_v21, %v841_v24  ;;  %vm927_vm7 = vweird.f32 %v3419_v21  ;;  %v3350_v24 = vld [vmem:[#allocation16] ss:$0 sm:$0xff] }
 0x2c7   :  { %3422 = vrcp.f32 %v4483_v28  ;;  %v1686_v35 = vmul.f32 1.6732632, %v3205_v32  ;;  %vm928_vm8 = vmor %vm926_vm6, %vm927_vm7 }
 0x2c8   :  { %v923_v1 = vsub.f32 1.0, %v922_v36 }
 0x2c9   :  { %v1688_v37 = vsel %vm1678_vm3, %v1673_v14, %v1686_v35  ;;  %v1846_v14 = vld [vmem:[#allocation8 + $0x408] sm:$0xff]  ;;  %v1967_v35 = vld [vmem:[#allocation8 + $0x7d0] sm:$0xff] }
 0x2ca   :  { %v1690_v38 = vmul.f32 1.050701, %v1688_v37  ;;  %v924_v13 = vmul.f32 %v3419_v21, %v923_v1  ;;  %v1961_v1 = vld [vmem:[#allocation8 + $0x7a0] sm:$0xff] }
 0x2cc   :  { %v3421_v43 = vpop.eup %3420  ;;  %3207 = vmatmul.msk.f32.vlgmr.msrb.gmra.mxu3 %vm1698_vm4, %v1690_v38  ;;  %v925_v61 = vadd.f32 %v3419_v21, %v924_v13  ;;  %v1957_v13 = vld [vmem:[#allocation8 + $0x780] sm:$0xff] }
 0x2cd   :  { %v3423_v46 = vpop.eup %3422  ;;  %v3206_v48 = vadd.f32 -1.0, %v3421_v43  ;;  %2072 = vmatpush.msrb.mxu3 %v1876_v42  ;;  %v1965_v42 = vld [vmem:[#allocation8 + $0x7c0] sm:$0xff]  ;;  %v1963_v43 = vld [vmem:[#allocation8 + $0x7b0] sm:$0xff] }
 0x2ce   :  { %v1102_v34 = vmul.f32 %v3423_v46, %v4483_v28  ;;  %v929_v7 = vsel %vm928_vm8, %v3419_v21, %v925_v61  ;;  %vm1107_vm11 = vweird.f32 %v3423_v46  ;;  %v1969_v21 = vld [vmem:[#allocation8 + $0x7e0] sm:$0xff] }
 0x2cf   :  { %v1687_v51 = vmul.f32 1.6732632, %v3206_v48  ;;  %2073 = vmatpush.msrb.mxu3 %v1874_v45  ;;  %v934_v55 = vsel %vm931_vm9, %v933_v6, %v929_v7  ;;  %vm1108_vm12 = vmor %vm1106_vm10, %vm1107_vm11  ;;  %v1949_v6 = vld [vmem:[#allocation8 + $0x740] sm:$0xff]  ;;  %v1947_v7 = vld [vmem:[#allocation8 + $0x730] sm:$0xff] }
 0x2d0   :  { %v1103_v4 = vsub.f32 1.0, %v1102_v34 }
 0x2d1   :  { %2074 = vmatpush.msrb.mxu3 %v1872_v50  ;;  %v1689_v9 = vsel %vm1679_vm5, %v1676_v27, %v1687_v51  ;;  %v1808_v27 = vld [vmem:[#allocation17] sm:$0xff]  ;;  %v1959_v50 = vld [vmem:[#allocation8 + $0x790] sm:$0xff] }
 0x2d2   :  { %v1691_v54 = vmul.f32 1.050701, %v1689_v9  ;;  %v1104_v8 = vmul.f32 %v3423_v46, %v1103_v4  ;;  %1831 = vmatpush.msra.mxu2 %v1808_v27 }
 0x2d3   :  { %2075 = vmatpush.msrb.mxu3 %v1870_v52 }
 0x2d4   :  { %3208 = vmatmul.msk.f32.gmra.mxu3 %vm1698_vm4, %v1691_v54  ;;  %v1105_v15 = vadd.f32 %v3423_v46, %v1104_v8  ;;  %2049 = vmatpush.msrb.mxu2 %v1971_v30 }
 0x2d5   :  { %2076 = vmatpush.msrb.mxu3 %v1868_v47  ;;  %v1955_v47 = vld [vmem:[#allocation8 + $0x770] sm:$0xff] }
 0x2d6   :  { %v1109_v33 = vsel %vm1108_vm12, %v3423_v46, %v1105_v15  ;;  %2050 = vmatpush.msrb.mxu2 %v1969_v21  ;;  %v472_v46 = vperm.slane %v4478_v2, 7 }
 0x2d7   :  { %2077 = vmatpush.msrb.mxu3 %v1866_v59  ;;  %v1114_v22 = vsel %vm1111_vm13, %v1113_v12, %v1109_v33  ;;  %v1953_v59 = vld [vmem:[#allocation8 + $0x760] sm:$0xff]  ;;  %v1943_v33 = vld [vmem:[#allocation8 + $0x710] sm:$0xff] }
 0x2d8   :  { %2051 = vmatpush.msrb.mxu2 %v1967_v35  ;;  %v668_v34 = vadd.f32 %v4302_v39, %v472_v46 }
 0x2d9   :  { %2078 = vmatpush.msrb.mxu3 %v1864_v5  ;;  %v1951_v5 = vld [vmem:[#allocation8 + $0x750] sm:$0xff] }
 0x2da   :  { %2052 = vmatpush.msrb.mxu2 %v1965_v42  ;;  %v772_v61 = vsub.f32 0.0, %v668_v34 }
 0x2db   :  { %2079 = vmatpush.msrb.mxu3 %v1862_v16 }
 0x2dc   :  { %1996 = vmatmul.f32.vlgmr.msra.gmra.mxu3 %v934_v55  ;;  %2053 = vmatpush.msrb.mxu2 %v1963_v43 }
 0x2dd   :  { %2080 = vmatpush.msrb.mxu3 %v1860_v10  ;;  %v803_v10 = vmul.f32 1.442695, %v772_v61 }
 0x2de   :  { %2054 = vmatpush.msrb.mxu2 %v1961_v1 }
 0x2df   :  { %2081 = vmatpush.msrb.mxu3 %v1858_v56 }
 0x2e0   :  { %2055 = vmatpush.msrb.mxu2 %v1959_v50 }
 0x2e1   :  { %2082 = vmatpush.msrb.mxu3 %v1856_v18  ;;  %v1945_v18 = vld [vmem:[#allocation8 + $0x720] sm:$0xff] }
 0x2e2   :  { %2056 = vmatpush.msrb.mxu2 %v1957_v13 }
 0x2e3   :  { %2083 = vmatpush.msrb.mxu3 %v1854_v19 }
 0x2e4   :  { %1999 = vmatmul.f32.gmra.mxu3 %v1114_v22  ;;  %2057 = vmatpush.msrb.mxu2 %v1955_v47 }
 0x2e5   :  { %2084 = vmatpush.msrb.mxu3 %v1852_v20 }
 0x2e6   :  { %2058 = vmatpush.msrb.mxu2 %v1953_v59 }
 0x2e7   :  { %2085 = vmatpush.msrb.mxu3 %v1850_v41 }
 0x2e8   :  { %2059 = vmatpush.msrb.mxu2 %v1951_v5 }
 0x2e9   :  { %2086 = vmatpush.msrb.mxu3 %v1848_v23 }
 0x2ea   :  { %2060 = vmatpush.msrb.mxu2 %v1949_v6  ;;  %v3907_v6 = vmov 1.0  }
 0x2eb   :  { %2087 = vmatpush.msrb.mxu3 %v1846_v14  ;;  %v1941_v14 = vld [vmem:[#allocation8 + $0x700] sm:$0xff] }
 0x2ec   :  { %2088 = vmatmul.f32.vlgmr.msrb.gmra.mxu3 %v934_v55  ;;  %v671_v55 = vadd.f32 %v4318_v49, %v472_v46  ;;  %2061 = vmatpush.msrb.mxu2 %v1947_v7 }
 0x2ee   :  { %v784_v20 = vsub.f32 0.0, %v671_v55  ;;  %2062 = vmatpush.msrb.mxu2 %v1945_v18 }
 0x2f0   :  { %2063 = vmatpush.msrb.mxu2 %v1943_v33  ;;  %v827_v27 = vmul.f32 1.442695, %v784_v20 }
 0x2f2   :  { %2064 = vmatpush.msrb.mxu2 %v1941_v14 }
 0x2f4   :  { %2091 = vmatmul.f32.gmra.mxu3 %v1114_v22 }
 0x34f   :  { %v1722_v25 = vpop.f32.mrf.mxu3 }
 0x350   :  { %v4492_v26 = vadd.f32 %v3350_v24, %v1722_v25 }
 0x352   :  { %v4495_v28 = vmul.f32 0.70710677, %v4492_v26 }
 0x354   :  { %v4498_v31 = vand.u32 2147483647, %v4495_v28  ;;  %vm1732_vm8 = vcmp.lt.f32.partialorder %v4495_v28, 0.0 }
 0x356   :  { %v1738_v32 = vmul.f32 0.3275911, %v4498_v31  ;;  %v1790_v15 = vsub.f32 0.0, %v4498_v31 }
 0x357   :  { %v1725_v36 = vpop.f32.mrf.mxu3 }
 0x358   :  { %v1740_v37 = vadd.f32 1.0, %v1738_v32  ;;  %v4501_v38 = vadd.f32 %v3350_v24, %v1725_v36  ;;  %v1792_v23 = vmul.f32 %v1790_v15, %v4498_v31 }
 0x35a   :  { %3424 = vrcp.f32 %v1740_v37  ;;  %v4504_v45 = vmul.f32 0.70710677, %v4501_v38  ;;  %v1753_v2 = vand.u32 2147483648, %v1740_v37  ;;  %v1751_v4 = vand.u32 2147483647, %v1740_v37 }
 0x35b   :  { %vm1747_vm15 = vweird.f32 %v1740_v37  ;;  %v1794_v32 = vmul.f32 1.442695, %v1792_v23  ;;  %v1966_v23 = vld [vmem:[#allocation8 + $0x7c8] sm:$0xff] }
 0x35c   :  { %v4508_v48 = vand.u32 2147483647, %v4504_v45  ;;  %v1754_v39 = vor.u32 1.1754944e-38, %v1753_v2  ;;  %vm1752_vm2 = vcmp.eq.f32.partialorder %v1751_v4, 8.507059e+37  ;;  %vm1733_vm9 = vcmp.lt.f32.partialorder %v4504_v45, 0.0 }
 0x35e   :  { %v1739_v51 = vmul.f32 0.3275911, %v4508_v48  ;;  %v1791_v31 = vsub.f32 0.0, %v4508_v48 }
 0x360   :  { %v3425_v52 = vpop.eup %3424  ;;  %v1741_v54 = vadd.f32 1.0, %v1739_v51 }
 0x361   :  { %v1743_v9 = vmul.f32 %v3425_v52, %v1740_v37  ;;  %vm1748_vm14 = vweird.f32 %v3425_v52 }
 0x362   :  { %3426 = vrcp.f32 %v1741_v54  ;;  %vm1749_vm1 = vmor %vm1747_vm15, %vm1748_vm14  ;;  %v1768_v41 = vand.u32 2147483648, %v1741_v54  ;;  %v1766_v24 = vand.u32 2147483647, %v1741_v54  ;;  %vm1762_vm5 = vweird.f32 %v1741_v54 }
 0x363   :  { %v1744_v58 = vsub.f32 1.0, %v1743_v9  ;;  %3428 = vpow2.f32 %v803_v10  ;;  %v1728_v10 = vmul.f32 0.5, %v4492_v26  ;;  %v1735_v26 = vsel %vm1733_vm9, -1.0, %v3907_v6 }
 0x364   :  { %v1769_v21 = vor.u32 1.1754944e-38, %v1768_v41  ;;  %vm1767_vm7 = vcmp.eq.f32.partialorder %v1766_v24, 8.507059e+37  ;;  %3430 = vpow2.f32 %v827_v27 }
 0x365   :  { %v1745_v63 = vmul.f32 %v3425_v52, %v1744_v58  ;;  %3432 = vpow2.f32 %v1794_v32 }
 0x367   :  { %v1746_v16 = vadd.f32 %v3425_v52, %v1745_v63 }
 0x368   :  { %v3427_v8 = vpop.eup %3426 }
 0x369   :  { %v1750_v11 = vsel %vm1749_vm1, %v3425_v52, %v1746_v16  ;;  %v1758_v17 = vmul.f32 %v3427_v8, %v1741_v54  ;;  %vm1763_vm3 = vweird.f32 %v3427_v8  ;;  %v3429_v36 = vpop.eup %3428  ;;  %v1793_v52 = vmul.f32 %v1791_v31, %v4508_v48  ;;  %v1960_v31 = vld [vmem:[#allocation8 + $0x798] sm:$0xff] }
 0x36a   :  { %v1755_v56 = vsel %vm1752_vm2, %v1754_v39, %v1750_v11  ;;  %vm1764_vm6 = vmor %vm1762_vm5, %vm1763_vm3  ;;  %v4516_v50 = vadd.f32 1.0, %v3429_v36  ;;  %v3431_v54 = vpop.eup %3430  ;;  %v1734_v48 = vsel %vm1732_vm8, -1.0, %v3907_v6  ;;  %v3225_v36 = vld [vmem:[%s5041_s5 + $0x170] sm:$0xff] }
 0x36b   :  { %v1772_v12 = vmul.f32 1.0614054, %v1755_v56  ;;  %v1759_v19 = vsub.f32 1.0, %v1758_v17  ;;  %v1796_v58 = vmul.f32 1.442695, %v1793_v52  ;;  %v3433_v2 = vpop.eup %3432  ;;  %v4521_v4 = vadd.f32 1.0, %v3431_v54 }
 0x36c   :  { %3434 = vrcp.f32 %v4516_v50  ;;  %v1972_v17 = vld [vmem:[#allocation8 + $0x7f8] sm:$0xff]  ;;  %vm971_vm10 = vweird.f32 %v4516_v50  ;;  %v977_v27 = vand.u32 2147483648, %v4516_v50 }
 0x36d   :  { %v1774_v22 = vadd.f32 -1.4531521, %v1772_v12  ;;  %v1760_v49 = vmul.f32 %v3427_v8, %v1759_v19  ;;  %3436 = vpow2.f32 %v1796_v58  ;;  %v1970_v12 = vld [vmem:[#allocation8 + $0x7e8] sm:$0xff]  ;;  %vm1151_vm14 = vweird.f32 %v4521_v4  ;;  %v3222_v54 = vld [vmem:[%s5041_s5 + $0x158] sm:$0xff] }
 0x36e   :  { %3438 = vrcp.f32 %v4521_v4  ;;  %v1157_v58 = vand.u32 2147483648, %v4521_v4 }
 0x36f   :  { %v1776_v25 = vmul.f32 %v1774_v22, %v1755_v56  ;;  %v1761_v40 = vadd.f32 %v3427_v8, %v1760_v49  ;;  %v1968_v22 = vld [vmem:[#allocation8 + $0x7d8] sm:$0xff]  ;;  %v1729_v49 = vmul.f32 0.5, %v4501_v38 }
 0x371   :  { %v1778_v30 = vadd.f32 1.4214138, %v1776_v25  ;;  %v1765_v35 = vsel %vm1764_vm6, %v3427_v8, %v1761_v40  ;;  %v1964_v40 = vld [vmem:[#allocation8 + $0x7b8] sm:$0xff] }
 0x372   :  { %v1770_v42 = vsel %vm1767_vm7, %v1769_v21, %v1765_v35  ;;  %v4524_v39 = vpop.eup %3434  ;;  %v975_v21 = vand.u32 2147483647, %v4516_v50  ;;  %v3226_v35 = vld [vmem:[%s5041_s5 + $0x178] sm:$0xff] }
 0x373   :  { %v1780_v37 = vmul.f32 %v1778_v30, %v1755_v56  ;;  %v1773_v43 = vmul.f32 1.0614054, %v1770_v42  ;;  %v967_v11 = vmul.f32 %v4524_v39, %v4516_v50  ;;  %vm972_vm11 = vweird.f32 %v4524_v39  ;;  %v1962_v30 = vld [vmem:[#allocation8 + $0x7a8] sm:$0xff]  ;;  %2206 = vmatpush.msra.mxu3 %v3226_v35  ;;  %v3230_v35 = vld [vmem:[%s5041_s5 + $0x198] sm:$0xff] }
 0x374   :  { %vm4551_vm12 = vmor %vm971_vm10, %vm972_vm11  ;;  %v1958_v50 = vld [vmem:[#allocation8 + $0x788] sm:$0xff]  ;;  %vm976_vm13 = vcmp.eq.f32.partialorder %v975_v21, 8.507059e+37  ;;  %v2527_v21 = vld [vmem:[#allocation8 + $0x9c0] sm:$0xff] }
 0x375   :  { %v1782_v1 = vadd.f32 -0.28449672, %v1780_v37  ;;  %v1775_v46 = vadd.f32 -1.4531521, %v1773_v43  ;;  %v968_v33 = vsub.f32 1.0, %v967_v11  ;;  %v978_v43 = vor.u32 1.1754944e-38, %v977_v27  ;;  %2207 = vmatpush.msra.mxu3 %v3225_v36 }
 0x376   :  { %v3236_v11 = vld [vmem:[%s5041_s5 + $0x1c8] sm:$0xff]  ;;  %v2523_v36 = vld [vmem:[#allocation8 + $0x9a0] sm:$0xff]  ;;  %v3229_v37 = vld [vmem:[%s5041_s5 + $0x190] sm:$0xff] }
 0x377   :  { %v1784_v51 = vmul.f32 %v1782_v1, %v1755_v56  ;;  %v1777_v13 = vmul.f32 %v1775_v46, %v1770_v42  ;;  %v969_v45 = vmul.f32 %v4524_v39, %v968_v33  ;;  %v3242_v1 = vld [vmem:[%s5041_s5 + $0x1f8] sm:$0xff]  ;;  %v3241_v46 = vld [vmem:[%s5041_s5 + $0x1f0] sm:$0xff] }
 0x378   :  { %2229 = vmatpush.msra.mxu0 %v3242_v1  ;;  %v3234_v33 = vld [vmem:[%s5041_s5 + $0x1b8] sm:$0xff]  ;;  %v2533_v27 = vld [vmem:[#allocation8 + $0x9f0] sm:$0xff]  ;;  %v3227_v1 = vld [vmem:[%s5041_s5 + $0x180] sm:$0xff] }
 0x379   :  { %v1786_v34 = vadd.f32 0.2548296, %v1784_v51  ;;  %v1779_v9 = vadd.f32 1.4214138, %v1777_v13  ;;  %v970_v38 = vadd.f32 %v4524_v39, %v969_v45  ;;  %v3223_v13 = vld [vmem:[%s5041_s5 + $0x160] sm:$0xff] }
 0x37a   :  { %2230 = vmatpush.msra.mxu0 %v3241_v46  ;;  %v3231_v45 = vld [vmem:[%s5041_s5 + $0x1a0] sm:$0xff]  ;;  %v2517_v46 = vld [vmem:[#allocation8 + $0x970] sm:$0xff] }
 0x37b   :  { %v1788_v47 = vmul.f32 %v1786_v34, %v1755_v56  ;;  %v1781_v59 = vmul.f32 %v1779_v9, %v1770_v42  ;;  %v3437_v56 = vpop.eup %3436  ;;  %v974_v51 = vsel %vm4551_vm12, %v4524_v39, %v970_v38  ;;  %v3240_v34 = vld [vmem:[%s5041_s5 + $0x1e8] sm:$0xff]  ;;  %v1956_v9 = vld [vmem:[#allocation8 + $0x778] sm:$0xff] }
 0x37c   :  { %v4532_v20 = vpop.eup %3438  ;;  %2231 = vmatpush.msra.mxu0 %v3240_v34  ;;  %v1952_v39 = vld [vmem:[#allocation8 + $0x758] sm:$0xff]  ;;  %v2529_v38 = vld [vmem:[#allocation8 + $0x9d0] sm:$0xff] }
 0x37d   :  { %v1798_v61 = vmul.f32 %v3433_v2, %v1788_v47  ;;  %v1783_v63 = vadd.f32 -0.28449672, %v1781_v59  ;;  %v1147_v24 = vmul.f32 %v4532_v20, %v4521_v4  ;;  %vm1152_vm15 = vweird.f32 %v4532_v20  ;;  %v3239_v2 = vld [vmem:[%s5041_s5 + $0x1e0] sm:$0xff]  ;;  %v2561_v34 = vld [vmem:[#allocation8 + $0xad0] sm:$0xff] }
 0x37e   :  { %v979_v47 = vsel %vm976_vm13, %v978_v43, %v974_v51  ;;  %v1954_v59 = vld [vmem:[#allocation8 + $0x768] sm:$0xff]  ;;  %vm4592_vm1 = vmor %vm1151_vm14, %vm1152_vm15  ;;  %2232 = vmatpush.msra.mxu0 %v3239_v2  ;;  %v2519_v43 = vld [vmem:[#allocation8 + $0x980] sm:$0xff] }
 0x37f   :  { %v1800_v5 = vsub.f32 1.0, %v1798_v61  ;;  %v1785_v16 = vmul.f32 %v1783_v63, %v1770_v42  ;;  %v1148_v32 = vsub.f32 1.0, %v1147_v24  ;;  %v1155_v63 = vand.u32 2147483647, %v4521_v4  ;;  %v3237_v4 = vld [vmem:[%s5041_s5 + $0x1d0] sm:$0xff]  ;;  %v2515_v51 = vld [vmem:[#allocation8 + $0x960] sm:$0xff] }
 0x380   :  { %v3213_v24 = vld [vmem:[%s5041_s5 + $0x110] sm:$0xff] }
 0x381   :  { %v1802_v7 = vmul.f32 %v1800_v5, %v1734_v48  ;;  %v1787_v8 = vadd.f32 0.2548296, %v1785_v16  ;;  %v1149_v52 = vmul.f32 %v4532_v20, %v1148_v32  ;;  %v3221_v5 = vld [vmem:[%s5041_s5 + $0x150] sm:$0xff]  ;;  %v3238_v16 = vld [vmem:[%s5041_s5 + $0x1d8] sm:$0xff]  ;;  %vm1156_vm2 = vcmp.eq.f32.partialorder %v1155_v63, 8.507059e+37 }
 0x382   :  { %2233 = vmatpush.msra.mxu0 %v3238_v16  ;;  %v2525_v32 = vld [vmem:[#allocation8 + $0x9b0] sm:$0xff]  ;;  %v2555_v48 = vld [vmem:[#allocation8 + $0xaa0] sm:$0xff] }
 0x383   :  { %v1804_v55 = vadd.f32 1.0, %v1802_v7  ;;  %v1789_v28 = vmul.f32 %v1787_v8, %v1770_v42  ;;  %v3224_v42 = vld [vmem:[%s5041_s5 + $0x168] sm:$0xff]  ;;  %v1150_v61 = vadd.f32 %v4532_v20, %v1149_v52  ;;  %v1158_v8 = vor.u32 1.1754944e-38, %v1157_v58  ;;  %v2563_v52 = vld [vmem:[#allocation8 + $0xae0] sm:$0xff] }
 0x384   :  { %2208 = vmatpush.msra.mxu3 %v3224_v42  ;;  %v3220_v7 = vld [vmem:[%s5041_s5 + $0x148] sm:$0xff]  ;;  %2234 = vmatpush.msra.mxu0 %v3237_v4  ;;  %v2559_v58 = vld [vmem:[#allocation8 + $0xac0] sm:$0xff] }
 0x385   :  { %v1806_v15 = vmul.f32 %v1804_v55, %v1728_v10  ;;  %v1799_v18 = vmul.f32 %v3437_v56, %v1789_v28  ;;  %v1950_v10 = vld [vmem:[#allocation8 + $0x748] sm:$0xff]  ;;  %v1154_v55 = vsel %vm4592_vm1, %v4532_v20, %v1150_v61  ;;  %v1948_v56 = vld [vmem:[#allocation8 + $0x738] sm:$0xff]  ;;  %v2509_v2 = vld [vmem:[#allocation8 + $0x930] sm:$0xff] }
 0x386   :  { %2209 = vmatpush.msra.mxu3 %v3223_v13  ;;  %v3219_v28 = vld [vmem:[%s5041_s5 + $0x140] sm:$0xff]  ;;  %2235 = vmatpush.msra.mxu0 %v3236_v11  ;;  %v1944_v20 = vld [vmem:[#allocation8 + $0x718] sm:$0xff]  ;;  %v3228_v42 = vld [vmem:[%s5041_s5 + $0x188] sm:$0xff] }
 0x387   :  { %3209 = vmatmul.msk.f32.vlgmr.msra.gmra.mxu2 %vm1698_vm4, %v1806_v15  ;;  %v1801_v19 = vsub.f32 1.0, %v1799_v18  ;;  %v3218_v15 = vld [vmem:[%s5041_s5 + $0x138] sm:$0xff]  ;;  %v3235_v18 = vld [vmem:[%s5041_s5 + $0x1c0] sm:$0xff]  ;;  %v2513_v13 = vld [vmem:[#allocation8 + $0x950] sm:$0xff] }
 0x388   :  { %2141 = vmatpush.msra.mxu2 %v1972_v17  ;;  %2210 = vmatpush.msra.mxu3 %v3222_v54  ;;  %v1159_v17 = vsel %vm1156_vm2, %v1158_v8, %v1154_v55  ;;  %v2505_v16 = vld [vmem:[#allocation8 + $0x910] sm:$0xff]  ;;  %v2551_v8 = vld [vmem:[#allocation8 + $0xa80] sm:$0xff] }
 0x389   :  { %v1803_v41 = vmul.f32 %v1801_v19, %v1735_v26  ;;  %v3217_v19 = vld [vmem:[%s5041_s5 + $0x130] sm:$0xff]  ;;  %v3216_v26 = vld [vmem:[%s5041_s5 + $0x128] sm:$0xff]  ;;  %2236 = vmatpush.msra.mxu0 %v3235_v18  ;;  %v2547_v11 = vld [vmem:[#allocation8 + $0xa60] sm:$0xff]  ;;  %v1997_v18 = vpop.f32.mrf.mxu3 }
 0x38a   :  { %2142 = vmatpush.msra.mxu2 %v1970_v12  ;;  %2211 = vmatpush.msra.mxu3 %v3221_v5  ;;  %v1946_v12 = vld [vmem:[#allocation8 + $0x728] sm:$0xff]  ;;  %v2507_v5 = vld [vmem:[#allocation8 + $0x920] sm:$0xff]  ;;  %v2549_v55 = vld [vmem:[#allocation8 + $0xa70] sm:$0xff] }
 0x38b   :  { %v1805_v14 = vadd.f32 1.0, %v1803_v41  ;;  %v1942_v41 = vld [vmem:[#allocation8 + $0x708] sm:$0xff]  ;;  %2237 = vmatpush.msra.mxu0 %v3234_v33  ;;  %v2541_v33 = vld [vmem:[#allocation8 + $0xa30] sm:$0xff] }
 0x38c   :  { %2143 = vmatpush.msra.mxu2 %v1968_v22  ;;  %2212 = vmatpush.msra.mxu3 %v3220_v7  ;;  %v3233_v22 = vld [vmem:[%s5041_s5 + $0x1b0] sm:$0xff]  ;;  %v2503_v7 = vld [vmem:[#allocation8 + $0x900] sm:$0xff] }
 0x38d   :  { %v1807_v25 = vmul.f32 %v1805_v14, %v1729_v49  ;;  %v3232_v49 = vld [vmem:[%s5041_s5 + $0x1a8] sm:$0xff]  ;;  %v3214_v14 = vld [vmem:[%s5041_s5 + $0x118] sm:$0xff]  ;;  %2238 = vmatpush.msra.mxu0 %v3233_v22 }
 0x38e   :  { %2144 = vmatpush.msra.mxu2 %v1966_v23  ;;  %2213 = vmatpush.msra.mxu3 %v3219_v28  ;;  %v3215_v23 = vld [vmem:[%s5041_s5 + $0x120] sm:$0xff] }
 0x38f   :  { %3210 = vmatmul.msk.f32.gmra.mxu2 %vm1698_vm4, %v1807_v25  ;;  %2239 = vmatpush.msra.mxu0 %v3232_v49  ;;  %v3212_v25 = vld [vmem:[%s5041_s5 + $0x108] sm:$0xff] }
 0x390   :  { %2145 = vmatpush.msra.mxu2 %v1964_v40  ;;  %2214 = vmatpush.msra.mxu3 %v3218_v15  ;;  %v3211_v40 = vld [vmem:[%s5041_s5 + $0x100] sm:$0xff]  ;;  %v2537_v49 = vld [vmem:[#allocation8 + $0xa10] sm:$0xff] }
 0x391   :  { %2240 = vmatpush.msra.mxu0 %v3231_v45  ;;  %v2535_v45 = vld [vmem:[#allocation8 + $0xa00] sm:$0xff] }
 0x392   :  { %2146 = vmatpush.msra.mxu2 %v1962_v30  ;;  %2215 = vmatpush.msra.mxu3 %v3217_v19  ;;  %v2531_v30 = vld [vmem:[#allocation8 + $0x9e0] sm:$0xff] }
 0x393   :  { %2241 = vmatpush.msra.mxu0 %v3230_v35 }
 0x394   :  { %2147 = vmatpush.msra.mxu2 %v1960_v31  ;;  %2216 = vmatpush.msra.mxu3 %v3216_v26  ;;  %v2521_v31 = vld [vmem:[#allocation8 + $0x990] sm:$0xff] }
 0x395   :  { %2242 = vmatpush.msra.mxu0 %v3229_v37 }
 0x396   :  { %2148 = vmatpush.msra.mxu2 %v1958_v50  ;;  %2217 = vmatpush.msra.mxu3 %v3215_v23  ;;  %v2565_v50 = vld [vmem:[#allocation8 + $0xaf0] sm:$0xff] }
 0x397   :  { %2065 = vmatmul.f32.vlgmr.msrb.gmra.mxu2 %v979_v47  ;;  %2243 = vmatpush.msra.mxu0 %v3228_v42 }
 0x398   :  { %2149 = vmatpush.msra.mxu2 %v1956_v9  ;;  %2218 = vmatpush.msra.mxu3 %v3214_v14  ;;  %v3505_v9 = vld [vmem:[#allocation7 + $0x8] sm:$0xf] }
 0x399   :  { %2244 = vmatpush.msra.mxu0 %v3227_v1  ;;  %v474_v54 = vperm.slane %v3505_v9, 1 }
 0x39a   :  { %2150 = vmatpush.msra.mxu2 %v1954_v59  ;;  %2219 = vmatpush.msra.mxu3 %v3213_v24  ;;  %v2557_v59 = vld [vmem:[#allocation8 + $0xab0] sm:$0xff] }
 0x39b   :  { %2652 = vmatpush.msrb.mxu0 %v2565_v50  ;;  %v714_v61 = vadd.f32 %v4353_v29, %v474_v54  ;;  %v475_v29 = vperm.slane %v3505_v9, 2 }
 0x39c   :  { %2151 = vmatpush.msra.mxu2 %v1952_v39  ;;  %2220 = vmatpush.msra.mxu3 %v3212_v25  ;;  %v2553_v39 = vld [vmem:[#allocation8 + $0xa90] sm:$0xff]  ;;  %v2043_v25 = vpop.f32.mrf.mxu1 }
 0x39d   :  { %2653 = vmatpush.msrb.mxu0 %v2563_v52  ;;  %v774_v63 = vsub.f32 0.0, %v714_v61  ;;  %v737_v15 = vadd.f32 %v4356_v0, %v475_v29  ;;  %v2020_v0 = vpop.f32.mrf.mxu0  ;;  %v740_v24 = vadd.f32 %v4365_v57, %v475_v29 }
 0x39e   :  { %2152 = vmatpush.msra.mxu2 %v1950_v10  ;;  %2221 = vmatpush.msra.mxu3 %v3211_v40  ;;  %v717_v10 = vadd.f32 %v4358_v44, %v474_v54  ;;  %v4670_v44 = vld [vmem:[#allocation10 + $0x2] sm:$0x3] }
 0x39f   :  { %2068 = vmatmul.f32.gmra.mxu2 %v1159_v17  ;;  %2654 = vmatpush.msrb.mxu0 %v2561_v34  ;;  %v807_v4 = vmul.f32 1.442695, %v774_v63  ;;  %v775_v26 = vsub.f32 0.0, %v737_v15  ;;  %v1976_v22 = vperm.slane %v4670_v44, 0  ;;  %v1977_v9 = vperm.slane %v4670_v44, 1 }
 0x3a0   :  { %2153 = vmatpush.msra.mxu2 %v1948_v56  ;;  %2629 = vmatpush.msrb.mxu3 %v2533_v27  ;;  %v786_v28 = vsub.f32 0.0, %v717_v10  ;;  %v2545_v56 = vld [vmem:[#allocation8 + $0xa50] sm:$0xff]  ;;  %v2000_v27 = vpop.f32.mrf.mxu3 }
 0x3a1   :  { %2655 = vmatpush.msrb.mxu0 %v2559_v58  ;;  %3440 = vpow2.f32 %v807_v4  ;;  %v809_v14 = vmul.f32 1.442695, %v775_v26  ;;  %v1998_v40 = vadd.f32 %v1997_v18, %v1976_v22  ;;  %v2001_v57 = vadd.f32 %v2000_v27, %v1976_v22  ;;  %v2532_v58 = vld [vmem:[#allocation8 + $0x9e8] sm:$0xff] }
 0x3a2   :  { %2154 = vmatpush.msra.mxu2 %v1946_v12  ;;  %2630 = vmatpush.msrb.mxu3 %v2531_v30  ;;  %v831_v12 = vmul.f32 1.442695, %v786_v28  ;;  %v2526_v28 = vld [vmem:[#allocation8 + $0x9b8] sm:$0xff] }
 0x3a3   :  { %2656 = vmatpush.msrb.mxu0 %v2557_v59 }
 0x3a4   :  { %2155 = vmatpush.msra.mxu2 %v1944_v20  ;;  %2631 = vmatpush.msrb.mxu3 %v2529_v38  ;;  %3442 = vpow2.f32 %v831_v12  ;;  %v2046_v52 = vpop.f32.mrf.mxu1  ;;  %v2524_v12 = vld [vmem:[#allocation8 + $0x9a8] sm:$0xff] }
 0x3a5   :  { %2657 = vmatpush.msrb.mxu0 %v2555_v48  ;;  %v2023_v37 = vpop.f32.mrf.mxu0 }
 0x3a6   :  { %2156 = vmatpush.msra.mxu2 %v1942_v41  ;;  %2632 = vmatpush.msrb.mxu3 %v2527_v21  ;;  %v2539_v41 = vld [vmem:[#allocation8 + $0xa20] sm:$0xff]  ;;  %v787_v21 = vsub.f32 0.0, %v740_v24  ;;  %v2024_v34 = vadd.f32 %v2023_v37, %v2001_v57  ;;  %v2566_v37 = vld [vmem:[#allocation8 + $0xaf8] sm:$0xff] }
 0x3a7   :  { %2157 = vmatmul.f32.vlgmr.msra.gmra.mxu2 %v979_v47  ;;  %v2511_v47 = vld [vmem:[#allocation8 + $0x940] sm:$0xff]  ;;  %2658 = vmatpush.msrb.mxu0 %v2553_v39  ;;  %v3441_v20 = vpop.eup %3440 }
 0x3a8   :  { %2633 = vmatpush.msrb.mxu3 %v2525_v32  ;;  %v4673_v23 = vadd.f32 1.0, %v3441_v20  ;;  %v2021_v32 = vadd.f32 %v2020_v0, %v1998_v40  ;;  %v833_v42 = vmul.f32 1.442695, %v787_v21  ;;  %v2047_v63 = vadd.f32 %v2046_v52, %v2024_v34  ;;  %v2522_v0 = vld [vmem:[#allocation8 + $0x998] sm:$0xff] }
 0x3a9   :  { %2659 = vmatpush.msrb.mxu0 %v2551_v8  ;;  %v2528_v8 = vld [vmem:[#allocation8 + $0x9c8] sm:$0xff] }
 0x3aa   :  { %2634 = vmatpush.msrb.mxu3 %v2523_v36  ;;  %3444 = vrcp.f32 %v4673_v23  ;;  %v3443_v38 = vpop.eup %3442  ;;  %vm1001_vm3 = vweird.f32 %v4673_v23  ;;  %v1005_v44 = vand.u32 2147483647, %v4673_v23 }
 0x3ab   :  { %2660 = vmatpush.msrb.mxu0 %v2549_v55  ;;  %3446 = vpow2.f32 %v809_v14  ;;  %v4679_v35 = vadd.f32 1.0, %v3443_v38 }
 0x3ac   :  { %2635 = vmatpush.msrb.mxu3 %v2521_v31  ;;  %vm1006_vm7 = vcmp.eq.f32.partialorder %v1005_v44, 8.507059e+37  ;;  %v2552_v44 = vld [vmem:[#allocation8 + $0xa88] sm:$0xff] }
 0x3ad   :  { %2661 = vmatpush.msrb.mxu0 %v2547_v11  ;;  %3448 = vrcp.f32 %v4679_v35  ;;  %v2112_v48 = vpop.f32.mrf.mxu0  ;;  %vm1181_vm8 = vweird.f32 %v4679_v35 }
 0x3ae   :  { %2636 = vmatpush.msrb.mxu3 %v2519_v43  ;;  %v2044_v43 = vadd.f32 %v2043_v25, %v2021_v32  ;;  %3450 = vpow2.f32 %v833_v42  ;;  %v2520_v25 = vld [vmem:[#allocation8 + $0x988] sm:$0xff]  ;;  %v2518_v32 = vld [vmem:[#allocation8 + $0x978] sm:$0xff]  ;;  %v1187_v42 = vand.u32 2147483648, %v4679_v35 }
 0x3af   :  { %2160 = vmatmul.f32.gmra.mxu2 %v1159_v17  ;;  %v2543_v17 = vld [vmem:[#allocation8 + $0xa40] sm:$0xff]  ;;  %2662 = vmatpush.msrb.mxu0 %v2545_v56  ;;  %v2135_v56 = vpop.f32.mrf.mxu1 }
 0x3b0   :  { %2637 = vmatpush.msrb.mxu3 %v2517_v46  ;;  %v4681_v36 = vpop.eup %3444 }
 0x3b1   :  { %2663 = vmatpush.msrb.mxu0 %v2543_v17  ;;  %v3447_v31 = vpop.eup %3446  ;;  %v997_v50 = vmul.f32 %v4681_v36, %v4673_v23  ;;  %vm1002_vm5 = vweird.f32 %v4681_v36  ;;  %v1007_v17 = vand.u32 2147483648, %v4673_v23 }
 0x3b2   :  { %2638 = vmatpush.msrb.mxu3 %v2515_v51  ;;  %v4686_v51 = vadd.f32 1.0, %v3447_v31  ;;  %vm4704_vm6 = vmor %vm1001_vm3, %vm1002_vm5 }
 0x3b3   :  { %2664 = vmatpush.msrb.mxu0 %v2541_v33  ;;  %v4689_v59 = vpop.eup %3448  ;;  %v1008_v14 = vor.u32 1.1754944e-38, %v1007_v17  ;;  %v2554_v17 = vld [vmem:[#allocation8 + $0xa98] sm:$0xff] }
 0x3b4   :  { %2639 = vmatpush.msrb.mxu3 %v2513_v13  ;;  %v2089_v13 = vpop.f32.mrf.mxu3  ;;  %3452 = vrcp.f32 %v4686_v51  ;;  %v3451_v39 = vpop.eup %3450  ;;  %v1177_v10 = vmul.f32 %v4689_v59, %v4679_v35  ;;  %vm1182_vm9 = vweird.f32 %v4689_v59  ;;  %vm1016_vm12 = vweird.f32 %v4686_v51 }
 0x3b5   :  { %2665 = vmatpush.msrb.mxu0 %v2539_v41  ;;  %v2090_v61 = vadd.f32 %v2089_v13, %v1977_v9  ;;  %v4697_v11 = vadd.f32 1.0, %v3451_v39  ;;  %v2115_v27 = vpop.f32.mrf.mxu0  ;;  %vm4729_vm10 = vmor %vm1181_vm8, %vm1182_vm9  ;;  %v2510_v39 = vld [vmem:[#allocation8 + $0x938] sm:$0xff] }
 0x3b6   :  { %2640 = vmatpush.msrb.mxu3 %v2511_v47  ;;  %v2534_v47 = vld [vmem:[#allocation8 + $0x9f8] sm:$0xff]  ;;  %v1178_v20 = vsub.f32 1.0, %v1177_v10  ;;  %v2556_v10 = vld [vmem:[#allocation8 + $0xaa8] sm:$0xff] }
 0x3b7   :  { %2666 = vmatpush.msrb.mxu0 %v2537_v49  ;;  %v2113_v55 = vadd.f32 %v2112_v48, %v2090_v61  ;;  %3454 = vrcp.f32 %v4697_v11  ;;  %v2138_v52 = vpop.f32.mrf.mxu1  ;;  %vm1196_vm1 = vweird.f32 %v4697_v11 }
 0x3b8   :  { %2641 = vmatpush.msrb.mxu3 %v2509_v2  ;;  %v998_v2 = vsub.f32 1.0, %v997_v50  ;;  %v1179_v40 = vmul.f32 %v4689_v59, %v1178_v20 }
 0x3b9   :  { %2667 = vmatpush.msrb.mxu0 %v2535_v45  ;;  %v2136_v41 = vadd.f32 %v2135_v56, %v2113_v55  ;;  %v2487_v56 = vld [vmem:[#allocation8 + $0x880] sm:$0xff] }
 0x3ba   :  { %2642 = vmatpush.msrb.mxu3 %v2507_v5  ;;  %v2530_v5 = vld [vmem:[#allocation8 + $0x9d8] sm:$0xff]  ;;  %v999_v4 = vmul.f32 %v4681_v36, %v998_v2  ;;  %v4700_v18 = vpop.eup %3452 }
 0x3bb   :  { %v1012_v45 = vmul.f32 %v4700_v18, %v4686_v51  ;;  %vm1017_vm13 = vweird.f32 %v4700_v18 }
 0x3bc   :  { %2643 = vmatpush.msrb.mxu3 %v2505_v16  ;;  %v2092_v15 = vpop.f32.mrf.mxu3  ;;  %v1000_v33 = vadd.f32 %v4681_v36, %v999_v4  ;;  %v1022_v4 = vand.u32 2147483648, %v4686_v51  ;;  %vm4746_vm14 = vmor %vm1016_vm12, %vm1017_vm13 }
 0x3bd   :  { %v2093_v22 = vadd.f32 %v2092_v15, %v1977_v9  ;;  %v1013_v57 = vsub.f32 1.0, %v1012_v45  ;;  %v4723_v50 = vpop.eup %3454  ;;  %v2514_v9 = vld [vmem:[#allocation8 + $0x958] sm:$0xff] }
 0x3be   :  { %2644 = vmatpush.msrb.mxu3 %v2503_v7  ;;  %v1004_v23 = vsel %vm4704_vm6, %v4681_v36, %v1000_v33  ;;  %v2516_v36 = vld [vmem:[#allocation8 + $0x968] sm:$0xff]  ;;  %v1192_v48 = vmul.f32 %v4723_v50, %v4697_v11  ;;  %v2506_v15 = vld [vmem:[#allocation8 + $0x918] sm:$0xff]  ;;  %vm1197_vm2 = vweird.f32 %v4723_v50 }
 0x3bf   :  { %v2116_v38 = vadd.f32 %v2115_v27, %v2093_v22  ;;  %v4717_v31 = vsel %vm1006_vm7, %v1008_v14, %v1004_v23  ;;  %v1014_v2 = vmul.f32 %v4700_v18, %v1013_v57  ;;  %v2504_v33 = vld [vmem:[#allocation8 + $0x908] sm:$0xff]  ;;  %vm1198_vm3 = vmor %vm1196_vm1, %vm1197_vm2  ;;  %v2546_v14 = vld [vmem:[#allocation8 + $0xa58] sm:$0xff] }
 0x3c0   :  { %v2542_v23 = vld [vmem:[#allocation8 + $0xa38] sm:$0xff]  ;;  %v2540_v27 = vld [vmem:[#allocation8 + $0xa28] sm:$0xff] }
 0x3c1   :  { %v2139_v34 = vadd.f32 %v2138_v52, %v2116_v38  ;;  %v1015_v55 = vadd.f32 %v4700_v18, %v1014_v2  ;;  %v2538_v38 = vld [vmem:[#allocation8 + $0xa18] sm:$0xff] }
 0x3c2   :  { %v3247_v57 = vld [vmem:[%s5043_s7 + $0x50] sm:$0xff]  ;;  %v2320_v2 = vld [vmem:[#allocation14 + $0x10] sm:$0xff] }
 0x3c3   :  { %v1019_v20 = vsel %vm4746_vm14, %v4700_v18, %v1015_v55 }
 0x40a   :  { %v4668_v19 = vpop.f32.mrf.mxu2 }
 0x412   :  { %v4677_v30 = vpop.f32.mrf.mxu2 }
 0x41a   :  { %v2066_v1 = vpop.f32.mrf.mxu2 }
 0x41b   :  { %v2067_v46 = vadd.f32 %v2066_v1, %v2044_v43  ;;  %v2564_v43 = vld [vmem:[#allocation8 + $0xae8] sm:$0xff]  ;;  %v1180_v1 = vadd.f32 %v4689_v59, %v1179_v40 }
 0x41d   :  { %v2164_v54 = vmax.f32 %v2067_v46, 0.0  ;;  %v1185_v46 = vand.u32 2147483647, %v4679_v35  ;;  %v1184_v35 = vsel %vm4729_vm10, %v4689_v59, %v1180_v1  ;;  %v2508_v59 = vld [vmem:[#allocation8 + $0x928] sm:$0xff] }
 0x41f   :  { %2222 = vmatmul.f32.vlgmr.msra.gmra.mxu3 %v2164_v54  ;;  %v2562_v54 = vld [vmem:[#allocation8 + $0xad8] sm:$0xff]  ;;  %vm1186_vm11 = vcmp.eq.f32.partialorder %v1185_v46, 8.507059e+37  ;;  %v3352_v46 = vld [vmem:[#allocation11 + $0x1] ss:$0 sm:$0xff] }
 0x420   :  { %2721 = vmatpush.msra.mxu3 %v2534_v47 }
 0x422   :  { %v2069_v16 = vpop.f32.mrf.mxu2  ;;  %2722 = vmatpush.msra.mxu3 %v2532_v58  ;;  %v1188_v58 = vor.u32 1.1754944e-38, %v1187_v42  ;;  %v3248_v42 = vld [vmem:[%s5043_s7 + $0x58] sm:$0xff] }
 0x423   :  { %v2070_v7 = vadd.f32 %v2069_v16, %v2047_v63  ;;  %v2512_v63 = vld [vmem:[#allocation8 + $0x948] sm:$0xff] }
 0x424   :  { %2723 = vmatpush.msra.mxu3 %v2530_v5  ;;  %v2560_v5 = vld [vmem:[#allocation8 + $0xac8] sm:$0xff] }
 0x425   :  { %v2166_v29 = vmax.f32 %v2070_v7, 0.0  ;;  %v2558_v7 = vld [vmem:[#allocation8 + $0xab8] sm:$0xff] }
 0x426   :  { %2724 = vmatpush.msra.mxu3 %v2528_v8  ;;  %v1189_v8 = vsel %vm1186_vm11, %v1188_v58, %v1184_v35  ;;  %v2321_v58 = vld [vmem:[#allocation14 + $0x18] sm:$0xff] }
 0x427   :  { %2225 = vmatmul.f32.gmra.mxu3 %v2166_v29  ;;  %v1020_v29 = vand.u32 2147483647, %v4686_v51  ;;  %v2550_v51 = vld [vmem:[#allocation8 + $0xa78] sm:$0xff]  ;;  %2347 = vmatpush.msrb.mxu2 %v2321_v58 }
 0x428   :  { %2725 = vmatpush.msra.mxu3 %v2526_v28  ;;  %v1193_v28 = vsub.f32 1.0, %v1192_v48  ;;  %v2499_v48 = vld [vmem:[#allocation8 + $0x8e0] sm:$0xff] }
 0x429   :  { %vm1021_vm15 = vcmp.eq.f32.partialorder %v1020_v29, 8.507059e+37  ;;  %2348 = vmatpush.msrb.mxu2 %v2320_v2 }
 0x42a   :  { %v2158_v49 = vpop.f32.mrf.mxu2  ;;  %2726 = vmatpush.msra.mxu3 %v2524_v12  ;;  %v1023_v12 = vor.u32 1.1754944e-38, %v1022_v4  ;;  %v1194_v26 = vmul.f32 %v4723_v50, %v1193_v28  ;;  %v2493_v4 = vld [vmem:[#allocation8 + $0x8b0] sm:$0xff] }
 0x42b   :  { %v2159_v24 = vadd.f32 %v2158_v49, %v2136_v41  ;;  %v1202_v41 = vand.u32 2147483648, %v4697_v11  ;;  %v1200_v49 = vand.u32 2147483647, %v4697_v11  ;;  %v2536_v11 = vld [vmem:[#allocation8 + $0xa08] sm:$0xff]  ;;  %v2489_v28 = vld [vmem:[#allocation8 + $0x890] sm:$0xff] }
 0x42c   :  { %2727 = vmatpush.msra.mxu3 %v2522_v0  ;;  %v1024_v22 = vsel %vm1021_vm15, %v1023_v12, %v1019_v20  ;;  %v2548_v0 = vld [vmem:[#allocation8 + $0xa68] sm:$0xff]  ;;  %v1195_v18 = vadd.f32 %v4723_v50, %v1194_v26  ;;  %v773_v12 = vsub.f32 0.0, %v4323_v53  ;;  %v2477_v26 = vld [vmem:[#allocation8 + $0x830] sm:$0xff] }
 0x42d   :  { %v2165_v21 = vmax.f32 %v2159_v24, 0.0  ;;  %v1203_v45 = vor.u32 1.1754944e-38, %v1202_v41  ;;  %v2544_v24 = vld [vmem:[#allocation8 + $0xa48] sm:$0xff]  ;;  %vm1201_vm5 = vcmp.eq.f32.partialorder %v1200_v49, 8.507059e+37  ;;  %v785_v41 = vsub.f32 0.0, %v4339_v3 }
 0x42e   :  { %2728 = vmatpush.msra.mxu3 %v2520_v25  ;;  %v1199_v25 = vsel %vm1198_vm3, %v4723_v50, %v1195_v18  ;;  %v805_v20 = vmul.f32 1.442695, %v773_v12  ;;  %v3353_v49 = vld [vmem:[#allocation13 + $0x1] ss:$0 sm:$0xff] }
 0x42f   :  { %2245 = vmatmul.f32.vlgmr.msra.gmra.mxu0 %v2165_v21  ;;  %2645 = vmatmul.f32.vlgmr.msrb.gmra.mxu3 %v4717_v31  ;;  %v1204_v40 = vsel %vm1201_vm5, %v1203_v45, %v1199_v25  ;;  %v3252_v21 = vld [vmem:[%s5043_s7 + $0x78] sm:$0xff]  ;;  %v829_v18 = vmul.f32 1.442695, %v785_v41  ;;  %v2472_v41 = vld [vmem:[#allocation8 + $0x808] sm:$0xff] }
 0x430   :  { %2729 = vmatpush.msra.mxu3 %v2518_v32  ;;  %2744 = vmatpush.msra.mxu0 %v2566_v37  ;;  %v3251_v32 = vld [vmem:[%s5043_s7 + $0x70] sm:$0xff]  ;;  %v3250_v37 = vld [vmem:[%s5043_s7 + $0x68] sm:$0xff] }
 0x431   :  { %2290 = vmatpush.msra.mxu1 %v3252_v21 }
 0x432   :  { %v2161_v47 = vpop.f32.mrf.mxu2  ;;  %2730 = vmatpush.msra.mxu3 %v2516_v36  ;;  %2745 = vmatpush.msra.mxu0 %v2564_v43  ;;  %v3246_v36 = vld [vmem:[%s5043_s7 + $0x48] sm:$0xff]  ;;  %v3245_v43 = vld [vmem:[%s5043_s7 + $0x40] sm:$0xff] }
 0x433   :  { %v2162_v61 = vadd.f32 %v2161_v47, %v2139_v34  ;;  %2291 = vmatpush.msra.mxu1 %v3251_v32 }
 0x434   :  { %2731 = vmatpush.msra.mxu3 %v2514_v9  ;;  %2746 = vmatpush.msra.mxu0 %v2562_v54 }
 0x435   :  { %v2167_v16 = vmax.f32 %v2162_v61, 0.0  ;;  %2292 = vmatpush.msra.mxu1 %v3250_v37 }
 0x436   :  { %2732 = vmatpush.msra.mxu3 %v2512_v63  ;;  %2747 = vmatpush.msra.mxu0 %v2560_v5  ;;  %v2501_v63 = vld [vmem:[#allocation8 + $0x8f0] sm:$0xff] }
 0x437   :  { %2248 = vmatmul.f32.gmra.mxu0 %v2167_v16  ;;  %2648 = vmatmul.f32.gmra.mxu3 %v1189_v8 }
 0x438   :  { %2733 = vmatpush.msra.mxu3 %v2510_v39  ;;  %2748 = vmatpush.msra.mxu0 %v2558_v7  ;;  %v2497_v39 = vld [vmem:[#allocation8 + $0x8d0] sm:$0xff] }
 0x439   :  { %2606 = vmatpush.msra.mxu2 %v2501_v63 }
 0x43a   :  { %2734 = vmatpush.msra.mxu3 %v2508_v59  ;;  %2749 = vmatpush.msra.mxu0 %v2556_v10  ;;  %v2491_v10 = vld [vmem:[#allocation8 + $0x8a0] sm:$0xff] }
 0x43b   :  { %2607 = vmatpush.msra.mxu2 %v2499_v48 }
 0x43c   :  { %2735 = vmatpush.msra.mxu3 %v2506_v15  ;;  %2750 = vmatpush.msra.mxu0 %v2554_v17  ;;  %v2485_v15 = vld [vmem:[#allocation8 + $0x870] sm:$0xff]  ;;  %v2483_v17 = vld [vmem:[#allocation8 + $0x860] sm:$0xff] }
 0x43d   :  { %2608 = vmatpush.msra.mxu2 %v2497_v39  ;;  %v2490_v39 = vld [vmem:[#allocation8 + $0x898] sm:$0xff] }
 0x43e   :  { %2736 = vmatpush.msra.mxu3 %v2504_v33  ;;  %2751 = vmatpush.msra.mxu0 %v2552_v44  ;;  %v2481_v33 = vld [vmem:[#allocation8 + $0x850] sm:$0xff]  ;;  %v2479_v44 = vld [vmem:[#allocation8 + $0x840] sm:$0xff] }
 0x43f   :  { %2668 = vmatmul.f32.vlgmr.msrb.gmra.mxu0 %v1024_v22  ;;  %2737 = vmatmul.f32.vlgmr.msra.gmra.mxu3 %v4717_v31  ;;  %v3249_v31 = vld [vmem:[%s5043_s7 + $0x60] sm:$0xff] }
 0x440   :  { %2752 = vmatpush.msra.mxu0 %v2550_v51  ;;  %2293 = vmatpush.msra.mxu1 %v3249_v31  ;;  %v2475_v51 = vld [vmem:[#allocation8 + $0x820] sm:$0xff] }
 0x442   :  { %2753 = vmatpush.msra.mxu0 %v2548_v0  ;;  %2294 = vmatpush.msra.mxu1 %v3248_v42  ;;  %v2471_v0 = vld [vmem:[#allocation8 + $0x800] sm:$0xff] }
 0x444   :  { %2754 = vmatpush.msra.mxu0 %v2546_v14  ;;  %2295 = vmatpush.msra.mxu1 %v3247_v57 }
 0x446   :  { %2755 = vmatpush.msra.mxu0 %v2544_v24  ;;  %2296 = vmatpush.msra.mxu1 %v3246_v36  ;;  %v2502_v36 = vld [vmem:[#allocation8 + $0x8f8] sm:$0xff] }
 0x447   :  { %2671 = vmatmul.f32.gmra.mxu0 %v1204_v40  ;;  %2740 = vmatmul.f32.gmra.mxu3 %v1189_v8  ;;  %v2495_v8 = vld [vmem:[#allocation8 + $0x8c0] sm:$0xff] }
 0x448   :  { %2756 = vmatpush.msra.mxu0 %v2542_v23  ;;  %2297 = vmatpush.msra.mxu1 %v3245_v43 }
 0x449   :  { %2609 = vmatpush.msra.mxu2 %v2495_v8  ;;  %v2488_v8 = vld [vmem:[#allocation8 + $0x888] sm:$0xff] }
 0x44a   :  { %2757 = vmatpush.msra.mxu0 %v2540_v27 }
 0x44b   :  { %2610 = vmatpush.msra.mxu2 %v2493_v4 }
 0x44c   :  { %2758 = vmatpush.msra.mxu0 %v2538_v38 }
 0x44d   :  { %2611 = vmatpush.msra.mxu2 %v2491_v10  ;;  %v2486_v10 = vld [vmem:[#allocation8 + $0x878] sm:$0xff] }
 0x44e   :  { %2759 = vmatpush.msra.mxu0 %v2536_v11 }
 0x44f   :  { %2760 = vmatmul.f32.vlgmr.msra.gmra.mxu0 %v1024_v22  ;;  %2612 = vmatpush.msra.mxu2 %v2489_v28  ;;  %v2473_v22 = vld [vmem:[#allocation8 + $0x810] sm:$0xff]  ;;  %v2484_v28 = vld [vmem:[#allocation8 + $0x868] sm:$0xff] }
 0x451   :  { %2613 = vmatpush.msra.mxu2 %v2487_v56 }
 0x453   :  { %2614 = vmatpush.msra.mxu2 %v2485_v15 }
 0x455   :  { %2615 = vmatpush.msra.mxu2 %v2483_v17  ;;  %v2482_v17 = vld [vmem:[#allocation8 + $0x858] sm:$0xff] }
 0x457   :  { %2763 = vmatmul.f32.gmra.mxu0 %v1204_v40  ;;  %2616 = vmatpush.msra.mxu2 %v2481_v33  ;;  %v2480_v33 = vld [vmem:[#allocation8 + $0x848] sm:$0xff] }
 0x459   :  { %2617 = vmatpush.msra.mxu2 %v2479_v44 }
 0x45b   :  { %2618 = vmatpush.msra.mxu2 %v2477_v26 }
 0x45d   :  { %2619 = vmatpush.msra.mxu2 %v2475_v51  ;;  %v2476_v51 = vld [vmem:[#allocation8 + $0x828] sm:$0xff] }
 0x45f   :  { %2620 = vmatpush.msra.mxu2 %v2473_v22  ;;  %v2474_v22 = vld [vmem:[#allocation8 + $0x818] sm:$0xff] }
 0x461   :  { %2621 = vmatpush.msra.mxu2 %v2471_v0  ;;  %v3354_v0 = vld [vmem:[#allocation16 + $0x1] ss:$0 sm:$0xff] }
 0x4a2   :  { %v2223_v1 = vpop.f32.mrf.mxu3 }
 0x4a3   :  { %v2224_v50 = vadd.f32 %v3352_v46, %v2223_v1  ;;  %v2500_v1 = vld [vmem:[#allocation8 + $0x8e8] sm:$0xff] }
 0x4aa   :  { %v2226_v9 = vpop.f32.mrf.mxu3 }
 0x4ab   :  { %v2227_v54 = vadd.f32 %v3352_v46, %v2226_v9  ;;  %v2496_v9 = vld [vmem:[#allocation8 + $0x8c8] sm:$0xff] }
 0x4ac   :  { %v2246_v52 = vpop.f32.mrf.mxu0 }
 0x4ad   :  { %v2247_v13 = vadd.f32 %v2246_v52, %v2224_v50 }
 0x4af   :  { %v2254_v34 = vmul.f32 1.442695, %v2247_v13  ;;  %vm2252_vm6 = vcmp.gt.f32.partialorder %v2247_v13, 0.0 }
 0x4b1   :  { %3456 = vpow2.f32 %v2254_v34 }
 0x4b4   :  { %v2249_v47 = vpop.f32.mrf.mxu0 }
 0x4b5   :  { %v2250_v61 = vadd.f32 %v2249_v47, %v2227_v54 }
 0x4b7   :  { %v3457_v5 = vpop.eup %3456  ;;  %v2256_v35 = vmul.f32 1.442695, %v2250_v61  ;;  %vm2253_vm7 = vcmp.gt.f32.partialorder %v2250_v61, 0.0 }
 0x4b8   :  { %v3243_v16 = vadd.f32 -1.0, %v3457_v5  ;;  %v2492_v5 = vld [vmem:[#allocation8 + $0x8a8] sm:$0xff] }
 0x4b9   :  { %3458 = vpow2.f32 %v2256_v35 }
 0x4ba   :  { %v2260_v7 = vsel %vm2252_vm6, %v2247_v13, %v3243_v16  ;;  %3460 = vpow2.f32 %v805_v20  ;;  %v2498_v13 = vld [vmem:[#allocation8 + $0x8d8] sm:$0xff] }
 0x4bb   :  { %3253 = vmatmul.msk.f32.vlgmr.msra.gmra.mxu1 %vm1648_vm0, %v2260_v7  ;;  %3462 = vpow2.f32 %v829_v18  ;;  %v2478_v20 = vld [vmem:[#allocation8 + $0x838] sm:$0xff] }
 0x4bc   :  { %v2438_v18 = vld [vmem:[#allocation17 + $0x18] sm:$0xff] }
 0x4bd   :  { %2459 = vmatpush.msrb.mxu1 %v2438_v18 }
 0x4bf   :  { %v3459_v59 = vpop.eup %3458 }
 0x4c0   :  { %v3244_v55 = vadd.f32 -1.0, %v3459_v59  ;;  %v3461_v14 = vpop.eup %3460 }
 0x4c1   :  { %v845_v24 = vadd.f32 1.0, %v3461_v14  ;;  %v3463_v23 = vpop.eup %3462 }
 0x4c2   :  { %v2261_v29 = vsel %vm2253_vm7, %v2250_v61, %v3244_v55  ;;  %v4789_v38 = vadd.f32 1.0, %v3463_v23  ;;  %v2494_v61 = vld [vmem:[#allocation8 + $0x8b8] sm:$0xff] }
 0x4c3   :  { %3254 = vmatmul.msk.f32.gmra.mxu1 %vm1648_vm0, %v2261_v29  ;;  %vm986_vm10 = vweird.f32 %v845_v24  ;;  %v992_v63 = vand.u32 2147483648, %v845_v24  ;;  %v990_v48 = vand.u32 2147483647, %v845_v24 }
 0x4c4   :  { %vm1166_vm14 = vweird.f32 %v4789_v38  ;;  %v1172_v29 = vand.u32 2147483648, %v4789_v38  ;;  %v1170_v15 = vand.u32 2147483647, %v4789_v38 }
 0x4c5   :  { %v993_v7 = vor.u32 1.1754944e-38, %v992_v63  ;;  %vm991_vm13 = vcmp.eq.f32.partialorder %v990_v48, 8.507059e+37 }
 0x4c6   :  { %v1173_v12 = vor.u32 1.1754944e-38, %v1172_v29  ;;  %vm1171_vm2 = vcmp.eq.f32.partialorder %v1170_v15, 8.507059e+37  ;;  %v788_v29 = vsub.f32 0.0, %v4341_v60  ;;  %v2567_v15 = vld [vmem:[#allocation8 + $0xb00] sm:$0xff] }
 0x538   :  { %v2299_v53 = vpop.f32.mrf.mxu1 }
 0x539   :  { %v2300_v45 = vadd.f32 %v3353_v49, %v2299_v53  ;;  %v2437_v53 = vld [vmem:[#allocation17 + $0x10] sm:$0xff] }
 0x53a   :  { %2460 = vmatpush.msrb.mxu1 %v2437_v53 }
 0x53b   :  { %v2307_v25 = vmul.f32 1.442695, %v2300_v45  ;;  %vm2305_vm8 = vcmp.gt.f32.partialorder %v2300_v45, 0.0 }
 0x53d   :  { %3464 = vpow2.f32 %v2307_v25  ;;  %v2595_v25 = vld [vmem:[#allocation8 + $0xbe0] sm:$0xff] }
 0x53e   :  { %3466 = vrcp.f32 %v845_v24 }
 0x540   :  { %v2302_v40 = vpop.f32.mrf.mxu1 }
 0x541   :  { %v2303_v27 = vadd.f32 %v3353_v49, %v2302_v40  ;;  %v2593_v40 = vld [vmem:[#allocation8 + $0xbd0] sm:$0xff] }
 0x543   :  { %v3465_v11 = vpop.eup %3464  ;;  %v2309_v3 = vmul.f32 1.442695, %v2303_v27  ;;  %vm2306_vm9 = vcmp.gt.f32.partialorder %v2303_v27, 0.0 }
 0x544   :  { %v3467_v21 = vpop.eup %3466  ;;  %v3255_v32 = vadd.f32 -1.0, %v3465_v11  ;;  %v2591_v11 = vld [vmem:[#allocation8 + $0xbc0] sm:$0xff] }
 0x545   :  { %3468 = vpow2.f32 %v2309_v3  ;;  %v982_v31 = vmul.f32 %v3467_v21, %v845_v24  ;;  %vm987_vm11 = vweird.f32 %v3467_v21 }
 0x546   :  { %3470 = vrcp.f32 %v4789_v38  ;;  %v2313_v37 = vmul.f32 1.6732632, %v3255_v32  ;;  %vm988_vm12 = vmor %vm986_vm10, %vm987_vm11  ;;  %v2589_v32 = vld [vmem:[#allocation8 + $0xbb0] sm:$0xff] }
 0x547   :  { %v983_v46 = vsub.f32 1.0, %v982_v31  ;;  %v2587_v31 = vld [vmem:[#allocation8 + $0xba0] sm:$0xff] }
 0x548   :  { %v2315_v42 = vsel %vm2305_vm8, %v2300_v45, %v2313_v37  ;;  %v2597_v45 = vld [vmem:[#allocation8 + $0xbf0] sm:$0xff] }
 0x549   :  { %v2317_v57 = vmul.f32 1.050701, %v2315_v42  ;;  %v984_v54 = vmul.f32 %v3467_v21, %v983_v46  ;;  %2675 = vmatpush.msra.mxu1 %v2597_v45 }
 0x54b   :  { %v3469_v43 = vpop.eup %3468  ;;  %3257 = vmatmul.msk.f32.vlgmr.msrb.gmra.mxu2 %vm1698_vm4, %v2317_v57  ;;  %v985_v35 = vadd.f32 %v3467_v21, %v984_v54  ;;  %2676 = vmatpush.msra.mxu1 %v2595_v25  ;;  %v2585_v57 = vld [vmem:[#allocation8 + $0xb90] sm:$0xff]  ;;  %v776_v54 = vsub.f32 0.0, %v4337_v62 }
 0x54c   :  { %v3471_v50 = vpop.eup %3470  ;;  %v3256_v52 = vadd.f32 -1.0, %v3469_v43  ;;  %2698 = vmatpush.msrb.mxu2 %v2502_v36  ;;  %v2583_v43 = vld [vmem:[#allocation8 + $0xb80] sm:$0xff] }
 0x54d   :  { %v1162_v47 = vmul.f32 %v3471_v50, %v4789_v38  ;;  %v989_v4 = vsel %vm988_vm12, %v3467_v21, %v985_v35  ;;  %vm1167_vm15 = vweird.f32 %v3471_v50  ;;  %2677 = vmatpush.msra.mxu1 %v2593_v40 }
 0x54e   :  { %v2314_v34 = vmul.f32 1.6732632, %v3256_v52  ;;  %2699 = vmatpush.msrb.mxu2 %v2500_v1  ;;  %v994_v55 = vsel %vm991_vm13, %v993_v7, %v989_v4  ;;  %vm1168_vm1 = vmor %vm1166_vm14, %vm1167_vm15  ;;  %v2581_v52 = vld [vmem:[#allocation8 + $0xb70] sm:$0xff]  ;;  %v2571_v7 = vld [vmem:[#allocation8 + $0xb20] sm:$0xff] }
 0x54f   :  { %v1163_v16 = vsub.f32 1.0, %v1162_v47  ;;  %2678 = vmatpush.msra.mxu1 %v2591_v11 }
 0x550   :  { %2700 = vmatpush.msrb.mxu2 %v2498_v13  ;;  %v2316_v58 = vsel %vm2306_vm9, %v2303_v27, %v2314_v34  ;;  %v2579_v34 = vld [vmem:[#allocation8 + $0xb60] sm:$0xff] }
 0x551   :  { %v2318_v2 = vmul.f32 1.050701, %v2316_v58  ;;  %v1164_v59 = vmul.f32 %v3471_v50, %v1163_v16  ;;  %2679 = vmatpush.msra.mxu1 %v2589_v32  ;;  %v811_v16 = vmul.f32 1.442695, %v776_v54 }
 0x552   :  { %2701 = vmatpush.msrb.mxu2 %v2496_v9 }
 0x553   :  { %3258 = vmatmul.msk.f32.gmra.mxu2 %vm1698_vm4, %v2318_v2  ;;  %v1165_v56 = vadd.f32 %v3471_v50, %v1164_v59  ;;  %2680 = vmatpush.msra.mxu1 %v2587_v31  ;;  %v2577_v2 = vld [vmem:[#allocation8 + $0xb50] sm:$0xff] }
 0x554   :  { %2702 = vmatpush.msrb.mxu2 %v2494_v61  ;;  %v2575_v61 = vld [vmem:[#allocation8 + $0xb40] sm:$0xff] }
 0x555   :  { %v1169_v44 = vsel %vm1168_vm1, %v3471_v50, %v1165_v56  ;;  %2681 = vmatpush.msra.mxu1 %v2585_v57 }
 0x556   :  { %2703 = vmatpush.msrb.mxu2 %v2492_v5  ;;  %v1174_v26 = vsel %vm1171_vm2, %v1173_v12, %v1169_v44  ;;  %v2573_v5 = vld [vmem:[#allocation8 + $0xb30] sm:$0xff] }
 0x557   :  { %2682 = vmatpush.msra.mxu1 %v2583_v43 }
 0x558   :  { %2704 = vmatpush.msrb.mxu2 %v2490_v39 }
 0x559   :  { %2683 = vmatpush.msra.mxu1 %v2581_v52 }
 0x55a   :  { %2705 = vmatpush.msrb.mxu2 %v2488_v8 }
 0x55b   :  { %2622 = vmatmul.f32.vlgmr.msra.gmra.mxu2 %v994_v55  ;;  %2684 = vmatpush.msra.mxu1 %v2579_v34 }
 0x55c   :  { %2706 = vmatpush.msrb.mxu2 %v2486_v10  ;;  %v2569_v10 = vld [vmem:[#allocation8 + $0xb10] sm:$0xff] }
 0x55d   :  { %2685 = vmatpush.msra.mxu1 %v2577_v2 }
 0x55e   :  { %2707 = vmatpush.msrb.mxu2 %v2484_v28 }
 0x55f   :  { %2686 = vmatpush.msra.mxu1 %v2575_v61 }
 0x560   :  { %2708 = vmatpush.msrb.mxu2 %v2482_v17 }
 0x561   :  { %2687 = vmatpush.msra.mxu1 %v2573_v5 }
 0x562   :  { %2709 = vmatpush.msrb.mxu2 %v2480_v33 }
 0x563   :  { %2625 = vmatmul.f32.gmra.mxu2 %v1174_v26  ;;  %2688 = vmatpush.msra.mxu1 %v2571_v7 }
 0x564   :  { %2710 = vmatpush.msrb.mxu2 %v2478_v20 }
 0x565   :  { %2689 = vmatpush.msra.mxu1 %v2569_v10 }
 0x566   :  { %2711 = vmatpush.msrb.mxu2 %v2476_v51 }
 0x567   :  { %2690 = vmatpush.msra.mxu1 %v2567_v15 }
 0x568   :  { %2712 = vmatpush.msrb.mxu2 %v2474_v22 }
 0x56a   :  { %2713 = vmatpush.msrb.mxu2 %v2472_v41 }
 0x56b   :  { %2714 = vmatmul.f32.vlgmr.msrb.gmra.mxu2 %v994_v55 }
 0x573   :  { %2717 = vmatmul.f32.gmra.mxu2 %v1174_v26  ;;  %v835_v26 = vmul.f32 1.442695, %v788_v29 }
 0x5ce   :  { %v2350_v49 = vpop.f32.mrf.mxu2 }
 0x5cf   :  { %v4798_v14 = vadd.f32 %v3354_v0, %v2350_v49 }
 0x5d1   :  { %v4801_v24 = vmul.f32 0.70710677, %v4798_v14 }
 0x5d3   :  { %v4804_v23 = vand.u32 2147483647, %v4801_v24  ;;  %vm2360_vm12 = vcmp.lt.f32.partialorder %v4801_v24, 0.0 }
 0x5d5   :  { %v2366_v27 = vmul.f32 0.3275911, %v4804_v23  ;;  %v2418_v62 = vsub.f32 0.0, %v4804_v23 }
 0x5d6   :  { %v2353_v38 = vpop.f32.mrf.mxu2 }
 0x5d7   :  { %v2368_v3 = vadd.f32 1.0, %v2366_v27  ;;  %v4807_v21 = vadd.f32 %v3354_v0, %v2353_v38  ;;  %v2420_v17 = vmul.f32 %v2418_v62, %v4804_v23  ;;  %v2594_v62 = vld [vmem:[#allocation8 + $0xbd8] sm:$0xff] }
 0x5d9   :  { %3472 = vrcp.f32 %v2368_v3  ;;  %v4810_v37 = vmul.f32 0.70710677, %v4807_v21  ;;  %v2381_v9 = vand.u32 2147483648, %v2368_v3  ;;  %v2379_v58 = vand.u32 2147483647, %v2368_v3 }
 0x5da   :  { %vm2375_vm5 = vweird.f32 %v2368_v3  ;;  %v2422_v41 = vmul.f32 1.442695, %v2420_v17  ;;  %v2357_v10 = vmul.f32 0.5, %v4807_v21  ;;  %v2588_v17 = vld [vmem:[#allocation8 + $0xba8] sm:$0xff] }
 0x5db   :  { %v4813_v42 = vand.u32 2147483647, %v4810_v37  ;;  %v2382_v35 = vor.u32 1.1754944e-38, %v2381_v9  ;;  %vm2380_vm7 = vcmp.eq.f32.partialorder %v2379_v58, 8.507059e+37  ;;  %v2356_v58 = vmul.f32 0.5, %v4798_v14 }
 0x5dc   :  { %vm2361_vm13 = vcmp.lt.f32.partialorder %v4810_v37, 0.0 }
 0x5dd   :  { %v2367_v36 = vmul.f32 0.3275911, %v4813_v42  ;;  %v2419_v49 = vsub.f32 0.0, %v4813_v42  ;;  %v2363_v14 = vsel %vm2361_vm13, -1.0, %v3907_v6 }
 0x5df   :  { %v3473_v1 = vpop.eup %3472  ;;  %v2369_v50 = vadd.f32 1.0, %v2367_v36  ;;  %v2421_v38 = vmul.f32 %v2419_v49, %v4813_v42  ;;  %v2362_v42 = vsel %vm2360_vm12, -1.0, %v3907_v6  ;;  %v3273_v49 = vld [vmem:[%s5041_s5 + $0x260] sm:$0xff] }
 0x5e0   :  { %v2371_v46 = vmul.f32 %v3473_v1, %v2368_v3  ;;  %vm2376_vm3 = vweird.f32 %v3473_v1 }
 0x5e1   :  { %3474 = vrcp.f32 %v2369_v50  ;;  %vm2377_vm6 = vmor %vm2375_vm5, %vm2376_vm3  ;;  %v2396_v56 = vand.u32 2147483648, %v2369_v50  ;;  %v2394_v33 = vand.u32 2147483647, %v2369_v50  ;;  %vm2390_vm9 = vweird.f32 %v2369_v50 }
 0x5e2   :  { %v2372_v13 = vsub.f32 1.0, %v2371_v46  ;;  %3476 = vpow2.f32 %v811_v16  ;;  %v2424_v36 = vmul.f32 1.442695, %v2421_v38  ;;  %v2596_v16 = vld [vmem:[#allocation8 + $0xbe8] sm:$0xff] }
 0x5e3   :  { %v2397_v22 = vor.u32 1.1754944e-38, %v2396_v56  ;;  %vm2395_vm11 = vcmp.eq.f32.partialorder %v2394_v33, 8.507059e+37  ;;  %3478 = vpow2.f32 %v835_v26  ;;  %v2590_v56 = vld [vmem:[#allocation8 + $0xbb8] sm:$0xff] }
 0x5e4   :  { %v2373_v47 = vmul.f32 %v3473_v1, %v2372_v13  ;;  %3480 = vpow2.f32 %v2422_v41 }
 0x5e6   :  { %v2374_v63 = vadd.f32 %v3473_v1, %v2373_v47 }
 0x5e7   :  { %v3475_v48 = vpop.eup %3474 }
 0x5e8   :  { %v2378_v39 = vsel %vm2377_vm6, %v3473_v1, %v2374_v63  ;;  %v2386_v4 = vmul.f32 %v3475_v48, %v2369_v50  ;;  %vm2391_vm8 = vweird.f32 %v3475_v48  ;;  %v3477_v60 = vpop.eup %3476 }
 0x5e9   :  { %v2383_v8 = vsel %vm2380_vm7, %v2382_v35, %v2378_v39  ;;  %vm2392_vm10 = vmor %vm2390_vm9, %vm2391_vm8  ;;  %v4821_v40 = vadd.f32 1.0, %v3477_v60  ;;  %v3479_v31 = vpop.eup %3478  ;;  %v2598_v35 = vld [vmem:[#allocation8 + $0xbf8] sm:$0xff] }
 0x5ea   :  { %v2400_v59 = vmul.f32 1.0614054, %v2383_v8  ;;  %v2387_v55 = vsub.f32 1.0, %v2386_v4  ;;  %v3481_v43 = vpop.eup %3480  ;;  %v4826_v52 = vadd.f32 1.0, %v3479_v31 }
 0x5eb   :  { %3482 = vrcp.f32 %v4821_v40  ;;  %vm1031_vm14 = vweird.f32 %v4821_v40  ;;  %v1037_v15 = vand.u32 2147483648, %v4821_v40 }
 0x5ec   :  { %v2402_v28 = vadd.f32 -1.4531521, %v2400_v59  ;;  %v2388_v12 = vmul.f32 %v3475_v48, %v2387_v55  ;;  %3484 = vpow2.f32 %v2424_v36  ;;  %v2592_v59 = vld [vmem:[#allocation8 + $0xbc8] sm:$0xff]  ;;  %vm1211_vm3 = vweird.f32 %v4826_v52 }
 0x5ed   :  { %3486 = vrcp.f32 %v4826_v52  ;;  %v1038_v41 = vor.u32 1.1754944e-38, %v1037_v15  ;;  %v1215_v38 = vand.u32 2147483647, %v4826_v52 }
 0x5ee   :  { %v2404_v44 = vmul.f32 %v2402_v28, %v2383_v8  ;;  %v2389_v20 = vadd.f32 %v3475_v48, %v2388_v12  ;;  %v1035_v12 = vand.u32 2147483647, %v4821_v40 }
 0x5ef   :  { %vm1216_vm7 = vcmp.eq.f32.partialorder %v1215_v38, 8.507059e+37 }
 0x5f0   :  { %v2406_v51 = vadd.f32 1.4214138, %v2404_v44  ;;  %v2393_v0 = vsel %vm2392_vm10, %v3475_v48, %v2389_v20  ;;  %v3276_v44 = vld [vmem:[%s5041_s5 + $0x278] sm:$0xff]  ;;  %v3275_v20 = vld [vmem:[%s5041_s5 + $0x270] sm:$0xff]  ;;  %vm1036_vm2 = vcmp.eq.f32.partialorder %v1035_v12, 8.507059e+37  ;;  %v3277_v12 = vld [vmem:[%s5041_s5 + $0x280] sm:$0xff] }
 0x5f1   :  { %v2398_v53 = vsel %vm2395_vm11, %v2397_v22, %v2393_v0  ;;  %v4829_v9 = vpop.eup %3482  ;;  %2832 = vmatpush.msra.mxu2 %v3276_v44  ;;  %v3274_v22 = vld [vmem:[%s5041_s5 + $0x268] sm:$0xff]  ;;  %v2669_v44 = vpop.f32.mrf.mxu0 }
 0x5f2   :  { %v2408_v18 = vmul.f32 %v2406_v51, %v2383_v8  ;;  %v2401_v45 = vmul.f32 1.0614054, %v2398_v53  ;;  %v1027_v24 = vmul.f32 %v4829_v9, %v4821_v40  ;;  %v3485_v63 = vpop.eup %3484  ;;  %vm1032_vm15 = vweird.f32 %v4829_v9  ;;  %v2586_v51 = vld [vmem:[#allocation8 + $0xb98] sm:$0xff]  ;;  %v2584_v0 = vld [vmem:[#allocation8 + $0xb88] sm:$0xff] }
 0x5f3   :  { %vm4856_vm1 = vmor %vm1031_vm14, %vm1032_vm15  ;;  %2833 = vmatpush.msra.mxu2 %v3275_v20  ;;  %v2580_v40 = vld [vmem:[#allocation8 + $0xb68] sm:$0xff] }
 0x5f4   :  { %v2410_v25 = vadd.f32 -0.28449672, %v2408_v18  ;;  %v2403_v23 = vadd.f32 -1.4531521, %v2401_v45  ;;  %v1028_v7 = vsub.f32 1.0, %v1027_v24  ;;  %v3272_v45 = vld [vmem:[%s5041_s5 + $0x258] sm:$0xff] }
 0x5f5   :  { %2834 = vmatpush.msra.mxu2 %v3274_v22  ;;  %v3264_v24 = vld [vmem:[%s5041_s5 + $0x218] sm:$0xff] }
 0x5f6   :  { %v2412_v27 = vmul.f32 %v2410_v25, %v2383_v8  ;;  %v2405_v11 = vmul.f32 %v2403_v23, %v2398_v53  ;;  %v1029_v37 = vmul.f32 %v4829_v9, %v1028_v7  ;;  %v1217_v23 = vand.u32 2147483648, %v4826_v52  ;;  %v3285_v7 = vld [vmem:[%s5041_s5 + $0x2c0] sm:$0xff] }
 0x5f7   :  { %2835 = vmatpush.msra.mxu2 %v3273_v49 }
 0x5f8   :  { %v2414_v3 = vadd.f32 0.2548296, %v2412_v27  ;;  %v2407_v32 = vadd.f32 1.4214138, %v2405_v11  ;;  %v1030_v21 = vadd.f32 %v4829_v9, %v1029_v37  ;;  %v2578_v11 = vld [vmem:[#allocation8 + $0xb58] sm:$0xff] }
 0x5f9   :  { %2836 = vmatpush.msra.mxu2 %v3272_v45  ;;  %v2672_v45 = vpop.f32.mrf.mxu0 }
 0x5fa   :  { %v2416_v57 = vmul.f32 %v2414_v3, %v2383_v8  ;;  %v2409_v1 = vmul.f32 %v2407_v32, %v2398_v53  ;;  %v4837_v8 = vpop.eup %3486  ;;  %v1034_v60 = vsel %vm4856_vm1, %v4829_v9, %v1030_v21  ;;  %v1218_v3 = vor.u32 1.1754944e-38, %v1217_v23  ;;  %v2576_v32 = vld [vmem:[#allocation8 + $0xb48] sm:$0xff]  ;;  %v3267_v9 = vld [vmem:[%s5041_s5 + $0x230] sm:$0xff]  ;;  %v2646_v21 = vpop.f32.mrf.mxu3 }
 0x5fb   :  { %v1207_v29 = vmul.f32 %v4837_v8, %v4826_v52  ;;  %vm1212_vm5 = vweird.f32 %v4837_v8  ;;  %v1039_v25 = vsel %vm1036_vm2, %v1038_v41, %v1034_v60  ;;  %v3270_v52 = vld [vmem:[%s5041_s5 + $0x248] sm:$0xff] }
 0x5fc   :  { %v2426_v46 = vmul.f32 %v3481_v43, %v2416_v57  ;;  %v2411_v50 = vadd.f32 -0.28449672, %v2409_v1  ;;  %vm1213_vm6 = vmor %vm1211_vm3, %vm1212_vm5  ;;  %v2574_v57 = vld [vmem:[#allocation8 + $0xb38] sm:$0xff]  ;;  %v2572_v43 = vld [vmem:[#allocation8 + $0xb28] sm:$0xff] }
 0x5fd   :  { %v1208_v33 = vsub.f32 1.0, %v1207_v29  ;;  %v2570_v1 = vld [vmem:[#allocation8 + $0xb18] sm:$0xff] }
 0x5fe   :  { %v2428_v13 = vsub.f32 1.0, %v2426_v46  ;;  %v2413_v34 = vmul.f32 %v2411_v50, %v2398_v53  ;;  %v2568_v46 = vld [vmem:[#allocation8 + $0xb08] sm:$0xff]  ;;  %v3271_v50 = vld [vmem:[%s5041_s5 + $0x250] sm:$0xff]  ;;  %v3280_v29 = vld [vmem:[%s5041_s5 + $0x298] sm:$0xff] }
 0x5ff   :  { %v1209_v18 = vmul.f32 %v4837_v8, %v1208_v33  ;;  %2837 = vmatpush.msra.mxu2 %v3271_v50 }
 0x600   :  { %v2430_v54 = vmul.f32 %v2428_v13, %v2362_v42  ;;  %v2415_v47 = vadd.f32 0.2548296, %v2413_v34  ;;  %v3292_v13 = vld [vmem:[%s5041_s5 + $0x2f8] sm:$0xff]  ;;  %v3269_v42 = vld [vmem:[%s5041_s5 + $0x240] sm:$0xff] }
 0x601   :  { %v1210_v27 = vadd.f32 %v4837_v8, %v1209_v18  ;;  %2855 = vmatpush.msrb.mxu3 %v3292_v13  ;;  %2838 = vmatpush.msra.mxu2 %v3270_v52  ;;  %v3268_v34 = vld [vmem:[%s5041_s5 + $0x238] sm:$0xff] }
 0x602   :  { %v2432_v2 = vadd.f32 1.0, %v2430_v54  ;;  %v2417_v61 = vmul.f32 %v2415_v47, %v2398_v53  ;;  %v2582_v53 = vld [vmem:[#allocation8 + $0xb78] sm:$0xff]  ;;  %v3266_v47 = vld [vmem:[%s5041_s5 + $0x228] sm:$0xff] }
 0x603   :  { %v1214_v31 = vsel %vm1213_vm6, %v4837_v8, %v1210_v27  ;;  %2839 = vmatpush.msra.mxu2 %v3269_v42  ;;  %v3291_v54 = vld [vmem:[%s5041_s5 + $0x2f0] sm:$0xff]  ;;  %v3284_v8 = vld [vmem:[%s5041_s5 + $0x2b8] sm:$0xff] }
 0x604   :  { %v2434_v5 = vmul.f32 %v2432_v2, %v2356_v58  ;;  %v2427_v48 = vmul.f32 %v3485_v63, %v2417_v61  ;;  %v1219_v36 = vsel %vm1216_vm7, %v1218_v3, %v1214_v31  ;;  %2856 = vmatpush.msrb.mxu3 %v3291_v54  ;;  %v3290_v58 = vld [vmem:[%s5041_s5 + $0x2e8] sm:$0xff]  ;;  %v3265_v2 = vld [vmem:[%s5041_s5 + $0x220] sm:$0xff]  ;;  %v3288_v63 = vld [vmem:[%s5041_s5 + $0x2d8] sm:$0xff]  ;;  %vm3106_vm7 = vcmask 261120  }
 0x605   :  { %2840 = vmatpush.msra.mxu2 %v3268_v34  ;;  %v3289_v61 = vld [vmem:[%s5041_s5 + $0x2e0] sm:$0xff] }
 0x606   :  { %3259 = vmatmul.msk.f32.vlgmr.msrb.gmra.mxu1 %vm1698_vm4, %v2434_v5  ;;  %v2429_v39 = vsub.f32 1.0, %v2427_v48  ;;  %2857 = vmatpush.msrb.mxu3 %v3290_v58  ;;  %v3263_v5 = vld [vmem:[%s5041_s5 + $0x210] sm:$0xff]  ;;  %v3262_v48 = vld [vmem:[%s5041_s5 + $0x208] sm:$0xff] }
 0x607   :  { %2767 = vmatpush.msrb.mxu1 %v2598_v35  ;;  %2841 = vmatpush.msra.mxu2 %v3267_v9  ;;  %v3287_v35 = vld [vmem:[%s5041_s5 + $0x2d0] sm:$0xff] }
 0x608   :  { %v2431_v4 = vmul.f32 %v2429_v39, %v2363_v14  ;;  %2858 = vmatpush.msrb.mxu3 %v3289_v61  ;;  %v3261_v39 = vld [vmem:[%s5041_s5 + $0x200] sm:$0xff]  ;;  %v3351_v14 = vld [vmem:[#allocation19] ss:$0 sm:$0xff]  ;;  %v3302_v61 = vld [vmem:[%s5043_s7 + $0xb8] sm:$0xff] }
 0x609   :  { %2768 = vmatpush.msrb.mxu1 %v2596_v16  ;;  %2842 = vmatpush.msra.mxu2 %v3266_v47  ;;  %v3286_v16 = vld [vmem:[%s5041_s5 + $0x2c8] sm:$0xff]  ;;  %v1843_v33 = vadd.f32 %v3351_v14, %v4677_v30 }
 0x60a   :  { %v2433_v55 = vadd.f32 1.0, %v2431_v4  ;;  %2859 = vmatpush.msrb.mxu3 %v3288_v63  ;;  %v3282_v4 = vld [vmem:[%s5041_s5 + $0x2a8] sm:$0xff]  ;;  %2916 = vmatpush.msrb.mxu0 %v3302_v61 }
 0x60b   :  { %2769 = vmatpush.msrb.mxu1 %v2594_v62  ;;  %2843 = vmatpush.msra.mxu2 %v3265_v2  ;;  %v3283_v62 = vld [vmem:[%s5041_s5 + $0x2b0] sm:$0xff]  ;;  %v3300_v63 = vld [vmem:[%s5043_s7 + $0xa8] sm:$0xff] }
 0x60c   :  { %v2435_v28 = vmul.f32 %v2433_v55, %v2357_v10  ;;  %2860 = vmatpush.msrb.mxu3 %v3287_v35  ;;  %v1842_v10 = vadd.f32 %v3351_v14, %v4668_v19  ;;  %v2623_v55 = vpop.f32.mrf.mxu2  ;;  %v3278_v19 = vld [vmem:[%s5041_s5 + $0x288] sm:$0xff]  ;;  %v3298_v35 = vld [vmem:[%s5043_s7 + $0x98] sm:$0xff] }
 0x60d   :  { %2770 = vmatpush.msrb.mxu1 %v2592_v59  ;;  %2844 = vmatpush.msra.mxu2 %v3264_v24  ;;  %v3281_v59 = vld [vmem:[%s5041_s5 + $0x2a0] sm:$0xff]  ;;  %v3301_v24 = vld [vmem:[%s5043_s7 + $0xb0] sm:$0xff] }
 0x60e   :  { %3260 = vmatmul.msk.f32.gmra.mxu1 %vm1698_vm4, %v2435_v28  ;;  %2861 = vmatpush.msrb.mxu3 %v3286_v16  ;;  %v2600_v28 = vld [vmem:[#allocation10 + $0x4] sm:$0x3]  ;;  %v3296_v16 = vld [vmem:[%s5043_s7 + $0x88] sm:$0xff] }
 0x60f   :  { %2771 = vmatpush.msrb.mxu1 %v2590_v56  ;;  %2845 = vmatpush.msra.mxu2 %v3263_v5  ;;  %v2602_v15 = vperm.slane %v2600_v28, 0  ;;  %v3299_v5 = vld [vmem:[%s5043_s7 + $0xa0] sm:$0xff] }
 0x610   :  { %2862 = vmatpush.msrb.mxu3 %v3285_v7  ;;  %2917 = vmatpush.msrb.mxu0 %v3301_v24 }
 0x611   :  { %2772 = vmatpush.msrb.mxu1 %v2588_v17  ;;  %2846 = vmatpush.msra.mxu2 %v3262_v48  ;;  %v3279_v17 = vld [vmem:[%s5041_s5 + $0x290] sm:$0xff]  ;;  %v2624_v20 = vadd.f32 %v2623_v55, %v2602_v15  ;;  %s3181_s5 = sshll.u32 %s5087_s24, 4  ;;  %s3182_s5 = int_to_ptr.hbm [resolvable:$true] %s3181_s5 }
 0x612   :  { %2863 = vmatpush.msrb.mxu3 %v3284_v8  ;;  %2918 = vmatpush.msrb.mxu0 %v3300_v63  ;;  %v3297_v48 = vld [vmem:[%s5043_s7 + $0x90] sm:$0xff]  ;;  %v3355_v8 = vld [vmem:[#allocation11 + $0x2] ss:$0 sm:$0xff] }
 0x613   :  { %2773 = vmatpush.msrb.mxu1 %v2586_v51  ;;  %2847 = vmatpush.msra.mxu2 %v3261_v39  ;;  %v2647_v41 = vadd.f32 %v2646_v21, %v2624_v20  ;;  %v3295_v39 = vld [vmem:[%s5043_s7 + $0x80] sm:$0xff]  ;;  %v2946_v20 = vld [vmem:[#allocation14 + $0x20] sm:$0xff] }
 0x614   :  { %2864 = vmatpush.msrb.mxu3 %v3283_v62  ;;  %v2626_v26 = vpop.f32.mrf.mxu2  ;;  %2919 = vmatpush.msrb.mxu0 %v3299_v5 }
 0x615   :  { %2774 = vmatpush.msrb.mxu1 %v2584_v0  ;;  %v2649_v0 = vpop.f32.mrf.mxu3  ;;  %v2627_v60 = vadd.f32 %v2626_v26, %v2602_v15  ;;  %v2670_v18 = vadd.f32 %v2669_v44, %v2647_v41  ;;  %v2947_v44 = vld [vmem:[#allocation14 + $0x28] sm:$0xff]  ;;  %v3356_v26 = vld [vmem:[#allocation13 + $0x2] ss:$0 sm:$0xff] }
 0x616   :  { %2691 = vmatmul.f32.vlgmr.msra.gmra.mxu1 %v1039_v25  ;;  %2865 = vmatpush.msrb.mxu3 %v3282_v4 }
 0x617   :  { %2775 = vmatpush.msrb.mxu1 %v2582_v53  ;;  %v2650_v23 = vadd.f32 %v2649_v0, %v2627_v60  ;;  %2920 = vmatpush.msrb.mxu0 %v3298_v35 }
 0x618   :  { %2866 = vmatpush.msrb.mxu3 %v3281_v59 }
 0x619   :  { %2776 = vmatpush.msrb.mxu1 %v2580_v40  ;;  %v2603_v40 = vperm.slane %v2600_v28, 1  ;;  %v2673_v38 = vadd.f32 %v2672_v45, %v2650_v23  ;;  %2921 = vmatpush.msrb.mxu0 %v3297_v48 }
 0x61a   :  { %2867 = vmatpush.msrb.mxu3 %v3280_v29 }
 0x61b   :  { %2777 = vmatpush.msrb.mxu1 %v2578_v11  ;;  %2922 = vmatpush.msrb.mxu0 %v3296_v16 }
 0x61c   :  { %2868 = vmatpush.msrb.mxu3 %v3279_v17 }
 0x61d   :  { %2778 = vmatpush.msrb.mxu1 %v2576_v32  ;;  %v2738_v11 = vpop.f32.mrf.mxu3  ;;  %2923 = vmatpush.msrb.mxu0 %v3295_v39 }
 0x61e   :  { %2694 = vmatmul.f32.gmra.mxu1 %v1219_v36  ;;  %2869 = vmatpush.msrb.mxu3 %v3278_v19 }
 0x61f   :  { %2779 = vmatpush.msrb.mxu1 %v2574_v57 }
 0x620   :  { %2870 = vmatpush.msrb.mxu3 %v3277_v12 }
 0x621   :  { %2780 = vmatpush.msrb.mxu1 %v2572_v43 }
 0x622   :  { %3315 = vmatpush.msra.mxu3 %v3302_v61 }
 0x623   :  { %2781 = vmatpush.msrb.mxu1 %v2570_v1 }
 0x624   :  { %3316 = vmatpush.msra.mxu3 %v3301_v24 }
 0x625   :  { %2782 = vmatpush.msrb.mxu1 %v2568_v46  ;;  %v2741_v13 = vpop.f32.mrf.mxu3 }
 0x626   :  { %2783 = vmatmul.f32.vlgmr.msrb.gmra.mxu1 %v1039_v25  ;;  %v2715_v25 = vpop.f32.mrf.mxu2  ;;  %3317 = vmatpush.msra.mxu3 %v3300_v63 }
 0x627   :  { %v2716_v30 = vadd.f32 %v2715_v25, %v2603_v40  ;;  %2973 = vmatpush.msra.mxu1 %v2947_v44  ;;  %v3100_v44 = vld [vmem:[%s5049_s13 + $0x10] sm:$0xff] }
 0x628   :  { %3318 = vmatpush.msra.mxu3 %v3299_v5 }
 0x629   :  { %v2739_v31 = vadd.f32 %v2738_v11, %v2716_v30  ;;  %2974 = vmatpush.msra.mxu1 %v2946_v20 }
 0x62a   :  { %3319 = vmatpush.msra.mxu3 %v3298_v35 }
 0x62c   :  { %3320 = vmatpush.msra.mxu3 %v3297_v48 }
 0x62e   :  { %2786 = vmatmul.f32.gmra.mxu1 %v1219_v36  ;;  %v2761_v36 = vpop.f32.mrf.mxu0  ;;  %v2718_v43 = vpop.f32.mrf.mxu2  ;;  %3321 = vmatpush.msra.mxu3 %v3296_v16 }
 0x62f   :  { %v2719_v1 = vadd.f32 %v2718_v43, %v2603_v40  ;;  %v2762_v46 = vadd.f32 %v2761_v36, %v2739_v31 }
 0x630   :  { %3322 = vmatpush.msra.mxu3 %v3295_v39 }
 0x631   :  { %v2742_v42 = vadd.f32 %v2741_v13, %v2719_v1 }
 0x636   :  { %v2764_v9 = vpop.f32.mrf.mxu0 }
 0x637   :  { %v2765_v54 = vadd.f32 %v2764_v9, %v2742_v42 }
 0x683   :  { %v2462_v37 = vpop.f32.mrf.mxu1 }
 0x684   :  { %v4952_v56 = vadd.f32 %v2462_v37, %v1842_v10 }
 0x68b   :  { %v2465_v51 = vpop.f32.mrf.mxu1 }
 0x68c   :  { %v4964_v22 = vadd.f32 %v2465_v51, %v1843_v33 }
 0x693   :  { %v2692_v49 = vpop.f32.mrf.mxu1 }
 0x694   :  { %v2693_v53 = vadd.f32 %v2692_v49, %v2670_v18 }
 0x696   :  { %v2790_v27 = vmax.f32 %v2693_v53, 0.0 }
 0x698   :  { %2848 = vmatmul.f32.vlgmr.msra.gmra.mxu2 %v2790_v27 }
 0x69b   :  { %v2695_v3 = vpop.f32.mrf.mxu1 }
 0x69c   :  { %v2696_v32 = vadd.f32 %v2695_v3, %v2673_v38 }
 0x69e   :  { %v2792_v57 = vmax.f32 %v2696_v32, 0.0  ;;  %v3357_v32 = vld [vmem:[#allocation16 + $0x2] ss:$0 sm:$0xff] }
 0x6a0   :  { %2851 = vmatmul.f32.gmra.mxu2 %v2792_v57 }
 0x6a3   :  { %v2784_v50 = vpop.f32.mrf.mxu1 }
 0x6a4   :  { %v2785_v52 = vadd.f32 %v2784_v50, %v2762_v46 }
 0x6a6   :  { %v2791_v34 = vmax.f32 %v2785_v52, 0.0 }
 0x6a8   :  { %2871 = vmatmul.f32.vlgmr.msrb.gmra.mxu3 %v2791_v34 }
 0x6ab   :  { %v2787_v47 = vpop.f32.mrf.mxu1 }
 0x6ac   :  { %v2788_v58 = vadd.f32 %v2787_v47, %v2765_v54 }
 0x6ae   :  { %v2793_v2 = vmax.f32 %v2788_v58, 0.0 }
 0x6b0   :  { %2874 = vmatmul.f32.gmra.mxu3 %v2793_v2 }
 0x71b   :  { %v2849_v7 = vpop.f32.mrf.mxu2 }
 0x71c   :  { %v2850_v14 = vadd.f32 %v3355_v8, %v2849_v7  ;;  %v3064_v7 = vld [vmem:[#allocation17 + $0x28] sm:$0xff] }
 0x71d   :  { %3085 = vmatpush.msra.mxu0 %v3064_v7  ;;  %v3358_v7 = vld [vmem:[#allocation20] ss:$0 sm:$0xff] }
 0x723   :  { %v2852_v10 = vpop.f32.mrf.mxu2 }
 0x724   :  { %v2853_v55 = vadd.f32 %v3355_v8, %v2852_v10 }
 0x72b   :  { %v2872_v62 = vpop.f32.mrf.mxu3 }
 0x72c   :  { %v2873_v4 = vadd.f32 %v2872_v62, %v2850_v14  ;;  %v3063_v14 = vld [vmem:[#allocation17 + $0x20] sm:$0xff] }
 0x72d   :  { %3086 = vmatpush.msra.mxu0 %v3063_v14 }
 0x72e   :  { %v2880_v59 = vmul.f32 1.442695, %v2873_v4  ;;  %vm2878_vm8 = vcmp.gt.f32.partialorder %v2873_v4, 0.0 }
 0x730   :  { %3488 = vpow2.f32 %v2880_v59 }
 0x733   :  { %v2875_v37 = vpop.f32.mrf.mxu3 }
 0x734   :  { %v2876_v29 = vadd.f32 %v2875_v37, %v2853_v55 }
 0x736   :  { %v3489_v28 = vpop.eup %3488  ;;  %v2882_v15 = vmul.f32 1.442695, %v2876_v29  ;;  %vm2879_vm9 = vcmp.gt.f32.partialorder %v2876_v29, 0.0 }
 0x737   :  { %v3293_v17 = vadd.f32 -1.0, %v3489_v28 }
 0x738   :  { %3490 = vpow2.f32 %v2882_v15 }
 0x739   :  { %v2886_v19 = vsel %vm2878_vm8, %v2873_v4, %v3293_v17 }
 0x73a   :  { %3303 = vmatmul.msk.f32.vlgmr.msrb.gmra.mxu0 %vm1648_vm0, %v2886_v19 }
 0x73e   :  { %v3491_v21 = vpop.eup %3490 }
 0x73f   :  { %v3294_v12 = vadd.f32 -1.0, %v3491_v21 }
 0x741   :  { %v2887_v33 = vsel %vm2879_vm9, %v2876_v29, %v3294_v12 }
 0x742   :  { %3304 = vmatmul.msk.f32.vlgmr.msra.gmra.mxu3 %vm1648_vm0, %v2887_v33  ;;  %v3101_v33 = vld [vmem:[%s5049_s13 + $0x18] sm:$0xff] }
 0x743   :  { %3125 = vmatpush.msrb.mxu1 %v3101_v33 }
 0x745   :  { %3126 = vmatpush.msrb.mxu1 %v3100_v44 }
 0x7b7   :  { %v2925_v51 = vpop.f32.mrf.mxu0 }
 0x7b8   :  { %v2926_v41 = vadd.f32 %v3356_v26, %v2925_v51 }
 0x7ba   :  { %v2933_v0 = vmul.f32 1.442695, %v2926_v41  ;;  %vm2931_vm10 = vcmp.gt.f32.partialorder %v2926_v41, 0.0 }
 0x7bc   :  { %3492 = vpow2.f32 %v2933_v0 }
 0x7c2   :  { %v3493_v60 = vpop.eup %3492 }
 0x7c3   :  { %v3305_v18 = vadd.f32 -1.0, %v3493_v60 }
 0x7c5   :  { %v2939_v49 = vmul.f32 1.6732632, %v3305_v18  ;;  %v2928_v53 = vpop.f32.mrf.mxu3 }
 0x7c6   :  { %v2929_v45 = vadd.f32 %v3356_v26, %v2928_v53 }
 0x7c7   :  { %v2941_v25 = vsel %vm2931_vm10, %v2926_v41, %v2939_v49 }
 0x7c8   :  { %v2943_v23 = vmul.f32 1.050701, %v2941_v25  ;;  %v2935_v40 = vmul.f32 1.442695, %v2929_v45  ;;  %vm2932_vm0 = vcmp.gt.f32.partialorder %v2929_v45, 0.0 }
 0x7ca   :  { %3494 = vpow2.f32 %v2935_v40  ;;  %3307 = vmatmul.msk.f32.vlgmr.msra.gmra.mxu1 %vm1698_vm4, %v2943_v23 }
 0x7d0   :  { %v3495_v27 = vpop.eup %3494 }
 0x7d1   :  { %v3306_v30 = vadd.f32 -1.0, %v3495_v27 }
 0x7d3   :  { %v2940_v38 = vmul.f32 1.6732632, %v3306_v30 }
 0x7d5   :  { %v2942_v11 = vsel %vm2932_vm0, %v2929_v45, %v2940_v38 }
 0x7d6   :  { %v2944_v3 = vmul.f32 1.050701, %v2942_v11 }
 0x7d8   :  { %3308 = vmatmul.msk.f32.gmra.mxu1 %vm1698_vm4, %v2944_v3 }
 0x847   :  { %v2976_v31 = vpop.f32.mrf.mxu1 }
 0x848   :  { %v4994_v57 = vadd.f32 %v3357_v32, %v2976_v31 }
 0x84a   :  { %v4997_v36 = vmul.f32 0.70710677, %v4994_v57  ;;  %v2982_v31 = vmul.f32 0.5, %v4994_v57 }
 0x84c   :  { %v2990_v43 = vand.u32 2147483647, %v4997_v36  ;;  %vm2986_vm5 = vcmp.lt.f32.partialorder %v4997_v36, 0.0 }
 0x84d   :  { %v2988_v38 = vsel %vm2986_vm5, -1.0, %v3907_v6 }
 0x84e   :  { %v2992_v1 = vmul.f32 0.3275911, %v2990_v43  ;;  %v3044_v16 = vsub.f32 0.0, %v2990_v43 }
 0x850   :  { %v2994_v46 = vadd.f32 1.0, %v2992_v1  ;;  %v3046_v4 = vmul.f32 %v3044_v16, %v2990_v43 }
 0x852   :  { %3496 = vrcp.f32 %v2994_v46  ;;  %v3007_v47 = vand.u32 2147483648, %v2994_v46  ;;  %v3005_v61 = vand.u32 2147483647, %v2994_v46  ;;  %vm3001_vm12 = vweird.f32 %v2994_v46 }
 0x853   :  { %v3048_v29 = vmul.f32 1.442695, %v3046_v4 }
 0x854   :  { %v3008_v5 = vor.u32 1.1754944e-38, %v3007_v47  ;;  %vm3006_vm14 = vcmp.eq.f32.partialorder %v3005_v61, 8.507059e+37 }
 0x855   :  { %v2979_v50 = vpop.f32.mrf.mxu1 }
 0x856   :  { %v5000_v52 = vadd.f32 %v3357_v32, %v2979_v50 }
 0x858   :  { %v3497_v13 = vpop.eup %3496  ;;  %v5003_v42 = vmul.f32 0.70710677, %v5000_v52 }
 0x859   :  { %v2997_v34 = vmul.f32 %v3497_v13, %v2994_v46  ;;  %vm3002_vm11 = vweird.f32 %v3497_v13 }
 0x85a   :  { %v2991_v9 = vand.u32 2147483647, %v5003_v42  ;;  %vm3003_vm13 = vmor %vm3001_vm12, %vm3002_vm11  ;;  %vm2987_vm6 = vcmp.lt.f32.partialorder %v5003_v42, 0.0  ;;  %v3139_v42 = vld [vmem:[#allocation22 + $0x8] sm:$0xff] }
 0x85b   :  { %v2998_v54 = vsub.f32 1.0, %v2997_v34  ;;  %v2989_v47 = vsel %vm2987_vm6, -1.0, %v3907_v6  ;;  %3164 = vmatpush.msrb.mxu2 %v3139_v42 }
 0x85c   :  { %v2993_v58 = vmul.f32 0.3275911, %v2991_v9  ;;  %v3045_v0 = vsub.f32 0.0, %v2991_v9 }
 0x85d   :  { %v2999_v2 = vmul.f32 %v3497_v13, %v2998_v54 }
 0x85e   :  { %v2995_v24 = vadd.f32 1.0, %v2993_v58  ;;  %v3047_v25 = vmul.f32 %v3045_v0, %v2991_v9 }
 0x85f   :  { %v3000_v63 = vadd.f32 %v3497_v13, %v2999_v2  ;;  %v2983_v2 = vmul.f32 0.5, %v5000_v52 }
 0x860   :  { %3498 = vrcp.f32 %v2995_v24  ;;  %v3022_v28 = vand.u32 2147483648, %v2995_v24  ;;  %v3020_v19 = vand.u32 2147483647, %v2995_v24  ;;  %vm3016_vm1 = vweird.f32 %v2995_v24 }
 0x861   :  { %v3004_v35 = vsel %vm3003_vm13, %v3497_v13, %v3000_v63  ;;  %3500 = vpow2.f32 %v3048_v29  ;;  %v3050_v11 = vmul.f32 1.442695, %v3047_v25  ;;  %v3098_v63 = vld [vmem:[%s5049_s13] sm:$0xff] }
 0x862   :  { %v3009_v48 = vsel %vm3006_vm14, %v3008_v5, %v3004_v35  ;;  %v3023_v20 = vor.u32 1.1754944e-38, %v3022_v28  ;;  %vm3021_vm3 = vcmp.eq.f32.partialorder %v3020_v19, 8.507059e+37 }
 0x863   :  { %v3026_v39 = vmul.f32 1.0614054, %v3009_v48  ;;  %3502 = vpow2.f32 %v3050_v11 }
 0x865   :  { %v3028_v8 = vadd.f32 -1.4531521, %v3026_v39  ;;  %v3138_v39 = vld [vmem:[#allocation22] sm:$0xff] }
 0x866   :  { %v3499_v62 = vpop.eup %3498  ;;  %3165 = vmatpush.msrb.mxu2 %v3138_v39 }
 0x867   :  { %v3030_v59 = vmul.f32 %v3028_v8, %v3009_v48  ;;  %v3012_v10 = vmul.f32 %v3499_v62, %v2995_v24  ;;  %vm3017_vm15 = vweird.f32 %v3499_v62  ;;  %v3501_v45 = vpop.eup %3500  ;;  %v3099_v24 = vld [vmem:[%s5049_s13 + $0x8] sm:$0xff]  ;;  %s3908_s13 = smov [#allocation25]  }
 0x868   :  { %vm3018_vm2 = vmor %vm3016_vm1, %vm3017_vm15  ;;  %3127 = vmatpush.msrb.mxu1 %v3099_v24  ;;  %s3179_s17 = sshll.u32 %s3908_s13, 4  ;;  %s3180_s17 = int_to_ptr.vmem [resolvable:$true] %s3179_s17 }
 0x869   :  { %v3032_v55 = vadd.f32 1.4214138, %v3030_v59  ;;  %v3013_v37 = vsub.f32 1.0, %v3012_v10  ;;  %v3503_v34 = vpop.eup %3502 }
 0x86a   :  { %3128 = vmatpush.msrb.mxu1 %v3098_v63 }
 0x86b   :  { %v3034_v15 = vmul.f32 %v3032_v55, %v3009_v48  ;;  %v3014_v17 = vmul.f32 %v3499_v62, %v3013_v37 }
 0x86d   :  { %v3036_v21 = vadd.f32 -0.28449672, %v3034_v15  ;;  %v3015_v12 = vadd.f32 %v3499_v62, %v3014_v17 }
 0x86f   :  { %v3038_v26 = vmul.f32 %v3036_v21, %v3009_v48  ;;  %v3019_v51 = vsel %vm3018_vm2, %v3499_v62, %v3015_v12 }
 0x870   :  { %v3024_v41 = vsel %vm3021_vm3, %v3023_v20, %v3019_v51 }
 0x871   :  { %v3040_v60 = vadd.f32 0.2548296, %v3038_v26  ;;  %v3027_v18 = vmul.f32 1.0614054, %v3024_v41 }
 0x873   :  { %v3042_v49 = vmul.f32 %v3040_v60, %v3009_v48  ;;  %v3029_v53 = vadd.f32 -1.4531521, %v3027_v18 }
 0x875   :  { %v3052_v23 = vmul.f32 %v3501_v45, %v3042_v49  ;;  %v3031_v40 = vmul.f32 %v3029_v53, %v3024_v41 }
 0x877   :  { %v3054_v27 = vsub.f32 1.0, %v3052_v23  ;;  %v3033_v30 = vadd.f32 1.4214138, %v3031_v40 }
 0x879   :  { %v3056_v3 = vmul.f32 %v3054_v27, %v2988_v38  ;;  %v3035_v32 = vmul.f32 %v3033_v30, %v3024_v41 }
 0x87b   :  { %v3058_v43 = vadd.f32 1.0, %v3056_v3  ;;  %v3037_v1 = vadd.f32 -0.28449672, %v3035_v32 }
 0x87d   :  { %v3060_v46 = vmul.f32 %v3058_v43, %v2982_v31  ;;  %v3039_v50 = vmul.f32 %v3037_v1, %v3024_v41 }
 0x87f   :  { %v3041_v13 = vadd.f32 0.2548296, %v3039_v50  ;;  %3309 = vmatmul.msk.f32.vlgmr.msra.gmra.mxu0 %vm1698_vm4, %v3060_v46 }
 0x881   :  { %v3043_v36 = vmul.f32 %v3041_v13, %v3024_v41 }
 0x883   :  { %v3053_v9 = vmul.f32 %v3503_v34, %v3043_v36 }
 0x885   :  { %v3055_v54 = vsub.f32 1.0, %v3053_v9 }
 0x887   :  { %v3057_v58 = vmul.f32 %v3055_v54, %v2989_v47 }
 0x889   :  { %v3059_v57 = vadd.f32 1.0, %v3057_v58 }
 0x88b   :  { %v3061_v61 = vmul.f32 %v3059_v57, %v2983_v2 }
 0x88d   :  { %3310 = vmatmul.msk.f32.gmra.mxu0 %vm1698_vm4, %v3061_v61 }
 0x8fc   :  { %v3088_v6 = vpop.f32.mrf.mxu0 }
 0x8fd   :  { %v3094_v5 = vadd.f32 %v3088_v6, %v4952_v56  ;;  %v3359_v56 = vld [vmem:[#allocation23] ss:$0 sm:$0xff] }
 0x8ff   :  { %v3096_v52 = vmax.f32 %v3094_v5, 0.0 }
 0x901   :  { %3311 = vmatmul.msk.f32.vlgmr.msrb.gmra.mxu1 %vm3106_vm7, %v3096_v52 }
 0x90a   :  { %v3091_v35 = vpop.f32.mrf.mxu0 }
 0x90b   :  { %v3095_v48 = vadd.f32 %v3091_v35, %v4964_v22 }
 0x90d   :  { %v3097_v16 = vmax.f32 %v3095_v48, 0.0 }
 0x90f   :  { %3312 = vmatmul.msk.f32.gmra.mxu1 %vm3106_vm7, %v3097_v16 }
 0x97e   :  { %v3130_v8 = vpop.f32.mrf.mxu1 }
 0x97f   :  { %v3131_v14 = vadd.f32 %v3358_v7, %v3130_v8 }
 0x981   :  { %v3136_v62 = vmax.f32 %v3131_v14, 0.0 }
 0x983   :  { %3313 = vmatmul.msk.f32.vlgmr.msrb.gmra.mxu2 %vm1698_vm4, %v3136_v62 }
 0x98c   :  { %v3133_v4 = vpop.f32.mrf.mxu1 }
 0x98d   :  { %v3134_v59 = vadd.f32 %v3358_v7, %v3133_v4 }
 0x98f   :  { %v3137_v10 = vmax.f32 %v3134_v59, 0.0 }
 0x991   :  { %3314 = vmatmul.msk.f32.gmra.mxu2 %vm1698_vm4, %v3137_v10 }
 0xa06   :  { %v3167_v55 = vpop.f32.mrf.mxu2 }
 0xa07   :  { %v3168_v37 = vadd.f32 %v3359_v56, %v3167_v55 }
 0xa09   :  { %3173 = vst [vmem:[#allocation25] sm:$0xff] %v3168_v37 }
 0xa14   :  { %v3170_v22 = vpop.f32.mrf.mxu2 }
 0xa15   :  { %v3171_v29 = vadd.f32 %v3359_v56, %v3170_v22 }
 0xa17   :  { %3174 = vst [vmem:[#allocation25 + $0x8] sm:$0xff] %v3171_v29 }
 0xa18   :  { %3187 = dma.vmem_to_hbm [thread:$0]  %s3180_s17, 256, %s3182_s5, [#allocation4], %s3893_s20, %s3893_s20, %s3894_s21  }
 0xa19   :  { %3882 = dma.done.wait [#allocation4], 256  }
 0xa1a   :  { %3883 = vsyncadd [#allocation4], 4294967040 }
 0xa1b   :  { %3192 = vsyncpa [#allocation3], 1 }
 0xa1c   :  { %3193 = vsyncpa [#allocation6], 1 }
 0xa1d   :  { %3194 = vsyncpa [#allocation9], 1 }
 0xa1e   :  { %3195 = vsyncpa [#allocation12], 1 }
 0xa1f   :  { %3196 = vsyncpa [#allocation15], 1 }
 0xa20   :  { %3197 = vsyncpa [#allocation18], 1 }
 0xa21   :  { %3198 = vsyncpa [#allocation21], 1 }
 0xa22   :  { %3199 = vsyncpa [#allocation24], 1 }
 0xa23   :  { %3200 = vsyncpa [#allocation4], 1 }

</bundles_post_ra>
